<compile_context>
chip_gen: v5e
topology: v5e:2x2
jax: 0.10.0
libtpu: 0.0.40
codegen_flags: <defaults>
</compile_context>

<pallas_src>
import functools

import jax
import jax.numpy as jnp
from jax import lax
from jax.experimental import pallas as pl
from jax.experimental.pallas import tpu as pltpu


def lstm_attn_kernel(x_ref, wih_ref, whh_ref, bg_ref,
                     w_in_ref, b_in_ref, wo_ref, bo_ref, wfc_ref, bfc_ref,
                     y_ref, hn_ref, cn_ref,
                     h_st, c_st, gxs, hseq, ctx,
                     *, num_heads, t_chunk, batch):
    chunk = pl.program_id(0)
    Tc = t_chunk
    B = batch
    M, D = x_ref.shape                       # M = Tc * B (time-major flattened)
    H = h_st.shape[-1]
    dh = H // num_heads

    @pl.when(chunk == 0)
    def _():
        h_st[...] = jnp.zeros_like(h_st)
        c_st[...] = jnp.zeros_like(c_st)

    # ---- (1) fused time-batched input projection: one (M,D)@(D,4H) matmul ----
    gates_x = (jnp.dot(x_ref[...], wih_ref[...],
                       preferred_element_type=jnp.float32)
               + bg_ref[...])                                     # (M, 4H)
    gxs[...] = gates_x.reshape(Tc, B, 4 * H)

    whh = whh_ref[...]                                            # (H, 4H) hoisted

    # ---- (2) sequential LSTM recurrence: one fused h @ W_hh per step ---------
    def step(t, carry):
        h, c = carry
        gates = gxs[t] + jnp.dot(h, whh,
                                 preferred_element_type=jnp.float32)  # (B, 4H)
        i_g = jax.nn.sigmoid(gates[:, 0:H])
        f_g = jax.nn.sigmoid(gates[:, H:2 * H])
        g_g = jnp.tanh(gates[:, 2 * H:3 * H])
        o_g = jax.nn.sigmoid(gates[:, 3 * H:4 * H])
        c_new = f_g * c + i_g * g_g
        h_new = o_g * jnp.tanh(c_new)
        hseq[t] = h_new
        return (h_new, c_new)

    h_fin, c_fin = lax.fori_loop(0, Tc, step, (h_st[...], c_st[...]))
    h_st[...] = h_fin
    c_st[...] = c_fin
    hn_ref[...] = h_fin
    cn_ref[...] = c_fin

    # ---- (3) MultiheadAttention (Q=K=V=lstm_out), time-batched ---------------
    # MHA (batch_first=False) attends over the B axis, independently per t.
    hs_flat = hseq[...].reshape(M, H)
    qkv = (jnp.dot(hs_flat, w_in_ref[...],
                   preferred_element_type=jnp.float32)
           + b_in_ref[...])                                       # (M, 3H)
    qkv3 = qkv.reshape(Tc, B, 3 * H)

    scale = float(dh) ** -0.5
    for hd in range(num_heads):                                   # static, unrolled
        lo = hd * dh
        q_h = qkv3[:, :, lo:lo + dh]                              # (Tc, B, dh)
        k_h = qkv3[:, :, H + lo:H + lo + dh]
        v_h = qkv3[:, :, 2 * H + lo:2 * H + lo + dh]
        s = jnp.einsum('tbd,tcd->tbc', q_h, k_h,
                       preferred_element_type=jnp.float32) * scale  # (Tc,B,B)
        s = s - jnp.max(s, axis=-1, keepdims=True)
        p = jnp.exp(s)
        p = p / jnp.sum(p, axis=-1, keepdims=True)                # exact: keeps 1e-4
        o_h = jnp.einsum('tbc,tcd->tbd', p, v_h,
                         preferred_element_type=jnp.float32)      # (Tc,B,dh)
        ctx[:, lo:lo + dh] = o_h.reshape(M, dh)                   # head concat via scratch

    # single full-K out-projection
    attn = (jnp.dot(ctx[...], wo_ref[...],
                    preferred_element_type=jnp.float32)
            + bo_ref[...])                                        # (M, H)

    # ---- (4) fc: Linear(H -> 1) as VPU multiply + lane reduction -------------
    y_tb = jnp.sum((attn * wfc_ref[...]).reshape(Tc, B, H), axis=-1)
    y_tb = y_tb + bfc_ref[...]                                    # (Tc, B)
    y_ref[...] = y_tb.T                                           # lane-dense (B, Tc)


def _vmem_bytes_estimate(t_chunk, B, D, H):
    """Rough per-chunk VMEM footprint (f32) used for chunk sizing."""
    M = t_chunk * B
    f = 4
    scratch = (M * 4 * H + M * H + M * H + 2 * B * H) * f          # gxs + hseq + ctx + h/c
    io = 2 * (M * D + B * t_chunk) * f                             # double-buffered x / y blocks
    weights = (D * 4 * H + H * 4 * H + 4 * H + H * 3 * H + 3 * H
               + H * H + 2 * H + 1) * f
    interm = M * 8 * H * f                                         # qkv/attn temporaries headroom
    return scratch + io + 2 * weights + interm


def _pick_t_chunk(T, B, D, H, budget=40 * 1024 * 1024):
    """Largest divisor of T that (a) keeps output blocks lane-legal and
    (b) fits the VMEM budget (v7x's 64 MiB is the tightest generation)."""
    cands = [c for c in range(1, T + 1)
             if T % c == 0 and (c == T or c % 128 == 0)]
    fitting = [c for c in cands if _vmem_bytes_estimate(c, B, D, H) <= budget]
    return max(fitting) if fitting else min(cands)


def lstm_attn_forward(x, params, *, num_heads=4, t_chunk=None):
    """x: (B, T, D) f32 -> (y (B,T,1), (h_n (1,B,H), c_n (1,B,H)))."""
    B, T, D = x.shape
    H = params["whh_T"].shape[0]
    assert H % num_heads == 0
    if t_chunk is None:
        t_chunk = _pick_t_chunk(T, B, D, H)
    assert T % t_chunk == 0
    assert t_chunk == T or t_chunk % 128 == 0
    n_chunks = T // t_chunk
    M = t_chunk * B

    # Time-major flatten in the wrapper -> kernel matmuls see a dense (M, D)
    # operand without any in-kernel reshape of the input block.
    x_flat = jnp.transpose(x, (1, 0, 2)).reshape(T * B, D)

    kernel = functools.partial(lstm_attn_kernel, num_heads=num_heads,
                               t_chunk=t_chunk, batch=B)

    def vmem_full():
        # Constant across the grid: whole array resident in VMEM, not pipelined
        # (avoids the default double-buffering of weight operands).
        return pl.BlockSpec(memory_space=pltpu.MemorySpace.VMEM)

    est = _vmem_bytes_estimate(t_chunk, B, D, H)
    vmem_limit = int(min(60 * 1024 * 1024,
                         max(32 * 1024 * 1024, int(1.5 * est))))

    y_bt, hn, cn = pl.pallas_call(
        kernel,
        out_shape=(jax.ShapeDtypeStruct((B, T), jnp.float32),
                   jax.ShapeDtypeStruct((B, H), jnp.float32),
                   jax.ShapeDtypeStruct((B, H), jnp.float32)),
        grid_spec=pltpu.PrefetchScalarGridSpec(
            num_scalar_prefetch=0,
            grid=(n_chunks,),
            in_specs=[
                pl.BlockSpec((M, D), lambda i: (i, 0)),   # x chunk, (t_chunk*B, D)
                vmem_full(),   # W_ih^T  (D, 4H)   gate order i,f,g,o
                vmem_full(),   # W_hh^T  (H, 4H)
                vmem_full(),   # b_ih + b_hh  (1, 4H)
                vmem_full(),   # in_proj^T (H, 3H)  q|k|v
                vmem_full(),   # in_proj bias (1, 3H)
                vmem_full(),   # out_proj^T (H, H)
                vmem_full(),   # out_proj bias (1, H)
                vmem_full(),   # fc weight row (1, H)
                vmem_full(),   # fc bias (1, 1)
            ],
            out_specs=[
                pl.BlockSpec((B, t_chunk), lambda i: (0, i)),   # lane-dense y
                pl.BlockSpec((B, H), lambda i: (0, 0)),         # h_n
                pl.BlockSpec((B, H), lambda i: (0, 0)),         # c_n
            ],
            scratch_shapes=[
                pltpu.VMEM((B, H), jnp.float32),                # h state (carried)
                pltpu.VMEM((B, H), jnp.float32),                # c state (carried)
                pltpu.VMEM((t_chunk, B, 4 * H), jnp.float32),   # fused input gates
                pltpu.VMEM((t_chunk, B, H), jnp.float32),       # h sequence
                pltpu.VMEM((M, H), jnp.float32),                # attention context
            ],
        ),
        compiler_params=pltpu.CompilerParams(
            dimension_semantics=("arbitrary",),     # recurrence is sequential
            vmem_limit_bytes=vmem_limit),
    )(x_flat, params["wih_T"], params["whh_T"], params["bg"],
      params["w_in_T"], params["b_in"], params["wo_T"], params["bo"],
      params["wfc"], params["bfc"])

    return y_bt[..., None], (hn[None, ...], cn[None, ...])


def lstm_attn_reference(x, params, *, num_heads=4):
    """Pure-JAX reference of the same forward (eval mode, hidden=None)."""
    B, T, D = x.shape
    H = params["whh_T"].shape[0]
    dh = H // num_heads

    def step(carry, x_t):
        h, c = carry
        gates = x_t @ params["wih_T"] + h @ params["whh_T"] + params["bg"]
        i_g = jax.nn.sigmoid(gates[:, 0:H])
        f_g = jax.nn.sigmoid(gates[:, H:2 * H])
        g_g = jnp.tanh(gates[:, 2 * H:3 * H])
        o_g = jax.nn.sigmoid(gates[:, 3 * H:4 * H])
        c = f_g * c + i_g * g_g
        h = o_g * jnp.tanh(c)
        return (h, c), h

    h0 = jnp.zeros((B, H), jnp.float32)
    c0 = jnp.zeros((B, H), jnp.float32)
    (h_n, c_n), hs = lax.scan(step, (h0, c0), jnp.transpose(x, (1, 0, 2)))
    lstm_out = jnp.transpose(hs, (1, 0, 2))               # (B, T, H)

    # nn.MultiheadAttention(batch_first=False) sees lstm_out as (L=B, N=T, E=H)
    qkv = lstm_out @ params["w_in_T"] + params["b_in"]
    q, k, v = qkv[..., :H], qkv[..., H:2 * H], qkv[..., 2 * H:]
    qh = q.reshape(B, T, num_heads, dh)
    kh = k.reshape(B, T, num_heads, dh)
    vh = v.reshape(B, T, num_heads, dh)
    scores = jnp.einsum('bthd,cthd->thbc', qh, kh) / jnp.sqrt(float(dh))
    p = jax.nn.softmax(scores, axis=-1)
    attn = jnp.einsum('thbc,cthd->bthd', p, vh).reshape(B, T, H)
    attn = attn @ params["wo_T"] + params["bo"]
    y = attn @ params["wfc"].T + params["bfc"]            # (B, T, 1)
    return y, (h_n[None, ...], c_n[None, ...])


def init_params(key, input_size, hidden_size):
    D, H = input_size, hidden_size
    ks = jax.random.split(key, 9)
    s = 0.1
    return {
        # LSTM (gate order i, f, g, o), stored pre-transposed for x @ W
        "wih_T":  s * jax.random.normal(ks[0], (D, 4 * H), jnp.float32),
        "whh_T":  s * jax.random.normal(ks[1], (H, 4 * H), jnp.float32),
        "bg":     s * jax.random.normal(ks[2], (1, 4 * H), jnp.float32),  # b_ih+b_hh
        # MultiheadAttention in_proj (q, k, v stacked) and out_proj
        "w_in_T": s * jax.random.normal(ks[3], (H, 3 * H), jnp.float32),
        "b_in":   s * jax.random.normal(ks[4], (1, 3 * H), jnp.float32),
        "wo_T":   s * jax.random.normal(ks[5], (H, H), jnp.float32),
        "bo":     s * jax.random.normal(ks[6], (1, H), jnp.float32),
        # fc: Linear(H, 1)
        "wfc":    s * jax.random.normal(ks[7], (1, H), jnp.float32),
        "bfc":    s * jax.random.normal(ks[8], (1, 1), jnp.float32),
    }


if __name__ == "__main__":
    B, T, D, H = 2, 8, 16, 32          # batch=2, seq=8, input=16, hidden=32, heads=4
    key = jax.random.PRNGKey(0)
    kx, kp = jax.random.split(key)
    x = jax.random.normal(kx, (B, T, D), jnp.float32)
    params = init_params(kp, D, H)

    y, (hn, cn) = lstm_attn_forward(x, params, num_heads=4)
    y = jax.block_until_ready(y)
    hn = jax.block_until_ready(hn)
    cn = jax.block_until_ready(cn)

    y_ref, (hn_ref, cn_ref) = lstm_attn_reference(x, params, num_heads=4)

    assert y.shape == (B, T, 1), y.shape
    assert hn.shape == (1, B, H) and cn.shape == (1, B, H)
    assert jnp.allclose(y, y_ref, rtol=1e-4, atol=1e-4), \
        float(jnp.max(jnp.abs(y - y_ref)))
    assert jnp.allclose(hn, hn_ref, rtol=1e-4, atol=1e-4)
    assert jnp.allclose(cn, cn_ref, rtol=1e-4, atol=1e-4)
    print("KERNEL_OK")
</pallas_src>

<mosaic_0001>
module attributes {stable_mosaic.version = 11 : i64} {
  func.func @lstm_attn_kernel(%arg0: i32, %arg1: memref<16x16xf32, #tpu.memory_space<vmem>>, %arg2: memref<16x128xf32, #tpu.memory_space<vmem>>, %arg3: memref<32x128xf32, #tpu.memory_space<vmem>>, %arg4: memref<1x128xf32, #tpu.memory_space<vmem>>, %arg5: memref<32x96xf32, #tpu.memory_space<vmem>>, %arg6: memref<1x96xf32, #tpu.memory_space<vmem>>, %arg7: memref<32x32xf32, #tpu.memory_space<vmem>>, %arg8: memref<1x32xf32, #tpu.memory_space<vmem>>, %arg9: memref<1x32xf32, #tpu.memory_space<vmem>>, %arg10: memref<1x1xf32, #tpu.memory_space<vmem>>, %arg11: memref<2x8xf32, #tpu.memory_space<vmem>>, %arg12: memref<2x32xf32, #tpu.memory_space<vmem>>, %arg13: memref<2x32xf32, #tpu.memory_space<vmem>>, %arg14: memref<2x32xf32, #tpu.memory_space<vmem>>, %arg15: memref<2x32xf32, #tpu.memory_space<vmem>>, %arg16: memref<8x2x128xf32, #tpu.memory_space<vmem>>, %arg17: memref<8x2x32xf32, #tpu.memory_space<vmem>>, %arg18: memref<16x32xf32, #tpu.memory_space<vmem>>) attributes {dimension_semantics = [#tpu.dimension_semantics<arbitrary>], iteration_bounds = array<i64: 1>, scalar_prefetch = 0 : i64, scratch_operands = 5 : i64, tpu.core_type = #tpu.core_type<tc>, window_params = [{transform_indices = @transform_0, window_bounds = array<i64: 16, 16>}, {pipeline_mode = #tpu.pipeline_mode<synchronous>, transform_indices = @transform_1, window_bounds = array<i64: 16, 128>}, {pipeline_mode = #tpu.pipeline_mode<synchronous>, transform_indices = @transform_2, window_bounds = array<i64: 32, 128>}, {pipeline_mode = #tpu.pipeline_mode<synchronous>, transform_indices = @transform_3, window_bounds = array<i64: 1, 128>}, {pipeline_mode = #tpu.pipeline_mode<synchronous>, transform_indices = @transform_4, window_bounds = array<i64: 32, 96>}, {pipeline_mode = #tpu.pipeline_mode<synchronous>, transform_indices = @transform_5, window_bounds = array<i64: 1, 96>}, {pipeline_mode = #tpu.pipeline_mode<synchronous>, transform_indices = @transform_6, window_bounds = array<i64: 32, 32>}, {pipeline_mode = #tpu.pipeline_mode<synchronous>, transform_indices = @transform_7, window_bounds = array<i64: 1, 32>}, {pipeline_mode = #tpu.pipeline_mode<synchronous>, transform_indices = @transform_8, window_bounds = array<i64: 1, 32>}, {pipeline_mode = #tpu.pipeline_mode<synchronous>, transform_indices = @transform_9, window_bounds = array<i64: 1, 1>}, {transform_indices = @transform_10, window_bounds = array<i64: 2, 8>}, {pipeline_mode = #tpu.pipeline_mode<synchronous>, transform_indices = @transform_11, window_bounds = array<i64: 2, 32>}, {pipeline_mode = #tpu.pipeline_mode<synchronous>, transform_indices = @transform_12, window_bounds = array<i64: 2, 32>}]} {
    %c0_i32 = arith.constant 0 : i32
    %0 = arith.cmpi eq, %arg0, %c0_i32 : i32
    %1 = arith.extui %0 : i1 to i32
    %c0_i32_0 = arith.constant 0 : i32
    %2 = arith.cmpi ne, %1, %c0_i32_0 : i32
    scf.if %2 {
      %cst_72 = arith.constant 0.000000e+00 : f32
      %116 = vector.broadcast %cst_72 : f32 to vector<2x32xf32>
      %c0_73 = arith.constant 0 : index
      %c0_74 = arith.constant 0 : index
      %117 = vector.load %arg14[%c0_73, %c0_74] : memref<2x32xf32, #tpu.memory_space<vmem>>, vector<2x32xf32>
      tpu.vector_store %arg14[%c0_73, %c0_74], %116 {strides = array<i32>} : memref<2x32xf32, #tpu.memory_space<vmem>>, vector<2x32xf32>,
      %cst_75 = arith.constant 0.000000e+00 : f32
      %118 = vector.broadcast %cst_75 : f32 to vector<2x32xf32>
      %c0_76 = arith.constant 0 : index
      %c0_77 = arith.constant 0 : index
      %119 = vector.load %arg15[%c0_76, %c0_77] : memref<2x32xf32, #tpu.memory_space<vmem>>, vector<2x32xf32>
      tpu.vector_store %arg15[%c0_76, %c0_77], %118 {strides = array<i32>} : memref<2x32xf32, #tpu.memory_space<vmem>>, vector<2x32xf32>,
    } else {
    }
    %c0 = arith.constant 0 : index
    %c0_1 = arith.constant 0 : index
    %3 = vector.load %arg1[%c0, %c0_1] : memref<16x16xf32, #tpu.memory_space<vmem>>, vector<16x16xf32>
    %c0_2 = arith.constant 0 : index
    %c0_3 = arith.constant 0 : index
    %4 = vector.load %arg2[%c0_2, %c0_3] : memref<16x128xf32, #tpu.memory_space<vmem>>, vector<16x128xf32>
    %cst = arith.constant dense<0.000000e+00> : vector<16x128xf32>
    %5 = tpu.matmul %3, %4, %cst {dimension_numbers = #tpu.dot_dimension_numbers<[1], [0], [0], [1], [0, 0, 1, 1], [], []>} : vector<16x16xf32>, vector<16x128xf32>, vector<16x128xf32> -> vector<16x128xf32>
    %c0_4 = arith.constant 0 : index
    %c0_5 = arith.constant 0 : index
    %6 = vector.load %arg4[%c0_4, %c0_5] : memref<1x128xf32, #tpu.memory_space<vmem>>, vector<1x128xf32>
    %7 = vector.broadcast %6 : vector<1x128xf32> to vector<16x128xf32>
    %8 = arith.addf %5, %7 : vector<16x128xf32>
    %9 = vector.shape_cast %8 : vector<16x128xf32> to vector<8x2x128xf32>
    %c0_6 = arith.constant 0 : index
    %c0_7 = arith.constant 0 : index
    %c0_8 = arith.constant 0 : index
    %10 = vector.load %arg16[%c0_6, %c0_7, %c0_8] : memref<8x2x128xf32, #tpu.memory_space<vmem>>, vector<8x2x128xf32>
    tpu.vector_store %arg16[%c0_6, %c0_7, %c0_8], %9 {strides = array<i32>} : memref<8x2x128xf32, #tpu.memory_space<vmem>>, vector<8x2x128xf32>,
    %c0_9 = arith.constant 0 : index
    %c0_10 = arith.constant 0 : index
    %11 = vector.load %arg3[%c0_9, %c0_10] : memref<32x128xf32, #tpu.memory_space<vmem>>, vector<32x128xf32>
    %c0_11 = arith.constant 0 : index
    %c0_12 = arith.constant 0 : index
    %12 = vector.load %arg14[%c0_11, %c0_12] : memref<2x32xf32, #tpu.memory_space<vmem>>, vector<2x32xf32>
    %c0_13 = arith.constant 0 : index
    %c0_14 = arith.constant 0 : index
    %13 = vector.load %arg15[%c0_13, %c0_14] : memref<2x32xf32, #tpu.memory_space<vmem>>, vector<2x32xf32>
    %c0_i32_15 = arith.constant 0 : i32
    %c8_i32 = arith.constant 8 : i32
    %14 = arith.addi %c0_i32_15, %c8_i32 : i32
    %c1_i32 = arith.constant 1 : i32
    %15:2 = scf.for %arg19 = %c0_i32_15 to %14 step %c1_i32 iter_args(%arg20 = %12, %arg21 = %13) -> (vector<2x32xf32>, vector<2x32xf32>)  : i32 {
      %116 = arith.index_cast %arg19 : i32 to index
      %c0_72 = arith.constant 0 : index
      %c0_73 = arith.constant 0 : index
      %117 = vector.load %arg16[%116, %c0_72, %c0_73] : memref<8x2x128xf32, #tpu.memory_space<vmem>>, vector<1x2x128xf32>
      %118 = vector.shape_cast %117 : vector<1x2x128xf32> to vector<2x128xf32>
      %cst_74 = arith.constant dense<0.000000e+00> : vector<2x128xf32>
      %119 = tpu.matmul %arg20, %11, %cst_74 {dimension_numbers = #tpu.dot_dimension_numbers<[1], [0], [0], [1], [0, 0, 1, 1], [], []>} : vector<2x32xf32>, vector<32x128xf32>, vector<2x128xf32> -> vector<2x128xf32>
      %120 = arith.addf %118, %119 : vector<2x128xf32>
      %121 = vector.extract_strided_slice %120 {offsets = [0, 0], sizes = [2, 32], strides = [1, 1]} : vector<2x128xf32> to vector<2x32xf32>
      %122 = arith.negf %121 : vector<2x32xf32>
      %123 = math.exp %122 : vector<2x32xf32>
      %cst_75 = arith.constant 1.000000e+00 : f32
      %124 = vector.broadcast %cst_75 : f32 to vector<2x32xf32>
      %125 = arith.addf %124, %123 : vector<2x32xf32>
      %126 = arith.divf %124, %125 : vector<2x32xf32>
      %127 = vector.extract_strided_slice %120 {offsets = [0, 32], sizes = [2, 32], strides = [1, 1]} : vector<2x128xf32> to vector<2x32xf32>
      %128 = arith.negf %127 : vector<2x32xf32>
      %129 = math.exp %128 : vector<2x32xf32>
      %cst_76 = arith.constant 1.000000e+00 : f32
      %130 = vector.broadcast %cst_76 : f32 to vector<2x32xf32>
      %131 = arith.addf %130, %129 : vector<2x32xf32>
      %132 = arith.divf %130, %131 : vector<2x32xf32>
      %133 = vector.extract_strided_slice %120 {offsets = [0, 64], sizes = [2, 32], strides = [1, 1]} : vector<2x128xf32> to vector<2x32xf32>
      %134 = math.tanh %133 : vector<2x32xf32>
      %135 = vector.extract_strided_slice %120 {offsets = [0, 96], sizes = [2, 32], strides = [1, 1]} : vector<2x128xf32> to vector<2x32xf32>
      %136 = arith.negf %135 : vector<2x32xf32>
      %137 = math.exp %136 : vector<2x32xf32>
      %cst_77 = arith.constant 1.000000e+00 : f32
      %138 = vector.broadcast %cst_77 : f32 to vector<2x32xf32>
      %139 = arith.addf %138, %137 : vector<2x32xf32>
      %140 = arith.divf %138, %139 : vector<2x32xf32>
      %141 = arith.mulf %132, %arg21 : vector<2x32xf32>
      %142 = arith.mulf %126, %134 : vector<2x32xf32>
      %143 = arith.addf %141, %142 : vector<2x32xf32>
      %144 = math.tanh %143 : vector<2x32xf32>
      %145 = arith.mulf %140, %144 : vector<2x32xf32>
      %146 = arith.index_cast %arg19 : i32 to index
      %c0_78 = arith.constant 0 : index
      %c0_79 = arith.constant 0 : index
      %147 = vector.load %arg17[%146, %c0_78, %c0_79] : memref<8x2x32xf32, #tpu.memory_space<vmem>>, vector<1x2x32xf32>
      %148 = vector.shape_cast %147 : vector<1x2x32xf32> to vector<2x32xf32>
      %149 = vector.shape_cast %145 : vector<2x32xf32> to vector<1x2x32xf32>
      tpu.vector_store %arg17[%146, %c0_78, %c0_79], %149 {strides = array<i32>} : memref<8x2x32xf32, #tpu.memory_space<vmem>>, vector<1x2x32xf32>,
      scf.yield %145, %143 : vector<2x32xf32>, vector<2x32xf32>
    }
    %c8_i32_16 = arith.constant 8 : i32
    %c0_17 = arith.constant 0 : index
    %c0_18 = arith.constant 0 : index
    %16 = vector.load %arg14[%c0_17, %c0_18] : memref<2x32xf32, #tpu.memory_space<vmem>>, vector<2x32xf32>
    tpu.vector_store %arg14[%c0_17, %c0_18], %15#0 {strides = array<i32>} : memref<2x32xf32, #tpu.memory_space<vmem>>, vector<2x32xf32>,
    %c0_19 = arith.constant 0 : index
    %c0_20 = arith.constant 0 : index
    %17 = vector.load %arg15[%c0_19, %c0_20] : memref<2x32xf32, #tpu.memory_space<vmem>>, vector<2x32xf32>
    tpu.vector_store %arg15[%c0_19, %c0_20], %15#1 {strides = array<i32>} : memref<2x32xf32, #tpu.memory_space<vmem>>, vector<2x32xf32>,
    %c0_21 = arith.constant 0 : index
    %c0_22 = arith.constant 0 : index
    %18 = vector.load %arg12[%c0_21, %c0_22] : memref<2x32xf32, #tpu.memory_space<vmem>>, vector<2x32xf32>
    tpu.vector_store %arg12[%c0_21, %c0_22], %15#0 {strides = array<i32>} : memref<2x32xf32, #tpu.memory_space<vmem>>, vector<2x32xf32>,
    %c0_23 = arith.constant 0 : index
    %c0_24 = arith.constant 0 : index
    %19 = vector.load %arg13[%c0_23, %c0_24] : memref<2x32xf32, #tpu.memory_space<vmem>>, vector<2x32xf32>
    tpu.vector_store %arg13[%c0_23, %c0_24], %15#1 {strides = array<i32>} : memref<2x32xf32, #tpu.memory_space<vmem>>, vector<2x32xf32>,
    %c0_25 = arith.constant 0 : index
    %c0_26 = arith.constant 0 : index
    %c0_27 = arith.constant 0 : index
    %20 = vector.load %arg17[%c0_25, %c0_26, %c0_27] : memref<8x2x32xf32, #tpu.memory_space<vmem>>, vector<8x2x32xf32>
    %21 = vector.shape_cast %20 : vector<8x2x32xf32> to vector<16x32xf32>
    %c0_28 = arith.constant 0 : index
    %c0_29 = arith.constant 0 : index
    %22 = vector.load %arg5[%c0_28, %c0_29] : memref<32x96xf32, #tpu.memory_space<vmem>>, vector<32x96xf32>
    %cst_30 = arith.constant dense<0.000000e+00> : vector<16x96xf32>
    %23 = tpu.matmul %21, %22, %cst_30 {dimension_numbers = #tpu.dot_dimension_numbers<[1], [0], [0], [1], [0, 0, 1, 1], [], []>} : vector<16x32xf32>, vector<32x96xf32>, vector<16x96xf32> -> vector<16x96xf32>
    %c0_31 = arith.constant 0 : index
    %c0_32 = arith.constant 0 : index
    %24 = vector.load %arg6[%c0_31, %c0_32] : memref<1x96xf32, #tpu.memory_space<vmem>>, vector<1x96xf32>
    %25 = vector.broadcast %24 : vector<1x96xf32> to vector<16x96xf32>
    %26 = arith.addf %23, %25 : vector<16x96xf32>
    %27 = vector.shape_cast %26 : vector<16x96xf32> to vector<8x2x96xf32>
    %28 = vector.extract_strided_slice %27 {offsets = [0, 0, 0], sizes = [8, 2, 8], strides = [1, 1, 1]} : vector<8x2x96xf32> to vector<8x2x8xf32>
    %29 = vector.extract_strided_slice %27 {offsets = [0, 0, 32], sizes = [8, 2, 8], strides = [1, 1, 1]} : vector<8x2x96xf32> to vector<8x2x8xf32>
    %30 = vector.extract_strided_slice %27 {offsets = [0, 0, 64], sizes = [8, 2, 8], strides = [1, 1, 1]} : vector<8x2x96xf32> to vector<8x2x8xf32>
    "tpu.trace_start"() <{level = 10 : i32, message = "tbd,tcd->tbc"}> : () -> ()
    %cst_33 = arith.constant dense<0.000000e+00> : vector<8x2x2xf32>
    %31 = tpu.matmul %28, %29, %cst_33 {dimension_numbers = #tpu.dot_dimension_numbers<[2], [2], [1], [1], [0, 0, 0, 1, 1, 1], [0], [0]>} : vector<8x2x8xf32>, vector<8x2x8xf32>, vector<8x2x2xf32> -> vector<8x2x2xf32>
    "tpu.trace_stop"() : () -> ()
    %cst_34 = arith.constant 0.353553385 : f32
    %32 = vector.broadcast %cst_34 : f32 to vector<8x2x2xf32>
    %33 = arith.mulf %31, %32 : vector<8x2x2xf32>
    %cst_35 = arith.constant dense<0xFF800000> : vector<8x2xf32>
    %34 = vector.multi_reduction <maximumf>, %33, %cst_35 [2] : vector<8x2x2xf32> to vector<8x2xf32>
    %35 = vector.shape_cast %34 : vector<8x2xf32> to vector<8x2x1xf32>
    %36 = vector.broadcast %35 : vector<8x2x1xf32> to vector<8x2x2xf32>
    %37 = arith.subf %33, %36 : vector<8x2x2xf32>
    %38 = math.exp %37 : vector<8x2x2xf32>
    %cst_36 = arith.constant dense<0.000000e+00> : vector<8x2xf32>
    %39 = vector.multi_reduction <add>, %38, %cst_36 [2] : vector<8x2x2xf32> to vector<8x2xf32>
    %40 = vector.shape_cast %39 : vector<8x2xf32> to vector<8x2x1xf32>
    %41 = vector.broadcast %40 : vector<8x2x1xf32> to vector<8x2x2xf32>
    %42 = arith.divf %38, %41 : vector<8x2x2xf32>
    "tpu.trace_start"() <{level = 10 : i32, message = "tbc,tcd->tbd"}> : () -> ()
    %cst_37 = arith.constant dense<0.000000e+00> : vector<8x2x8xf32>
    %43 = tpu.matmul %42, %30, %cst_37 {dimension_numbers = #tpu.dot_dimension_numbers<[2], [1], [1], [2], [0, 0, 0, 1, 1, 2], [0], [0]>} : vector<8x2x2xf32>, vector<8x2x8xf32>, vector<8x2x8xf32> -> vector<8x2x8xf32>
    "tpu.trace_stop"() : () -> ()
    %44 = vector.shape_cast %43 : vector<8x2x8xf32> to vector<16x8xf32>
    %c0_38 = arith.constant 0 : index
    %c0_39 = arith.constant 0 : index
    %45 = vector.load %arg18[%c0_38, %c0_39] : memref<16x32xf32, #tpu.memory_space<vmem>>, vector<16x8xf32>
    tpu.vector_store %arg18[%c0_38, %c0_39], %44 {strides = array<i32>} : memref<16x32xf32, #tpu.memory_space<vmem>>, vector<16x8xf32>,
    %46 = vector.extract_strided_slice %27 {offsets = [0, 0, 8], sizes = [8, 2, 8], strides = [1, 1, 1]} : vector<8x2x96xf32> to vector<8x2x8xf32>
    %47 = vector.extract_strided_slice %27 {offsets = [0, 0, 40], sizes = [8, 2, 8], strides = [1, 1, 1]} : vector<8x2x96xf32> to vector<8x2x8xf32>
    %48 = vector.extract_strided_slice %27 {offsets = [0, 0, 72], sizes = [8, 2, 8], strides = [1, 1, 1]} : vector<8x2x96xf32> to vector<8x2x8xf32>
    "tpu.trace_start"() <{level = 10 : i32, message = "tbd,tcd->tbc"}> : () -> ()
    %cst_40 = arith.constant dense<0.000000e+00> : vector<8x2x2xf32>
    %49 = tpu.matmul %46, %47, %cst_40 {dimension_numbers = #tpu.dot_dimension_numbers<[2], [2], [1], [1], [0, 0, 0, 1, 1, 1], [0], [0]>} : vector<8x2x8xf32>, vector<8x2x8xf32>, vector<8x2x2xf32> -> vector<8x2x2xf32>
    "tpu.trace_stop"() : () -> ()
    %cst_41 = arith.constant 0.353553385 : f32
    %50 = vector.broadcast %cst_41 : f32 to vector<8x2x2xf32>
    %51 = arith.mulf %49, %50 : vector<8x2x2xf32>
    %cst_42 = arith.constant dense<0xFF800000> : vector<8x2xf32>
    %52 = vector.multi_reduction <maximumf>, %51, %cst_42 [2] : vector<8x2x2xf32> to vector<8x2xf32>
    %53 = vector.shape_cast %52 : vector<8x2xf32> to vector<8x2x1xf32>
    %54 = vector.broadcast %53 : vector<8x2x1xf32> to vector<8x2x2xf32>
    %55 = arith.subf %51, %54 : vector<8x2x2xf32>
    %56 = math.exp %55 : vector<8x2x2xf32>
    %cst_43 = arith.constant dense<0.000000e+00> : vector<8x2xf32>
    %57 = vector.multi_reduction <add>, %56, %cst_43 [2] : vector<8x2x2xf32> to vector<8x2xf32>
    %58 = vector.shape_cast %57 : vector<8x2xf32> to vector<8x2x1xf32>
    %59 = vector.broadcast %58 : vector<8x2x1xf32> to vector<8x2x2xf32>
    %60 = arith.divf %56, %59 : vector<8x2x2xf32>
    "tpu.trace_start"() <{level = 10 : i32, message = "tbc,tcd->tbd"}> : () -> ()
    %cst_44 = arith.constant dense<0.000000e+00> : vector<8x2x8xf32>
    %61 = tpu.matmul %60, %48, %cst_44 {dimension_numbers = #tpu.dot_dimension_numbers<[2], [1], [1], [2], [0, 0, 0, 1, 1, 2], [0], [0]>} : vector<8x2x2xf32>, vector<8x2x8xf32>, vector<8x2x8xf32> -> vector<8x2x8xf32>
    "tpu.trace_stop"() : () -> ()
    %62 = vector.shape_cast %61 : vector<8x2x8xf32> to vector<16x8xf32>
    %c0_45 = arith.constant 0 : index
    %c8 = arith.constant 8 : index
    %63 = vector.load %arg18[%c0_45, %c8] : memref<16x32xf32, #tpu.memory_space<vmem>>, vector<16x8xf32>
    tpu.vector_store %arg18[%c0_45, %c8], %62 {strides = array<i32>} : memref<16x32xf32, #tpu.memory_space<vmem>>, vector<16x8xf32>,
    %64 = vector.extract_strided_slice %27 {offsets = [0, 0, 16], sizes = [8, 2, 8], strides = [1, 1, 1]} : vector<8x2x96xf32> to vector<8x2x8xf32>
    %65 = vector.extract_strided_slice %27 {offsets = [0, 0, 48], sizes = [8, 2, 8], strides = [1, 1, 1]} : vector<8x2x96xf32> to vector<8x2x8xf32>
    %66 = vector.extract_strided_slice %27 {offsets = [0, 0, 80], sizes = [8, 2, 8], strides = [1, 1, 1]} : vector<8x2x96xf32> to vector<8x2x8xf32>
    "tpu.trace_start"() <{level = 10 : i32, message = "tbd,tcd->tbc"}> : () -> ()
    %cst_46 = arith.constant dense<0.000000e+00> : vector<8x2x2xf32>
    %67 = tpu.matmul %64, %65, %cst_46 {dimension_numbers = #tpu.dot_dimension_numbers<[2], [2], [1], [1], [0, 0, 0, 1, 1, 1], [0], [0]>} : vector<8x2x8xf32>, vector<8x2x8xf32>, vector<8x2x2xf32> -> vector<8x2x2xf32>
    "tpu.trace_stop"() : () -> ()
    %cst_47 = arith.constant 0.353553385 : f32
    %68 = vector.broadcast %cst_47 : f32 to vector<8x2x2xf32>
    %69 = arith.mulf %67, %68 : vector<8x2x2xf32>
    %cst_48 = arith.constant dense<0xFF800000> : vector<8x2xf32>
    %70 = vector.multi_reduction <maximumf>, %69, %cst_48 [2] : vector<8x2x2xf32> to vector<8x2xf32>
    %71 = vector.shape_cast %70 : vector<8x2xf32> to vector<8x2x1xf32>
    %72 = vector.broadcast %71 : vector<8x2x1xf32> to vector<8x2x2xf32>
    %73 = arith.subf %69, %72 : vector<8x2x2xf32>
    %74 = math.exp %73 : vector<8x2x2xf32>
    %cst_49 = arith.constant dense<0.000000e+00> : vector<8x2xf32>
    %75 = vector.multi_reduction <add>, %74, %cst_49 [2] : vector<8x2x2xf32> to vector<8x2xf32>
    %76 = vector.shape_cast %75 : vector<8x2xf32> to vector<8x2x1xf32>
    %77 = vector.broadcast %76 : vector<8x2x1xf32> to vector<8x2x2xf32>
    %78 = arith.divf %74, %77 : vector<8x2x2xf32>
    "tpu.trace_start"() <{level = 10 : i32, message = "tbc,tcd->tbd"}> : () -> ()
    %cst_50 = arith.constant dense<0.000000e+00> : vector<8x2x8xf32>
    %79 = tpu.matmul %78, %66, %cst_50 {dimension_numbers = #tpu.dot_dimension_numbers<[2], [1], [1], [2], [0, 0, 0, 1, 1, 2], [0], [0]>} : vector<8x2x2xf32>, vector<8x2x8xf32>, vector<8x2x8xf32> -> vector<8x2x8xf32>
    "tpu.trace_stop"() : () -> ()
    %80 = vector.shape_cast %79 : vector<8x2x8xf32> to vector<16x8xf32>
    %c0_51 = arith.constant 0 : index
    %c16 = arith.constant 16 : index
    %81 = vector.load %arg18[%c0_51, %c16] : memref<16x32xf32, #tpu.memory_space<vmem>>, vector<16x8xf32>
    tpu.vector_store %arg18[%c0_51, %c16], %80 {strides = array<i32>} : memref<16x32xf32, #tpu.memory_space<vmem>>, vector<16x8xf32>,
    %82 = vector.extract_strided_slice %27 {offsets = [0, 0, 24], sizes = [8, 2, 8], strides = [1, 1, 1]} : vector<8x2x96xf32> to vector<8x2x8xf32>
    %83 = vector.extract_strided_slice %27 {offsets = [0, 0, 56], sizes = [8, 2, 8], strides = [1, 1, 1]} : vector<8x2x96xf32> to vector<8x2x8xf32>
    %84 = vector.extract_strided_slice %27 {offsets = [0, 0, 88], sizes = [8, 2, 8], strides = [1, 1, 1]} : vector<8x2x96xf32> to vector<8x2x8xf32>
    "tpu.trace_start"() <{level = 10 : i32, message = "tbd,tcd->tbc"}> : () -> ()
    %cst_52 = arith.constant dense<0.000000e+00> : vector<8x2x2xf32>
    %85 = tpu.matmul %82, %83, %cst_52 {dimension_numbers = #tpu.dot_dimension_numbers<[2], [2], [1], [1], [0, 0, 0, 1, 1, 1], [0], [0]>} : vector<8x2x8xf32>, vector<8x2x8xf32>, vector<8x2x2xf32> -> vector<8x2x2xf32>
    "tpu.trace_stop"() : () -> ()
    %cst_53 = arith.constant 0.353553385 : f32
    %86 = vector.broadcast %cst_53 : f32 to vector<8x2x2xf32>
    %87 = arith.mulf %85, %86 : vector<8x2x2xf32>
    %cst_54 = arith.constant dense<0xFF800000> : vector<8x2xf32>
    %88 = vector.multi_reduction <maximumf>, %87, %cst_54 [2] : vector<8x2x2xf32> to vector<8x2xf32>
    %89 = vector.shape_cast %88 : vector<8x2xf32> to vector<8x2x1xf32>
    %90 = vector.broadcast %89 : vector<8x2x1xf32> to vector<8x2x2xf32>
    %91 = arith.subf %87, %90 : vector<8x2x2xf32>
    %92 = math.exp %91 : vector<8x2x2xf32>
    %cst_55 = arith.constant dense<0.000000e+00> : vector<8x2xf32>
    %93 = vector.multi_reduction <add>, %92, %cst_55 [2] : vector<8x2x2xf32> to vector<8x2xf32>
    %94 = vector.shape_cast %93 : vector<8x2xf32> to vector<8x2x1xf32>
    %95 = vector.broadcast %94 : vector<8x2x1xf32> to vector<8x2x2xf32>
    %96 = arith.divf %92, %95 : vector<8x2x2xf32>
    "tpu.trace_start"() <{level = 10 : i32, message = "tbc,tcd->tbd"}> : () -> ()
    %cst_56 = arith.constant dense<0.000000e+00> : vector<8x2x8xf32>
    %97 = tpu.matmul %96, %84, %cst_56 {dimension_numbers = #tpu.dot_dimension_numbers<[2], [1], [1], [2], [0, 0, 0, 1, 1, 2], [0], [0]>} : vector<8x2x2xf32>, vector<8x2x8xf32>, vector<8x2x8xf32> -> vector<8x2x8xf32>
    "tpu.trace_stop"() : () -> ()
    %98 = vector.shape_cast %97 : vector<8x2x8xf32> to vector<16x8xf32>
    %c0_57 = arith.constant 0 : index
    %c24 = arith.constant 24 : index
    %99 = vector.load %arg18[%c0_57, %c24] : memref<16x32xf32, #tpu.memory_space<vmem>>, vector<16x8xf32>
    tpu.vector_store %arg18[%c0_57, %c24], %98 {strides = array<i32>} : memref<16x32xf32, #tpu.memory_space<vmem>>, vector<16x8xf32>,
    %c0_58 = arith.constant 0 : index
    %c0_59 = arith.constant 0 : index
    %100 = vector.load %arg18[%c0_58, %c0_59] : memref<16x32xf32, #tpu.memory_space<vmem>>, vector<16x32xf32>
    %c0_60 = arith.constant 0 : index
    %c0_61 = arith.constant 0 : index
    %101 = vector.load %arg7[%c0_60, %c0_61] : memref<32x32xf32, #tpu.memory_space<vmem>>, vector<32x32xf32>
    %cst_62 = arith.constant dense<0.000000e+00> : vector<16x32xf32>
    %102 = tpu.matmul %100, %101, %cst_62 {dimension_numbers = #tpu.dot_dimension_numbers<[1], [0], [0], [1], [0, 0, 1, 1], [], []>} : vector<16x32xf32>, vector<32x32xf32>, vector<16x32xf32> -> vector<16x32xf32>
    %c0_63 = arith.constant 0 : index
    %c0_64 = arith.constant 0 : index
    %103 = vector.load %arg8[%c0_63, %c0_64] : memref<1x32xf32, #tpu.memory_space<vmem>>, vector<1x32xf32>
    %104 = vector.broadcast %103 : vector<1x32xf32> to vector<16x32xf32>
    %105 = arith.addf %102, %104 : vector<16x32xf32>
    %c0_65 = arith.constant 0 : index
    %c0_66 = arith.constant 0 : index
    %106 = vector.load %arg9[%c0_65, %c0_66] : memref<1x32xf32, #tpu.memory_space<vmem>>, vector<1x32xf32>
    %107 = vector.broadcast %106 : vector<1x32xf32> to vector<16x32xf32>
    %108 = arith.mulf %105, %107 : vector<16x32xf32>
    %109 = vector.shape_cast %108 : vector<16x32xf32> to vector<8x2x32xf32>
    %cst_67 = arith.constant dense<0.000000e+00> : vector<8x2xf32>
    %110 = vector.multi_reduction <add>, %109, %cst_67 [2] : vector<8x2x32xf32> to vector<8x2xf32>
    %c0_68 = arith.constant 0 : index
    %c0_69 = arith.constant 0 : index
    %111 = vector.load %arg10[%c0_68, %c0_69] : memref<1x1xf32, #tpu.memory_space<vmem>>, vector<1x1xf32>
    %112 = vector.broadcast %111 : vector<1x1xf32> to vector<8x2xf32>
    %113 = arith.addf %110, %112 : vector<8x2xf32>
    %114 = tpu.transpose %113, [1, 0] : vector<8x2xf32> -> vector<2x8xf32>
    %c0_70 = arith.constant 0 : index
    %c0_71 = arith.constant 0 : index
    %115 = vector.load %arg11[%c0_70, %c0_71] : memref<2x8xf32, #tpu.memory_space<vmem>>, vector<2x8xf32>
    tpu.vector_store %arg11[%c0_70, %c0_71], %114 {strides = array<i32>} : memref<2x8xf32, #tpu.memory_space<vmem>>, vector<2x8xf32>,
    return
  }
  func.func @transform_0(%arg0: i32) -> (i32, i32) {
    %c0_i32 = arith.constant 0 : i32
    %c0_i32_0 = arith.constant 0 : i32
    return %arg0, %c0_i32 : i32, i32
  }
  func.func @transform_1(%arg0: i32) -> (i32, i32) {
    %c0_i32 = arith.constant 0 : i32
    %c0_i32_0 = arith.constant 0 : i32
    %c0_i32_1 = arith.constant 0 : i32
    return %c0_i32, %c0_i32_0 : i32, i32
  }
  func.func @transform_2(%arg0: i32) -> (i32, i32) {
    %c0_i32 = arith.constant 0 : i32
    %c0_i32_0 = arith.constant 0 : i32
    %c0_i32_1 = arith.constant 0 : i32
    return %c0_i32, %c0_i32_0 : i32, i32
  }
  func.func @transform_3(%arg0: i32) -> (i32, i32) {
    %c0_i32 = arith.constant 0 : i32
    %c0_i32_0 = arith.constant 0 : i32
    %c0_i32_1 = arith.constant 0 : i32
    return %c0_i32, %c0_i32_0 : i32, i32
  }
  func.func @transform_4(%arg0: i32) -> (i32, i32) {
    %c0_i32 = arith.constant 0 : i32
    %c0_i32_0 = arith.constant 0 : i32
    %c0_i32_1 = arith.constant 0 : i32
    return %c0_i32, %c0_i32_0 : i32, i32
  }
  func.func @transform_5(%arg0: i32) -> (i32, i32) {
    %c0_i32 = arith.constant 0 : i32
    %c0_i32_0 = arith.constant 0 : i32
    %c0_i32_1 = arith.constant 0 : i32
    return %c0_i32, %c0_i32_0 : i32, i32
  }
  func.func @transform_6(%arg0: i32) -> (i32, i32) {
    %c0_i32 = arith.constant 0 : i32
    %c0_i32_0 = arith.constant 0 : i32
    %c0_i32_1 = arith.constant 0 : i32
    return %c0_i32, %c0_i32_0 : i32, i32
  }
  func.func @transform_7(%arg0: i32) -> (i32, i32) {
    %c0_i32 = arith.constant 0 : i32
    %c0_i32_0 = arith.constant 0 : i32
    %c0_i32_1 = arith.constant 0 : i32
    return %c0_i32, %c0_i32_0 : i32, i32
  }
  func.func @transform_8(%arg0: i32) -> (i32, i32) {
    %c0_i32 = arith.constant 0 : i32
    %c0_i32_0 = arith.constant 0 : i32
    %c0_i32_1 = arith.constant 0 : i32
    return %c0_i32, %c0_i32_0 : i32, i32
  }
  func.func @transform_9(%arg0: i32) -> (i32, i32) {
    %c0_i32 = arith.constant 0 : i32
    %c0_i32_0 = arith.constant 0 : i32
    %c0_i32_1 = arith.constant 0 : i32
    return %c0_i32, %c0_i32_0 : i32, i32
  }
  func.func @transform_10(%arg0: i32) -> (i32, i32) {
    %c0_i32 = arith.constant 0 : i32
    %c0_i32_0 = arith.constant 0 : i32
    return %c0_i32, %arg0 : i32, i32
  }
  func.func @transform_11(%arg0: i32) -> (i32, i32) {
    %c0_i32 = arith.constant 0 : i32
    %c0_i32_0 = arith.constant 0 : i32
    %c0_i32_1 = arith.constant 0 : i32
    return %c0_i32, %c0_i32_0 : i32, i32
  }
  func.func @transform_12(%arg0: i32) -> (i32, i32) {
    %c0_i32 = arith.constant 0 : i32
    %c0_i32_0 = arith.constant 0 : i32
    %c0_i32_1 = arith.constant 0 : i32
    return %c0_i32, %c0_i32_0 : i32, i32
  }
}

</mosaic_0001>

<bundles_post_ra>
// kernel: tpu_custom_call.1
= control target key start
LH: loop header
LB: loop body
LE: loop exit
PB: predicated region body
PF: predicated region fallthrough
CT: control target
= control target key end

     0   :  { %s4877_s0 = inlined_call_operand.hbm [shape: f32[16,16], index: 0, kind: input, shape index: {}]   ;;  %s4878_s1 = inlined_call_operand.hbm [shape: f32[16,128], index: 1, kind: input, shape index: {}]   ;;  %s4879_s2 = inlined_call_operand.hbm [shape: f32[32,128], index: 2, kind: input, shape index: {}]   ;;  %s4880_s3 = inlined_call_operand.vmem [shape: f32[1,128], index: 3, kind: input, shape index: {}]   ;;  %s4881_s4 = inlined_call_operand.hbm [shape: f32[32,96], index: 4, kind: input, shape index: {}]   ;;  %s4882_s5 = inlined_call_operand.vmem [shape: f32[1,96], index: 5, kind: input, shape index: {}]   ;;  %s4883_s6 = inlined_call_operand.hbm [shape: f32[32,32], index: 6, kind: input, shape index: {}]   ;;  %s4884_s7 = inlined_call_operand.vmem [shape: f32[1,32], index: 7, kind: input, shape index: {}]   ;;  %s4885_s8 = inlined_call_operand.vmem [shape: f32[1,32], index: 8, kind: input, shape index: {}]   ;;  %s4886_s9 = inlined_call_operand.<no memory space> [shape: f32[1,1], index: 9, kind: input, shape index: {}]   ;;  %s4887_s10 = inlined_call_operand.hbm [shape: f32[2,8], index: 10, kind: output, shape index: {0}]   ;;  %s4888_s11 = inlined_call_operand.hbm [shape: f32[2,32], index: 11, kind: output, shape index: {1}]   ;;  %s4889_s12 = inlined_call_operand.hbm [shape: f32[2,32], index: 12, kind: output, shape index: {2}]  }
   0x1   :  { %v18_v0 = vstv %s4886_s9 }
   0x2   :  { %19 = vst [vmem:[#allocation7] sm:$0x1] %v18_v0 }
   0x3   :  { %20 = vsyncpa [#allocation9], 0 }
   0x4   :  { %21 = vsyncpa [#allocation12], 0 }
   0x5   :  { %22 = vsyncpa [#allocation15], 0 }
   0x6   :  { %23 = vsyncpa [#allocation10], 0 }
   0x7   :  { %24 = vsyncpa [#allocation19], 0  ;;  %s42_s25 = sshll.u32 %s4878_s1, 4  ;;  %s4008_s26 = smov [#allocation11]   ;;  %s43_s25 = int_to_ptr.hbm [resolvable:$true] %s42_s25 }
   0x8   :  { %s44_s27 = sshll.u32 %s4008_s26, 4  ;;  %s70_s30 = sshll.u32 %s4881_s4, 4  ;;  %s45_s27 = int_to_ptr.vmem [resolvable:$true] %s44_s27  ;;  %s71_s30 = int_to_ptr.hbm [resolvable:$true] %s70_s30 }
   0x9   :  { %s4009_s13 = smov 128   ;;  %s4010_s9 = smov 8  }
   0xa   :  { %50 = dma.hbm_to_vmem [thread:$0]  %s43_s25, 256, %s45_s27, [#allocation12], %s4009_s13, %s4009_s13, %s4010_s9  }
   0xb   :  { %s4011_s14 = smov [#allocation14]   ;;  %s29_s18 = sshll.u32 %s4877_s0, 4  ;;  %s30_s18 = int_to_ptr.hbm [resolvable:$true] %s29_s18 }
   0xc   :  { %s72_s15 = sshll.u32 %s4011_s14, 4  ;;  %s55_s20 = sshll.u32 %s4879_s2, 4  ;;  %s73_s15 = int_to_ptr.vmem [resolvable:$true] %s72_s15  ;;  %s56_s20 = int_to_ptr.hbm [resolvable:$true] %s55_s20 }
   0xd   :  { %78 = dma.hbm_to_vmem [thread:$0]  %s71_s30, 512, %s73_s15, [#allocation15], %s4009_s13, %s4009_s13, %s4010_s9  }
   0xe   :  { %s4012_s4 = smov [#allocation8]   ;;  %s4013_s22 = smov [#allocation13]  }
   0xf   :  { %s31_s21 = sshll.u32 %s4012_s4, 4  ;;  %s57_s23 = sshll.u32 %s4013_s22, 4  ;;  %s32_s21 = int_to_ptr.vmem [resolvable:$true] %s31_s21  ;;  %s58_s23 = int_to_ptr.vmem [resolvable:$true] %s57_s23 }
  0x10   :  { %37 = dma.hbm_to_vmem [thread:$0]  %s30_s18, 256, %s32_s21, [#allocation9], %s4009_s13, %s4009_s13, %s4010_s9  }
  0x11   :  { %s85_s0 = sshll.u32 %s4883_s6, 4  ;;  %s4014_s26 = smov [#allocation16]   ;;  %s86_s0 = int_to_ptr.hbm [resolvable:$true] %s85_s0 }
  0x12   :  { %63 = dma.hbm_to_vmem [thread:$0]  %s56_s20, 512, %s58_s23, [#allocation12], %s4009_s13, %s4009_s13, %s4010_s9  }
  0x13   :  { %s87_s27 = sshll.u32 %s4014_s26, 4  ;;  %s88_s27 = int_to_ptr.vmem [resolvable:$true] %s87_s27 }
  0x14   :  { %93 = dma.hbm_to_vmem [thread:$0]  %s86_s0, 512, %s88_s27, [#allocation15], %s4009_s13, %s4009_s13, %s4010_s9  }
  0x15   :  { %3986 = dma.done.wait [#allocation9], 256  }
  0x16   :  { %3987 = vsyncadd [#allocation9], 4294967040 }
  0x17   :  { %3988 = dma.done.wait [#allocation12], 768  }
  0x18   :  { %3989 = vsyncadd [#allocation12], 4294966528 }
  0x19   :  { %3990 = dma.done.wait [#allocation15], 1024  }
  0x1a   :  { %3991 = vsyncadd [#allocation15], 4294966272  ;;  %vm124_vm0 = vcmask 254976   ;;  %v4015_v1 = vmov 0.0   ;;  %v4126_v2 = vld [vmem:[#allocation13] sm:$0xff]  ;;  %v4128_v3 = vld [vmem:[#allocation13 + $0x8] sm:$0xff] }
  0x1b   :  { %125 = vst.msk [vmem:[#allocation2] sm:$0x3] %vm124_vm0, %v4015_v1  ;;  %v4130_v4 = vld [vmem:[#allocation13 + $0x10] sm:$0xff]  ;;  %v4132_v5 = vld [vmem:[#allocation13 + $0x18] sm:$0xff]  ;;  %v127_v10 = vld [vmem:[#allocation8] sm:$0xff]  ;;  %vm135_vm1 = vcmask 130048  }
  0x1c   :  { %126 = vst.msk [vmem:[#allocation3] sm:$0x3] %vm124_vm0, %v4015_v1  ;;  %v130_v7 = vld [vmem:[#allocation11 + $0x8] sm:$0xff]  ;;  %v129_v9 = vld [vmem:[#allocation11] sm:$0xff]  ;;  %v128_v11 = vld [vmem:[#allocation8 + $0x8] sm:$0xff] }
  0x1d   :  { %156 = vmatpush.msra.mxu0 %v130_v7  ;;  %3585 = vmatpush.msra.mxu1 %v130_v7  ;;  %v3639_v12 = vld [vmem:[%s4880_s3] ss:$0 sm:$0xff]  ;;  %s4141_s3 = smov 0  }
  0x1f   :  { %157 = vmatpush.msra.mxu0 %v129_v9  ;;  %3586 = vmatpush.msra.mxu1 %v129_v9 }
  0x20   :  { %3448 = vmatmul.msk.f32.vlgmr.msra.gmra.mxu0 %vm135_vm1, %v127_v10  ;;  %3449 = vmatmul.msk.f32.vlgmr.msra.gmra.mxu1 %vm135_vm1, %v128_v11 }
  0x22   :  { %v191_v6 = vld [vmem:[#allocation2] sm:$0x3]  }
  0x23   :  { %v192_v8 = vld [vmem:[#allocation3] sm:$0x3]  }
  0x9d   :  { %v159_v13 = vpop.f32.mrf.mxu0  ;;  %v162_v14 = vpop.f32.mrf.mxu1 }
  0x9e   :  { %v160_v15 = vadd.f32 %v3639_v12, %v159_v13  ;;  %v163_v16 = vadd.f32 %v3639_v12, %v162_v14 }
  0xa0   :  { %v167_v17 = vrot.slane %v160_v15, 2  ;;  %v168_v18 = vrot.slane %v160_v15, 4  ;;  %v169_v19 = vrot.slane %v160_v15, 6  ;;  %179 = vst [vmem:[#allocation4] sm:$0x3] %v160_v15  ;;  %v170_v20 = vrot.slane %v163_v16, 2 }
  0xa1   :  { %183 = vst [vmem:[#allocation4 + $0x8] sm:$0x3] %v163_v16  ;;  %v171_v21 = vrot.slane %v163_v16, 4  ;;  %v172_v22 = vrot.slane %v163_v16, 6 }
  0xa2   :  { %180 = vst [vmem:[#allocation4 + $0x2] sm:$0x3] %v167_v17 }
  0xa3   :  { %181 = vst [vmem:[#allocation4 + $0x4] sm:$0x3] %v168_v18 }
  0xa4   :  { %182 = vst [vmem:[#allocation4 + $0x6] sm:$0x3] %v169_v19 }
  0xa5   :  { %184 = vst [vmem:[#allocation4 + $0xa] sm:$0x3] %v170_v20 }
  0xa6   :  { %185 = vst [vmem:[#allocation4 + $0xc] sm:$0x3] %v171_v21 }
  0xa7   :  { %186 = vst [vmem:[#allocation4 + $0xe] sm:$0x3] %v172_v22 }
  0xa8 LB: > { %220 = vmatpush.msra.mxu0 %v4132_v5  ;;  %vm204_vm2 = vcmask 261120   ;;  %s3450_s28 = sshll.u32 %s4006_s3, 1  ;;  %s4016_s30 = smov 64   ;;  %s4006_s3 = sphi %s4141_s3, %s198_s3   ;;  %v4002_v6 = vphi %v191_v6, %v4891_v6   ;;  %v3998_v8 = vphi %v192_v8, %v4890_v8  }
  0xa9   : > { %s202_s29 = scalar_lea.vmem [#allocation4], %s3450_s28  ;;  %s4017_s13 = smov 32  }
  0xaa   : > { %221 = vmatpush.msra.mxu0 %v4130_v4  ;;  %s4018_s14 = smov 96   ;;  %s274_s15 = scalar_lea.vmem [#allocation5], %s3450_s28 }
  0xab   : > { %s198_s3 = sadd.s32 1, %s4006_s3  }
  0xac   : > { %222 = vmatpush.msra.mxu0 %v4128_v3  ;;  %p195_p0 = scmp.ge.s32.totalorder %s198_s3, 8  }
  0xad   :  { %v297_v51 = vld [vmem:[#allocation14 + $0x18] sm:$0xff] (%p195_p0)  ;;  %v296_v52 = vld [vmem:[#allocation14 + $0x10] sm:$0xff] (%p195_p0)  ;;  %v295_v54 = vld [vmem:[#allocation14 + $0x8] sm:$0xff] (%p195_p0)  ;;  %s4019_s18 = smov (%p195_p0), 96   ;;  %vm367_vm7 = vcmask (%p195_p0), 64512   ;;  %vm596_vm8 = vcmask (%p195_p0), 9216  }
  0xae   : > { %223 = vmatpush.msra.mxu0 %v4126_v2  ;;  %v203_v23 = vld [vmem:[%s202_s29] sm:$0x3]  ;;  %vm797_vm9 = vcmask (%p195_p0), 1041408   ;;  %vm793_vm14 = vcmask (%p195_p0), 15360   ;;  %s4021_s1 = smov (%p195_p0), 120   ;;  %s4022_s19 = smov (%p195_p0), 88  }
  0xaf   : > { %3451 = vmatmul.msk.f32.vlgmr.msra.gmra.mxu0 %vm204_vm2, %v4002_v6  ;;  %v294_v57 = vld [vmem:[#allocation14] sm:$0xff] (%p195_p0)  ;;  %s4023_s20 = smov (%p195_p0), 56   ;;  %s4024_s4 = smov (%p195_p0), 112  }
  0xb0   :  { %344 = vmatpush.msra.mxu0 (%p195_p0), %v297_v51  ;;  %v3650_v1 = vld [vmem:[%s4882_s5] ss:$0 sm:$0xff] (%p195_p0)  ;;  %s4020_s5 = smov (%p195_p0), 64   ;;  %s4025_s21 = smov (%p195_p0), 80  }
  0xb1   :  { %s4026_s22 = smov (%p195_p0), 48   ;;  %s4027_s23 = smov (%p195_p0), 104  }
  0xb2   :  { %345 = vmatpush.msra.mxu0 (%p195_p0), %v296_v52  ;;  %s4028_s24 = smov (%p195_p0), 72   ;;  %s4029_s25 = smov (%p195_p0), 40  }
  0xb3   :  { %s4030_s0 = smov (%p195_p0), 16   ;;  %s3401_s29 = sshll.u32 (%p195_p0), %s4888_s11, 4  ;;  %s3402_s29 = int_to_ptr.hbm [resolvable:$true] %s3401_s29 }
  0xb4   :  { %346 = vmatpush.msra.mxu0 (%p195_p0), %v295_v54  ;;  %s3412_s16 = sshll.u32 (%p195_p0), %s4889_s12, 4  ;;  %s4035_s17 = smov (%p195_p0), [#allocation17]   ;;  %s3413_s16 = int_to_ptr.hbm [resolvable:$true] %s3412_s16 }
  0xb5   :  { %s3390_s11 = sshll.u32 (%p195_p0), %s4887_s10, 4  ;;  %s3391_s11 = int_to_ptr.hbm [resolvable:$true] %s3390_s11 }
  0xb6   :  { %347 = vmatpush.msra.mxu0 (%p195_p0), %v294_v57 }
 0x12c   : > { %v225_v24 = vpop.f32.mrf.mxu0 }
 0x12d   : > { %v228_v25 = vadd.f32 %v225_v24, %v203_v23 }
 0x12f   : > { %3640 = vtanh.f32 %v228_v25  ;;  %v3452_v27 = vmul.f32 -1.442695, %v228_v25 }
 0x131   : > { %3642 = vpow2.f32 %v3452_v27 }
 0x135   : > { %v3641_v26 = vpop.eup %3640 }
 0x136   : > { %255 = vrot.lane.b32.xlu0 %v3641_v26, %s4016_s30 }
 0x137   : > { %v3643_v28 = vpop.eup %3642 }
 0x138   : > { %v232_v29 = vadd.f32 1.0, %v3643_v28 }
 0x13a   : > { %3644 = vrcp.f32 %v232_v29  ;;  %v244_v35 = vand.u32 2147483648, %v232_v29  ;;  %vm238_vm4 = vweird.f32 %v232_v29  ;;  %v242_v36 = vand.u32 2147483647, %v232_v29 }
 0x13c   : > { %v245_v38 = vor.u32 1.1754944e-38, %v244_v35  ;;  %vm243_vm6 = vcmp.eq.f32.partialorder %v242_v36, 8.507059e+37 }
 0x13e   : > { %250 = vrot.lane.b32.xlu0 %v3998_v8, %s4017_s13 }
 0x140   : > { %v3645_v30 = vpop.eup %3644 }
 0x141   : > { %v234_v31 = vmul.f32 %v3645_v30, %v232_v29  ;;  %vm239_vm3 = vweird.f32 %v3645_v30 }
 0x142   : > { %vm240_vm5 = vmor %vm238_vm4, %vm239_vm3 }
 0x143   : > { %v235_v32 = vsub.f32 1.0, %v234_v31 }
 0x145   : > { %v236_v33 = vmul.f32 %v3645_v30, %v235_v32 }
 0x147   : > { %v237_v34 = vadd.f32 %v3645_v30, %v236_v33 }
 0x149   : > { %v241_v37 = vsel %vm240_vm5, %v3645_v30, %v237_v34 }
 0x14a   : > { %v246_v40 = vsel %vm243_vm6, %v245_v38, %v241_v37 }
 0x1a8   : > { %v256_v39 = vpop.permute.xlu0 %255 }
 0x1a9   : > { %v258_v41 = vmul.f32 %v256_v39, %v246_v40 }
 0x1ab   : > { %260 = vrot.lane.b32.xlu1 %v258_v41, %s4017_s13 }
 0x1b0   : > { %v251_v42 = vpop.permute.xlu0 %250 }
 0x1b1   : > { %v253_v43 = vmul.f32 %v251_v42, %v246_v40 }
 0x21d   : > { %v261_v44 = vpop.permute.xlu1 %260 }
 0x21e   : > { %v263_v45 = vadd.f32 %v261_v44, %v253_v43 }
 0x220   : > { %3646 = vtanh.f32 %v263_v45 }
 0x226   : > { %v3647_v46 = vpop.eup %3646 }
 0x227   : > { %266 = vrot.lane.b32.xlu1 %v3647_v46, %s4016_s30  ;;  %s4034_s30 = smov (%p195_p0), [#allocation20]  }
 0x299   : > { %v267_v47 = vpop.permute.xlu1 %266 }
 0x29a   : > { %v269_v48 = vmul.f32 %v267_v47, %v246_v40 }
 0x29c   : > { %271 = vrot.lane.b32.xlu2 %v269_v48, %s4017_s13  ;;  %s3410_s13 = sshll.u32 (%p195_p0), %s4034_s30, 4  ;;  %s3411_s13 = int_to_ptr.vmem [resolvable:$true] %s3410_s13 }
 0x2a4   : > { %278 = vrot.lane.b32.xlu2 %v263_v45, %s4018_s14 }
 0x2f6   : > { %v272_v49 = vpop.permute.xlu2 %271  }
 0x2f7   : > { %276 = vst.msk [vmem:[%s274_s15] sm:$0x3] %vm124_vm0, %v272_v49  ;;  %v4891_v6 = vmov %v272_v49 }
 0x2f8   :  { %282 = vst.msk [vmem:[#allocation2] sm:$0x3] (%p195_p0), %vm124_vm0, %v272_v49 }
 0x2f9   :  { %284 = vst.msk [vmem:[#allocation18] sm:$0x3] (%p195_p0), %vm124_vm0, %v272_v49 }
 0x2fb   :  { %197 = sbr.rel (!%p195_p0) target bundleno = 168 (0xa8), region = 144 }
 0x2fe   : > { %v279_v50 = vpop.permute.xlu2 %278   ;;  %v286_v53 = vld [vmem:[#allocation5] sm:$0x3] (%p195_p0)  ;;  %v287_v55 = vld [vmem:[#allocation5 + $0x2] sm:$0x3] (%p195_p0)  ;;  %v288_v56 = vld [vmem:[#allocation5 + $0x4] sm:$0x3] (%p195_p0) }
 0x2ff   : > { %v4890_v8 = vmov %v279_v50  ;;  %283 = vst.msk [vmem:[#allocation3] sm:$0x3] (%p195_p0), %vm124_vm0, %v279_v50  ;;  %v289_v58 = vld [vmem:[#allocation5 + $0x6] sm:$0x3] (%p195_p0)  ;;  %v290_v59 = vld [vmem:[#allocation5 + $0x8] sm:$0x3] (%p195_p0) }
 0x300   :  { %310 = vst [vmem:[#allocation1] ss:$4 sm:$0xff] %v286_v53  ;;  %v291_v60 = vld [vmem:[#allocation5 + $0xa] sm:$0x3]  ;;  %v292_v61 = vld [vmem:[#allocation5 + $0xc] sm:$0x3] }
 0x301   :  { %312 = vst [vmem:[#allocation1 + $0x1] ss:$4 sm:$0xff] %v287_v55  ;;  %v293_v62 = vld [vmem:[#allocation5 + $0xe] sm:$0x3] }
 0x302   :  { %314 = vst [vmem:[#allocation1 + $0x2] ss:$4 sm:$0xff] %v288_v56 }
 0x303   :  { %316 = vst [vmem:[#allocation1 + $0x3] ss:$4 sm:$0xff] %v289_v58 }
 0x304   :  { %318 = vst [vmem:[#allocation1 + $0x20] ss:$4 sm:$0xff] %v290_v59 }
 0x305   :  { %320 = vst [vmem:[#allocation1 + $0x21] ss:$4 sm:$0xff] %v291_v60 }
 0x306   :  { %322 = vst [vmem:[#allocation1 + $0x22] ss:$4 sm:$0xff] %v292_v61 }
 0x307   :  { %324 = vst [vmem:[#allocation1 + $0x23] ss:$4 sm:$0xff] %v293_v62 }
 0x308   :  { %285 = vst.msk [vmem:[#allocation20] sm:$0x3] %vm124_vm0, %v279_v50 }
 0x30a   :  { %v325_v63 = vld.sshfl [vmem:[#allocation1] sm:$0xff pattern:$0x73625140] }
 0x30b   :  { %3453 = vmatmul.msk.f32.vlgmr.msra.gmra.mxu0 %vm204_vm2, %v325_v63 }
 0x30e   :  { %v326_v0 = vld.sshfl [vmem:[#allocation1 + $0x20] sm:$0xff pattern:$0x73625140] }
 0x313   :  { %3454 = vmatmul.msk.f32.gmra.mxu0 %vm204_vm2, %v326_v0 }
 0x388   :  { %v349_v2 = vpop.f32.mrf.mxu0 }
 0x389   :  { %v4180_v3 = vadd.f32 %v3650_v1, %v349_v2 }
 0x38b   :  { %363 = vst [vmem:[#allocation1] ss:$4 sm:$0xff] %v4180_v3  ;;  %v4184_v4 = vrot.slane %v4180_v3, 2  ;;  %v4189_v6 = vrot.slane %v4180_v3, 4  ;;  %v4194_v8 = vrot.slane %v4180_v3, 6 }
 0x390   :  { %v352_v10 = vpop.f32.mrf.mxu0 }
 0x391   :  { %v4197_v11 = vadd.f32 %v3650_v1, %v352_v10 }
 0x392   :  { %v364_v5 = vld.sshfl [vmem:[#allocation1] sm:$0xff pattern:$0x73625140] }
 0x393   :  { %392 = vst [vmem:[#allocation1] ss:$4 sm:$0xff] %v4184_v4  ;;  %365 = vrot.lane.b32.xlu0 %v364_v5, %s4019_s18  ;;  %v4202_v13 = vrot.slane %v4197_v11, 2  ;;  %v4207_v15 = vrot.slane %v4197_v11, 4  ;;  %v4211_v17 = vrot.slane %v4197_v11, 6 }
 0x39a   :  { %v393_v7 = vld.sshfl [vmem:[#allocation1] sm:$0xff pattern:$0x73625140] }
 0x39b   :  { %420 = vst [vmem:[#allocation1] ss:$4 sm:$0xff] %v4189_v6  ;;  %394 = vrot.lane.b32.xlu0 %v393_v7, %s4019_s18 }
 0x3a2   :  { %v421_v9 = vld.sshfl [vmem:[#allocation1] sm:$0xff pattern:$0x73625140] }
 0x3a3   :  { %448 = vst [vmem:[#allocation1] ss:$4 sm:$0xff] %v4194_v8 }
 0x3aa   :  { %v449_v12 = vld.sshfl [vmem:[#allocation1] sm:$0xff pattern:$0x73625140] }
 0x3ab   :  { %476 = vst [vmem:[#allocation1] ss:$4 sm:$0xff] %v4197_v11  ;;  %450 = vrot.lane.b32.xlu1 %v449_v12, %s4019_s18 }
 0x3b2   :  { %v477_v14 = vld.sshfl [vmem:[#allocation1] sm:$0xff pattern:$0x73625140] }
 0x3b3   :  { %504 = vst [vmem:[#allocation1] ss:$4 sm:$0xff] %v4202_v13  ;;  %422 = vrot.lane.b32.xlu1 %v421_v9, %s4019_s18 }
 0x3ba   :  { %v505_v16 = vld.sshfl [vmem:[#allocation1] sm:$0xff pattern:$0x73625140] }
 0x3bb   :  { %532 = vst [vmem:[#allocation1] ss:$4 sm:$0xff] %v4207_v15 }
 0x3c2   :  { %v533_v18 = vld.sshfl [vmem:[#allocation1] sm:$0xff pattern:$0x73625140] }
 0x3c3   :  { %560 = vst [vmem:[#allocation1] ss:$4 sm:$0xff] %v4211_v17 }
 0x3ca   :  { %v561_v19 = vld.sshfl [vmem:[#allocation1] sm:$0xff pattern:$0x73625140] }
 0x3cb   :  { %789 = vst [vmem:[#allocation1] ss:$4 sm:$0xff] %v4180_v3 }
 0x3d2   :  { %v790_v20 = vld.sshfl [vmem:[#allocation1] sm:$0xff pattern:$0x73625140] }
 0x3d3   :  { %820 = vst [vmem:[#allocation1] ss:$4 sm:$0xff] %v4184_v4 }
 0x3da   :  { %v4216_v21 = vld.sshfl [vmem:[#allocation1] sm:$0xff pattern:$0x73625140] }
 0x3db   :  { %849 = vst [vmem:[#allocation1] ss:$4 sm:$0xff] %v4189_v6 }
 0x3e2   :  { %v4219_v22 = vld.sshfl [vmem:[#allocation1] sm:$0xff pattern:$0x73625140] }
 0x3e3   :  { %878 = vst [vmem:[#allocation1] ss:$4 sm:$0xff] %v4194_v8 }
 0x3ea   :  { %v879_v23 = vld.sshfl [vmem:[#allocation1] sm:$0xff pattern:$0x73625140] }
 0x3eb   :  { %907 = vst [vmem:[#allocation1] ss:$4 sm:$0xff] %v4197_v11 }
 0x3f2   :  { %v4223_v24 = vld.sshfl [vmem:[#allocation1] sm:$0xff pattern:$0x73625140] }
 0x3f3   :  { %936 = vst [vmem:[#allocation1] ss:$4 sm:$0xff] %v4202_v13 }
 0x3fa   :  { %v4226_v25 = vld.sshfl [vmem:[#allocation1] sm:$0xff pattern:$0x73625140] }
 0x3fb   :  { %965 = vst [vmem:[#allocation1] ss:$4 sm:$0xff] %v4207_v15 }
 0x402   :  { %v4229_v26 = vld.sshfl [vmem:[#allocation1] sm:$0xff pattern:$0x73625140] }
 0x403   :  { %994 = vst [vmem:[#allocation1] ss:$4 sm:$0xff] %v4211_v17 }
 0x405   :  { %v366_v27 = vpop.permute.xlu0 %365 }
 0x406   :  { %3455 = vmatpush.xpose.msk.msra.mxu1 %vm367_vm7, %v366_v27 }
 0x409   :  { %3456 = vmatmul.msk.f32.vlgmr.msra.gmra.mxu1 %vm367_vm7, %v4180_v3 }
 0x40d   :  { %v395_v28 = vpop.permute.xlu0 %394 }
 0x40e   :  { %3457 = vmatpush.xpose.msk.msra.mxu2 %vm367_vm7, %v395_v28 }
 0x411   :  { %3458 = vmatmul.msk.f32.vlgmr.msra.gmra.mxu2 %vm367_vm7, %v4184_v4 }
 0x41d   :  { %v451_v29 = vpop.permute.xlu1 %450 }
 0x41e   :  { %3461 = vmatpush.xpose.msk.msrb.mxu1 %vm367_vm7, %v451_v29 }
 0x421   :  { %3462 = vmatmul.msk.f32.vlgmr.msrb.gmra.mxu1 %vm367_vm7, %v4194_v8 }
 0x425   :  { %v423_v30 = vpop.permute.xlu1 %422 }
 0x426   :  { %3459 = vmatpush.xpose.msk.msrb.mxu0 %vm367_vm7, %v423_v30 }
 0x429   :  { %3460 = vmatmul.msk.f32.vlgmr.msrb.gmra.mxu0 %vm367_vm7, %v4189_v6 }
 0x486   :  { %v389_v31 = vpop.f32.mrf.mxu1 }
 0x487   :  { %v588_v32 = vmul.f32 0.35355338, %v389_v31 }
 0x489   :  { %v597_v33 = vsel %vm596_vm8, %v588_v32, -inf }
 0x48a   :  { %598 = vmax.xlane.f32.xlu2 %v597_v33 }
 0x494   :  { %v417_v34 = vpop.f32.mrf.mxu2 }
 0x495   :  { %v589_v35 = vmul.f32 0.35355338, %v417_v34 }
 0x497   :  { %v600_v36 = vsel %vm596_vm8, %v589_v35, -inf }
 0x498   :  { %601 = vmax.xlane.f32.xlu0 %v600_v36 }
 0x49e   :  { %v473_v37 = vpop.f32.mrf.mxu1 }
 0x49f   :  { %v591_v38 = vmul.f32 0.35355338, %v473_v37 }
 0x4a1   :  { %v606_v39 = vsel %vm596_vm8, %v591_v38, -inf }
 0x4a2   :  { %607 = vmax.xlane.f32.xlu2 %v606_v39 }
 0x4a6   :  { %v445_v40 = vpop.f32.mrf.mxu0 }
 0x4a7   :  { %v590_v41 = vmul.f32 0.35355338, %v445_v40 }
 0x4a9   :  { %v603_v42 = vsel %vm596_vm8, %v590_v41, -inf }
 0x4aa   :  { %604 = vmax.xlane.f32.xlu1 %v603_v42 }
 0x4ac   :  { %562 = vrot.lane.b32.xlu0 %v561_v19, %s4019_s18 }
 0x4b4   :  { %791 = vrot.lane.b32.xlu0 %v790_v20, %s4020_s5 }
 0x4ba   :  { %478 = vrot.lane.b32.xlu2 %v477_v14, %s4019_s18 }
 0x4c3   :  { %506 = vrot.lane.b32.xlu1 %v505_v16, %s4019_s18 }
 0x4cb   :  { %534 = vrot.lane.b32.xlu1 %v533_v18, %s4019_s18  ;;  %s3388_s18 = sshll.u32 %s4035_s17, 4  ;;  %s3389_s18 = int_to_ptr.vmem [resolvable:$true] %s3388_s18 }
 0x4d3   :  { %880 = vrot.lane.b32.xlu1 %v879_v23, %s4020_s5 }
 0x4fd   :  { %v599_v43 = vpop.xlane.xlu2 %598 }
 0x4fe   :  { %v621_v44 = vsub.f32 %v588_v32, %v599_v43 }
 0x500   :  { %v629_v45 = vmul.f32 1.442695, %v621_v44 }
 0x502   :  { %3654 = vpow2.f32 %v629_v45 }
 0x508   :  { %v3655_v46 = vpop.eup %3654 }
 0x509   :  { %v645_v47 = vsel %vm596_vm8, %v3655_v46, 0.0 }
 0x50a   :  { %646 = vadd.xlane.f32.xlu2 %v645_v47 }
 0x50b   :  { %v602_v48 = vpop.xlane.xlu0 %601 }
 0x50c   :  { %v622_v49 = vsub.f32 %v589_v35, %v602_v48 }
 0x50e   :  { %v631_v50 = vmul.f32 1.442695, %v622_v49 }
 0x510   :  { %3656 = vpow2.f32 %v631_v50 }
 0x515   :  { %v608_v51 = vpop.xlane.xlu2 %607 }
 0x516   :  { %v4255_v52 = vpop.eup %3656  ;;  %v624_v53 = vsub.f32 %v591_v38, %v608_v51 }
 0x517   :  { %v648_v54 = vsel %vm596_vm8, %v4255_v52, 0.0 }
 0x518   :  { %v635_v55 = vmul.f32 1.442695, %v624_v53  ;;  %649 = vadd.xlane.f32.xlu2 %v648_v54 }
 0x51a   :  { %3658 = vpow2.f32 %v635_v55 }
 0x51d   :  { %v605_v56 = vpop.xlane.xlu1 %604  ;;  %v479_v57 = vpop.permute.xlu2 %478 }
 0x51e   :  { %v623_v58 = vsub.f32 %v590_v41, %v605_v56  ;;  %3463 = vmatpush.xpose.msk.msrb.mxu2 %vm367_vm7, %v479_v57  ;;  %v563_v59 = vpop.permute.xlu0 %562 }
 0x520   :  { %v4261_v60 = vpop.eup %3658  ;;  %v633_v61 = vmul.f32 1.442695, %v623_v58 }
 0x521   :  { %3464 = vmatmul.msk.f32.vlgmr.msrb.gmra.mxu2 %vm367_vm7, %v4197_v11  ;;  %v654_v62 = vsel %vm596_vm8, %v4261_v60, 0.0 }
 0x522   :  { %3469 = vmatpush.xpose.msk.msra.mxu2 %vm367_vm7, %v563_v59  ;;  %3660 = vpow2.f32 %v633_v61  ;;  %655 = vadd.xlane.f32.xlu2 %v654_v62 }
 0x526   :  { %v792_v2 = vpop.permute.xlu0 %791 }
 0x528   :  { %v4267_v63 = vpop.eup %3660 }
 0x529   :  { %3470 = vmatmul.msk.f32.vlgmr.msra.gmra.mxu2 %vm367_vm7, %v4211_v17  ;;  %v651_v0 = vsel %vm596_vm8, %v4267_v63, 0.0 }
 0x52a   :  { %652 = vadd.xlane.f32.xlu0 %v651_v0 }
 0x535   :  { %v507_v1 = vpop.permute.xlu1 %506 }
 0x536   :  { %3465 = vmatpush.xpose.msk.msra.mxu3 %vm367_vm7, %v507_v1 }
 0x539   :  { %3466 = vmatmul.msk.f32.vlgmr.msra.gmra.mxu3 %vm367_vm7, %v4202_v13 }
 0x53a   :  { %3471 = vmatpush.msk.msrb.mxu3 %vm797_vm9, %v792_v2  ;;  %851 = vrot.lane.b32.xlu2 %v4219_v22, %s4020_s5 }
 0x53d   :  { %v535_v5 = vpop.permute.xlu1 %534 }
 0x53e   :  { %3467 = vmatpush.xpose.msk.msra.mxu1 %vm367_vm7, %v535_v5  ;;  %822 = vrot.lane.b32.xlu0 %v4216_v21, %s4020_s5 }
 0x541   :  { %3468 = vmatmul.msk.f32.vlgmr.msra.gmra.mxu1 %vm367_vm7, %v4207_v15 }
 0x545   :  { %v881_v7 = vpop.permute.xlu1 %880 }
 0x546   :  { %3477 = vmatpush.msk.msrb.mxu2 %vm797_vm9, %v881_v7 }
 0x57d   :  { %v647_v9 = vpop.xlane.xlu2 %646 }
 0x57e   :  { %3662 = vrcp.f32 %v647_v9  ;;  %v680_v16 = vand.u32 2147483648, %v647_v9  ;;  %v678_v19 = vand.u32 2147483647, %v647_v9  ;;  %vm674_vm11 = vweird.f32 %v647_v9 }
 0x580   :  { %v681_v22 = vor.u32 1.1754944e-38, %v680_v16  ;;  %vm679_vm13 = vcmp.eq.f32.partialorder %v678_v19, 8.507059e+37 }
 0x584   :  { %v3663_v10 = vpop.eup %3662 }
 0x585   :  { %v670_v12 = vmul.f32 %v3663_v10, %v647_v9  ;;  %vm675_vm10 = vweird.f32 %v3663_v10 }
 0x586   :  { %vm676_vm12 = vmor %vm674_vm11, %vm675_vm10 }
 0x587   :  { %v671_v14 = vsub.f32 1.0, %v670_v12 }
 0x589   :  { %v672_v18 = vmul.f32 %v3663_v10, %v671_v14 }
 0x58b   :  { %v673_v20 = vadd.f32 %v3663_v10, %v672_v18  ;;  %v650_v21 = vpop.xlane.xlu2 %649 }
 0x58c   :  { %3664 = vrcp.f32 %v650_v21  ;;  %v695_v51 = vand.u32 2147483648, %v650_v21  ;;  %vm689_vm6 = vweird.f32 %v650_v21  ;;  %v693_v56 = vand.u32 2147483647, %v650_v21 }
 0x58d   :  { %v677_v23 = vsel %vm676_vm12, %v3663_v10, %v673_v20 }
 0x58e   :  { %v682_v27 = vsel %vm679_vm13, %v681_v22, %v677_v23  ;;  %v696_v0 = vor.u32 1.1754944e-38, %v695_v51  ;;  %vm694_vm13 = vcmp.eq.f32.partialorder %v693_v56, 8.507059e+37 }
 0x58f   :  { %v683_v28 = vmul.f32 %v3655_v46, %v682_v27 }
 0x591   :  { %3472 = vmatmul.msk.f32.vlgmr.msrb.gmra.mxu3 %vm793_vm14, %v683_v28 }
 0x592   :  { %v3665_v30 = vpop.eup %3664 }
 0x593   :  { %v685_v31 = vmul.f32 %v3665_v30, %v650_v21  ;;  %vm690_vm5 = vweird.f32 %v3665_v30 }
 0x594   :  { %vm4289_vm10 = vmor %vm689_vm6, %vm690_vm5 }
 0x595   :  { %v656_v29 = vpop.xlane.xlu2 %655  ;;  %v686_v36 = vsub.f32 1.0, %v685_v31 }
 0x596   :  { %3666 = vrcp.f32 %v656_v29  ;;  %v725_v38 = vand.u32 2147483648, %v656_v29  ;;  %v723_v40 = vand.u32 2147483647, %v656_v29  ;;  %vm719_vm1 = vweird.f32 %v656_v29 }
 0x597   :  { %v687_v41 = vmul.f32 %v3665_v30, %v686_v36 }
 0x598   :  { %v726_v44 = vor.u32 1.1754944e-38, %v725_v38  ;;  %vm724_vm4 = vcmp.eq.f32.partialorder %v723_v40, 8.507059e+37 }
 0x599   :  { %v688_v49 = vadd.f32 %v3665_v30, %v687_v41 }
 0x59b   :  { %v692_v62 = vsel %vm4289_vm10, %v3665_v30, %v688_v49 }
 0x59c   :  { %v3667_v32 = vpop.eup %3666  ;;  %v697_v9 = vsel %vm694_vm13, %v696_v0, %v692_v62 }
 0x59d   :  { %v715_v33 = vmul.f32 %v3667_v32, %v656_v29  ;;  %v653_v34 = vpop.xlane.xlu0 %652  ;;  %v852_v35 = vpop.permute.xlu2 %851  ;;  %vm720_vm15 = vweird.f32 %v3667_v32  ;;  %v698_v18 = vmul.f32 %v4255_v52, %v697_v9  ;;  %v995_v52 = vld.sshfl [vmem:[#allocation1] sm:$0xff pattern:$0x73625140] }
 0x59e   :  { %3668 = vrcp.f32 %v653_v34  ;;  %3475 = vmatpush.msk.msrb.mxu1 %vm797_vm9, %v852_v35  ;;  %vm721_vm3 = vmor %vm719_vm1, %vm720_vm15  ;;  %v710_v57 = vand.u32 2147483648, %v653_v34  ;;  %v708_v61 = vand.u32 2147483647, %v653_v34  ;;  %vm704_vm12 = vweird.f32 %v653_v34 }
 0x59f   :  { %v716_v37 = vsub.f32 1.0, %v715_v33 }
 0x5a0   :  { %vm709_vm1 = vcmp.eq.f32.partialorder %v708_v61, 8.507059e+37 }
 0x5a1   :  { %v717_v39 = vmul.f32 %v3667_v32, %v716_v37 }
 0x5a3   :  { %v718_v42 = vadd.f32 %v3667_v32, %v717_v39 }
 0x5a4   :  { %v3669_v43 = vpop.eup %3668  ;;  %v501_v45 = vpop.f32.mrf.mxu2 }
 0x5a5   :  { %v722_v46 = vsel %vm721_vm3, %v3667_v32, %v718_v42  ;;  %v700_v47 = vmul.f32 %v3669_v43, %v653_v34  ;;  %v592_v48 = vmul.f32 0.35355338, %v501_v45  ;;  %vm705_vm11 = vweird.f32 %v3669_v43 }
 0x5a6   :  { %v727_v50 = vsel %vm724_vm4, %v726_v44, %v722_v46  ;;  %vm706_vm15 = vmor %vm704_vm12, %vm705_vm11 }
 0x5a7   :  { %v701_v53 = vsub.f32 1.0, %v700_v47  ;;  %v609_v54 = vsel %vm596_vm8, %v592_v48, -inf  ;;  %v728_v55 = vmul.f32 %v4261_v60, %v727_v50  ;;  %v711_v60 = vor.u32 1.1754944e-38, %v710_v57 }
 0x5a8   :  { %610 = vmax.xlane.f32.xlu1 %v609_v54 }
 0x5a9   :  { %v702_v59 = vmul.f32 %v3669_v43, %v701_v53  ;;  %3478 = vmatmul.msk.f32.vlgmr.msrb.gmra.mxu2 %vm793_vm14, %v728_v55 }
 0x5ab   :  { %v703_v1 = vadd.f32 %v3669_v43, %v702_v59 }
 0x5ac   :  { %v585_v2 = vpop.f32.mrf.mxu2 }
 0x5ad   :  { %v707_v5 = vsel %vm706_vm15, %v3669_v43, %v703_v1  ;;  %v595_v7 = vmul.f32 0.35355338, %v585_v2 }
 0x5ae   :  { %v712_v10 = vsel %vm709_vm1, %v711_v60, %v707_v5 }
 0x5af   :  { %v618_v12 = vsel %vm596_vm8, %v595_v7, -inf  ;;  %v713_v14 = vmul.f32 %v4267_v63, %v712_v10 }
 0x5b0   :  { %619 = vmax.xlane.f32.xlu0 %v618_v12  ;;  %v823_v16 = vpop.permute.xlu0 %822 }
 0x5b1   :  { %3473 = vmatpush.msk.msra.mxu0 %vm797_vm9, %v823_v16  ;;  %3476 = vmatmul.msk.f32.vlgmr.msrb.gmra.mxu1 %vm793_vm14, %v713_v14 }
 0x5b2   :  { %3474 = vmatmul.msk.f32.vlgmr.msra.gmra.mxu0 %vm793_vm14, %v698_v18 }
 0x5bc   :  { %v529_v19 = vpop.f32.mrf.mxu3 }
 0x5bd   :  { %v593_v20 = vmul.f32 0.35355338, %v529_v19 }
 0x5be   :  { %v557_v22 = vpop.f32.mrf.mxu1 }
 0x5bf   :  { %v594_v21 = vmul.f32 0.35355338, %v557_v22  ;;  %v612_v23 = vsel %vm596_vm8, %v593_v20, -inf }
 0x5c0   :  { %613 = vmax.xlane.f32.xlu2 %v612_v23 }
 0x5c1   :  { %v615_v27 = vsel %vm596_vm8, %v594_v21, -inf }
 0x5c2   :  { %616 = vmax.xlane.f32.xlu1 %v615_v27 }
 0x5c4   :  { %909 = vrot.lane.b32.xlu0 %v4223_v24, %s4020_s5 }
 0x5d8   :  { %996 = vrot.lane.b32.xlu2 %v995_v52, %s4020_s5 }
 0x614   :  { %v817_v63 = vpop.f32.mrf.mxu3 }
 0x615   :  { %1031 = vst [vmem:[#allocation1] ss:$4 sm:$0xff] %v817_v63 }
 0x61b   :  { %v611_v28 = vpop.xlane.xlu1 %610 }
 0x61c   :  { %v625_v29 = vsub.f32 %v592_v48, %v611_v28 }
 0x61e   :  { %v637_v30 = vmul.f32 1.442695, %v625_v29 }
 0x620   :  { %3670 = vpow2.f32 %v637_v30 }
 0x623   :  { %v620_v34 = vpop.xlane.xlu0 %619 }
 0x624   :  { %v628_v43 = vsub.f32 %v595_v7, %v620_v34 }
 0x626   :  { %v4307_v31 = vpop.eup %3670  ;;  %v643_v46 = vmul.f32 1.442695, %v628_v43 }
 0x627   :  { %v657_v32 = vsel %vm596_vm8, %v4307_v31, 0.0 }
 0x628   :  { %658 = vadd.xlane.f32.xlu0 %v657_v32 }
 0x62c   :  { %v904_v33 = vpop.f32.mrf.mxu2 }
 0x62d   :  { %1037 = vst [vmem:[#allocation1 + $0x3] ss:$4 sm:$0xff] %v904_v33 }
 0x62e   :  { %v875_v35 = vpop.f32.mrf.mxu1 }
 0x62f   :  { %1035 = vst [vmem:[#allocation1 + $0x2] ss:$4 sm:$0xff] %v875_v35  ;;  %v846_v24 = vpop.f32.mrf.mxu0 }
 0x630   :  { %1033 = vst [vmem:[#allocation1 + $0x1] ss:$4 sm:$0xff] %v846_v24 }
 0x633   :  { %v614_v36 = vpop.xlane.xlu2 %613 }
 0x634   :  { %v626_v37 = vsub.f32 %v593_v20, %v614_v36 }
 0x635   :  { %v617_v38 = vpop.xlane.xlu1 %616 }
 0x636   :  { %v639_v39 = vmul.f32 1.442695, %v626_v37  ;;  %v627_v40 = vsub.f32 %v594_v21, %v617_v38  ;;  %v910_v41 = vpop.permute.xlu0 %909 }
 0x637   :  { %v1046_v42 = vld.sshfl [vmem:[#allocation1] sm:$0xff pattern:$0x73625140]  ;;  %3479 = vmatpush.msk.msra.mxu3 %vm797_vm9, %v910_v41 }
 0x638   :  { %1052 = vst [vmem:[#allocation1] ss:$4 sm:$0xff] %v4180_v3  ;;  %3672 = vpow2.f32 %v639_v39  ;;  %v641_v44 = vmul.f32 1.442695, %v627_v40 }
 0x639   :  { %1050 = vst.msk [vmem:[#allocation6] sm:$0xff] %vm367_vm7, %v1046_v42 }
 0x63a   :  { %3674 = vpow2.f32 %v641_v44 }
 0x63b   :  { %v997_v45 = vpop.permute.xlu2 %996  ;;  %3676 = vpow2.f32 %v643_v46 }
 0x63c   :  { %3485 = vmatpush.msk.msra.mxu2 %vm797_vm9, %v997_v45 }
 0x63e   :  { %v4315_v47 = vpop.eup %3672 }
 0x63f   :  { %v1053_v48 = vld.sshfl [vmem:[#allocation1] sm:$0xff pattern:$0x73625140]  ;;  %v660_v49 = vsel %vm596_vm8, %v4315_v47, 0.0 }
 0x640   :  { %v4319_v50 = vpop.eup %3674  ;;  %1056 = vst [vmem:[#allocation1] ss:$4 sm:$0xff] %v4180_v3  ;;  %661 = vadd.xlane.f32.xlu0 %v660_v49  ;;  %1054 = vrot.lane.b32.xlu2 %v1053_v48, %s4021_s1 }
 0x641   :  { %v663_v51 = vsel %vm596_vm8, %v4319_v50, 0.0  ;;  %v4325_v53 = vpop.eup %3676 }
 0x642   :  { %664 = vadd.xlane.f32.xlu1 %v663_v51  ;;  %v666_v55 = vsel %vm596_vm8, %v4325_v53, 0.0 }
 0x647   :  { %v1057_v54 = vld.sshfl [vmem:[#allocation1] sm:$0xff pattern:$0x73625140] }
 0x648   :  { %1084 = vst [vmem:[#allocation1] ss:$4 sm:$0xff] %v4184_v4  ;;  %967 = vrot.lane.b32.xlu2 %v4229_v26, %s4020_s5 }
 0x64a   :  { %667 = vadd.xlane.f32.xlu1 %v666_v55 }
 0x64f   :  { %v1085_v56 = vld.sshfl [vmem:[#allocation1] sm:$0xff pattern:$0x73625140] }
 0x650   :  { %1088 = vst [vmem:[#allocation1] ss:$4 sm:$0xff] %v4184_v4  ;;  %1086 = vrot.lane.b32.xlu2 %v1085_v56, %s4021_s1 }
 0x657   :  { %v1089_v57 = vld.sshfl [vmem:[#allocation1] sm:$0xff pattern:$0x73625140] }
 0x658   :  { %1116 = vst [vmem:[#allocation1] ss:$4 sm:$0xff] %v4189_v6 }
 0x65f   :  { %v1117_v58 = vld.sshfl [vmem:[#allocation1] sm:$0xff pattern:$0x73625140] }
 0x660   :  { %1120 = vst [vmem:[#allocation1] ss:$4 sm:$0xff] %v4189_v6 }
 0x663   :  { %1058 = vrot.lane.b32.xlu1 %v1057_v54, %s4022_s19 }
 0x667   :  { %v1121_v59 = vld.sshfl [vmem:[#allocation1] sm:$0xff pattern:$0x73625140] }
 0x668   :  { %1148 = vst [vmem:[#allocation1] ss:$4 sm:$0xff] %v4194_v8 }
 0x66b   :  { %938 = vrot.lane.b32.xlu1 %v4226_v25, %s4020_s5 }
 0x66f   :  { %v1149_v26 = vld.sshfl [vmem:[#allocation1] sm:$0xff pattern:$0x73625140] }
 0x670   :  { %1152 = vst [vmem:[#allocation1] ss:$4 sm:$0xff] %v4194_v8  ;;  %1150 = vrot.lane.b32.xlu0 %v1149_v26, %s4021_s1 }
 0x673   :  { %1122 = vrot.lane.b32.xlu1 %v1121_v59, %s4022_s19 }
 0x677   :  { %v1153_v61 = vld.sshfl [vmem:[#allocation1] sm:$0xff pattern:$0x73625140] }
 0x678   :  { %1180 = vst [vmem:[#allocation1] ss:$4 sm:$0xff] %v4197_v11  ;;  %1154 = vrot.lane.b32.xlu0 %v1153_v61, %s4022_s19 }
 0x67f   :  { %v1181_v62 = vld.sshfl [vmem:[#allocation1] sm:$0xff pattern:$0x73625140] }
 0x680   :  { %1184 = vst [vmem:[#allocation1] ss:$4 sm:$0xff] %v4197_v11  ;;  %1090 = vrot.lane.b32.xlu0 %v1089_v57, %s4022_s19  ;;  %1182 = vrot.lane.b32.xlu2 %v1181_v62, %s4021_s1 }
 0x687   :  { %v1185_v25 = vld.sshfl [vmem:[#allocation1] sm:$0xff pattern:$0x73625140] }
 0x688   :  { %1212 = vst [vmem:[#allocation1] ss:$4 sm:$0xff] %v4202_v13  ;;  %1118 = vrot.lane.b32.xlu0 %v1117_v58, %s4021_s1 }
 0x68f   :  { %v4350_v0 = vld.sshfl [vmem:[#allocation1] sm:$0xff pattern:$0x73625140] }
 0x690   :  { %1216 = vst [vmem:[#allocation1] ss:$4 sm:$0xff] %v4202_v13  ;;  %1186 = vrot.lane.b32.xlu0 %v1185_v25, %s4022_s19 }
 0x697   :  { %v1217_v1 = vld.sshfl [vmem:[#allocation1] sm:$0xff pattern:$0x73625140] }
 0x698   :  { %1244 = vst [vmem:[#allocation1] ss:$4 sm:$0xff] %v4207_v15  ;;  %1218 = vrot.lane.b32.xlu1 %v1217_v1, %s4022_s19 }
 0x69a   :  { %v4356_v60 = vpop.permute.xlu2 %1054 }
 0x69b   :  { %v659_v2 = vpop.xlane.xlu0 %658 }
 0x69c   :  { %3678 = vrcp.f32 %v659_v2  ;;  %v740_v14 = vand.u32 2147483648, %v659_v2  ;;  %v738_v19 = vand.u32 2147483647, %v659_v2  ;;  %vm734_vm4 = vweird.f32 %v659_v2 }
 0x69e   :  { %v741_v22 = vor.u32 1.1754944e-38, %v740_v14  ;;  %vm739_vm6 = vcmp.eq.f32.partialorder %v738_v19, 8.507059e+37 }
 0x69f   :  { %v4358_v5 = vld.sshfl [vmem:[#allocation1] sm:$0xff pattern:$0x73625140] }
 0x6a0   :  { %1248 = vst [vmem:[#allocation1] ss:$4 sm:$0xff] %v4207_v15 }
 0x6a2   :  { %v3679_v7 = vpop.eup %3678  ;;  %v968_v9 = vpop.permute.xlu2 %967 }
 0x6a3   :  { %v730_v10 = vmul.f32 %v3679_v7, %v659_v2  ;;  %3483 = vmatpush.msk.msra.mxu1 %vm797_vm9, %v968_v9  ;;  %vm735_vm3 = vweird.f32 %v3679_v7 }
 0x6a4   :  { %vm736_vm5 = vmor %vm734_vm4, %vm735_vm3 }
 0x6a5   :  { %v731_v12 = vsub.f32 1.0, %v730_v10 }
 0x6a7   :  { %v1249_v16 = vld.sshfl [vmem:[#allocation1] sm:$0xff pattern:$0x73625140]  ;;  %v732_v18 = vmul.f32 %v3679_v7, %v731_v12 }
 0x6a8   :  { %1276 = vst [vmem:[#allocation1] ss:$4 sm:$0xff] %v4211_v17  ;;  %1250 = vrot.lane.b32.xlu0 %v1249_v16, %s4022_s19 }
 0x6a9   :  { %v733_v20 = vadd.f32 %v3679_v7, %v732_v18 }
 0x6ab   :  { %v737_v21 = vsel %vm736_vm5, %v3679_v7, %v733_v20 }
 0x6ac   :  { %v742_v23 = vsel %vm739_vm6, %v741_v22, %v737_v21  ;;  %v1087_v21 = vpop.permute.xlu2 %1086 }
 0x6ad   :  { %v743_v27 = vmul.f32 %v4307_v31, %v742_v23 }
 0x6af   :  { %v1277_v52 = vld.sshfl [vmem:[#allocation1] sm:$0xff pattern:$0x73625140]  ;;  %3480 = vmatmul.msk.f32.vlgmr.msra.gmra.mxu3 %vm793_vm14, %v743_v27 }
 0x6b0   :  { %1280 = vst [vmem:[#allocation1] ss:$4 sm:$0xff] %v4211_v17  ;;  %1278 = vrot.lane.b32.xlu0 %v1277_v52, %s4021_s1 }
 0x6b3   :  { %v662_v29 = vpop.xlane.xlu0 %661 }
 0x6b4   :  { %v755_v25 = vand.u32 2147483648, %v662_v29  ;;  %vm749_vm6 = vweird.f32 %v662_v29  ;;  %v753_v1 = vand.u32 2147483647, %v662_v29 }
 0x6b5   :  { %v665_v63 = vpop.xlane.xlu1 %664 }
 0x6b6   :  { %3680 = vrcp.f32 %v665_v63  ;;  %v770_v35 = vand.u32 2147483648, %v665_v63  ;;  %v768_v36 = vand.u32 2147483647, %v665_v63  ;;  %vm764_vm11 = vweird.f32 %v665_v63 }
 0x6b7   :  { %v1281_v28 = vld.sshfl [vmem:[#allocation1] sm:$0xff pattern:$0x73625140]  ;;  %3682 = vrcp.f32 %v662_v29  ;;  %v756_v10 = vor.u32 1.1754944e-38, %v755_v25 }
 0x6b8   :  { %1508 = vst [vmem:[#allocation1] ss:$4 sm:$0xff] %v4180_v3  ;;  %1282 = vrot.lane.b32.xlu1 %v1281_v28, %s4022_s19  ;;  %v771_v40 = vor.u32 1.1754944e-38, %v770_v35  ;;  %vm769_vm13 = vcmp.eq.f32.partialorder %v768_v36, 8.507059e+37 }
 0x6bc   :  { %v3681_v30 = vpop.eup %3680 }
 0x6bd   :  { %v760_v32 = vmul.f32 %v3681_v30, %v665_v63  ;;  %v668_v33 = vpop.xlane.xlu1 %667  ;;  %vm765_vm10 = vweird.f32 %v3681_v30  ;;  %v3683_v37 = vpop.eup %3682 }
 0x6be   :  { %3684 = vrcp.f32 %v668_v33  ;;  %vm766_vm12 = vmor %vm764_vm11, %vm765_vm10  ;;  %v745_v45 = vmul.f32 %v3683_v37, %v662_v29  ;;  %v785_v49 = vand.u32 2147483648, %v668_v33  ;;  %v783_v54 = vand.u32 2147483647, %v668_v33 }
 0x6bf   :  { %v4370_v31 = vld.sshfl [vmem:[#allocation1] sm:$0xff pattern:$0x73625140]  ;;  %v761_v34 = vsub.f32 1.0, %v760_v32  ;;  %vm779_vm1 = vweird.f32 %v668_v33  ;;  %vm750_vm5 = vweird.f32 %v3683_v37  ;;  %vm754_vm11 = vcmp.eq.f32.partialorder %v753_v1, 8.507059e+37 }
 0x6c0   :  { %1537 = vst [vmem:[#allocation1] ss:$4 sm:$0xff] %v4184_v4  ;;  %v746_v55 = vsub.f32 1.0, %v745_v45  ;;  %v786_v57 = vor.u32 1.1754944e-38, %v785_v49  ;;  %vm784_vm4 = vcmp.eq.f32.partialorder %v783_v54, 8.507059e+37  ;;  %vm751_vm10 = vmor %vm749_vm6, %vm750_vm5 }
 0x6c1   :  { %v762_v24 = vmul.f32 %v3681_v30, %v761_v34 }
 0x6c2   :  { %v747_v61 = vmul.f32 %v3683_v37, %v746_v55 }
 0x6c3   :  { %v763_v38 = vadd.f32 %v3681_v30, %v762_v24 }
 0x6c4   :  { %v3685_v39 = vpop.eup %3684  ;;  %v748_v62 = vadd.f32 %v3683_v37, %v747_v61 }
 0x6c5   :  { %v767_v41 = vsel %vm766_vm12, %v3681_v30, %v763_v38  ;;  %v775_v42 = vmul.f32 %v3685_v39, %v668_v33  ;;  %vm780_vm15 = vweird.f32 %v3685_v39 }
 0x6c6   :  { %v772_v43 = vsel %vm769_vm13, %v771_v40, %v767_v41  ;;  %vm781_vm3 = vmor %vm779_vm1, %vm780_vm15  ;;  %v752_v9 = vsel %vm751_vm10, %v3683_v37, %v748_v62 }
 0x6c7   :  { %v4373_v44 = vld.sshfl [vmem:[#allocation1] sm:$0xff pattern:$0x73625140]  ;;  %v776_v46 = vsub.f32 1.0, %v775_v42  ;;  %v773_v48 = vmul.f32 %v4319_v50, %v772_v43 }
 0x6c8   :  { %1566 = vst [vmem:[#allocation1] ss:$4 sm:$0xff] %v4189_v6 }
 0x6c9   :  { %v777_v51 = vmul.f32 %v3685_v39, %v776_v46  ;;  %3484 = vmatmul.msk.f32.vlgmr.msra.gmra.mxu1 %vm793_vm14, %v773_v48 }
 0x6cb   :  { %v778_v56 = vadd.f32 %v3685_v39, %v777_v51 }
 0x6cd   :  { %v782_v58 = vsel %vm781_vm3, %v3685_v39, %v778_v56 }
 0x6ce   :  { %v787_v59 = vsel %vm784_vm4, %v786_v57, %v782_v58 }
 0x6cf   :  { %v4378_v26 = vld.sshfl [vmem:[#allocation1] sm:$0xff pattern:$0x73625140]  ;;  %v788_v50 = vmul.f32 %v4325_v53, %v787_v59  ;;  %v757_v53 = vsel %vm754_vm11, %v756_v10, %v752_v9 }
 0x6d0   :  { %1595 = vst [vmem:[#allocation1] ss:$4 sm:$0xff] %v4194_v8  ;;  %v758_v14 = vmul.f32 %v4315_v47, %v757_v53 }
 0x6d1   :  { %3486 = vmatmul.msk.f32.vlgmr.msra.gmra.mxu2 %vm793_vm14, %v788_v50 }
 0x6d5   :  { %v1059_v2 = vpop.permute.xlu1 %1058 }
 0x6d6   :  { %3487 = vmatpush.xpose.msk.msrb.mxu3 %vm367_vm7, %v1059_v2 }
 0x6d7   :  { %v4384_v7 = vld.sshfl [vmem:[#allocation1] sm:$0xff pattern:$0x73625140] }
 0x6d8   :  { %1624 = vst [vmem:[#allocation1] ss:$4 sm:$0xff] %v4197_v11 }
 0x6d9   :  { %3488 = vmatmul.msk.f32.vlgmr.msrb.gmra.mxu3 %vm367_vm7, %v4356_v60 }
 0x6da   :  { %v1183_v52 = vpop.permute.xlu2 %1182 }
 0x6dd   :  { %v939_v12 = vpop.permute.xlu1 %938 }
 0x6de   :  { %3481 = vmatpush.msk.msrb.mxu0 %vm797_vm9, %v939_v12 }
 0x6df   :  { %v4391_v16 = vld.sshfl [vmem:[#allocation1] sm:$0xff pattern:$0x73625140]  ;;  %3482 = vmatmul.msk.f32.vlgmr.msrb.gmra.mxu0 %vm793_vm14, %v758_v14 }
 0x6e0   :  { %1653 = vst [vmem:[#allocation1] ss:$4 sm:$0xff] %v4202_v13 }
 0x6e2   :  { %v1151_v18 = vpop.permute.xlu0 %1150 }
 0x6e5   :  { %v1123_v19 = vpop.permute.xlu1 %1122 }
 0x6e6   :  { %3491 = vmatpush.xpose.msk.msrb.mxu1 %vm367_vm7, %v1123_v19 }
 0x6e7   :  { %v4396_v20 = vld.sshfl [vmem:[#allocation1] sm:$0xff pattern:$0x73625140] }
 0x6e8   :  { %1682 = vst [vmem:[#allocation1] ss:$4 sm:$0xff] %v4207_v15 }
 0x6ea   :  { %v1155_v60 = vpop.permute.xlu0 %1154 }
 0x6eb   :  { %3493 = vmatpush.xpose.msk.msrb.mxu2 %vm367_vm7, %v1155_v60 }
 0x6ee   :  { %3494 = vmatmul.msk.f32.vlgmr.msrb.gmra.mxu2 %vm367_vm7, %v1151_v18 }
 0x6ef   :  { %v4401_v47 = vld.sshfl [vmem:[#allocation1] sm:$0xff pattern:$0x73625140] }
 0x6f0   :  { %1711 = vst [vmem:[#allocation1] ss:$4 sm:$0xff] %v4211_v17 }
 0x6f2   :  { %v1091_v22 = vpop.permute.xlu0 %1090 }
 0x6f3   :  { %3489 = vmatpush.xpose.msk.msra.mxu0 %vm367_vm7, %v1091_v22 }
 0x6f6   :  { %3490 = vmatmul.msk.f32.vlgmr.msra.gmra.mxu0 %vm367_vm7, %v1087_v21 }
 0x6fa   :  { %v1119_v23 = vpop.permute.xlu0 %1118 }
 0x6fb   :  { %3492 = vmatmul.msk.f32.vlgmr.msrb.gmra.mxu1 %vm367_vm7, %v1119_v23 }
 0x702   :  { %v1187_v27 = vpop.permute.xlu0 %1186 }
 0x703   :  { %3495 = vmatpush.xpose.msk.msra.mxu3 %vm367_vm7, %v1187_v27 }
 0x706   :  { %3496 = vmatmul.msk.f32.vlgmr.msra.gmra.mxu3 %vm367_vm7, %v1183_v52 }
 0x70a   :  { %v1219_v63 = vpop.permute.xlu1 %1218 }
 0x70b   :  { %3497 = vmatpush.xpose.msk.msrb.mxu0 %vm367_vm7, %v1219_v63 }
 0x71a   :  { %v1251_v28 = vpop.permute.xlu0 %1250 }
 0x71b   :  { %3499 = vmatpush.xpose.msk.msra.mxu1 %vm367_vm7, %v1251_v28 }
 0x722   :  { %v1279_v30 = vpop.permute.xlu0 %1278 }
 0x72a   :  { %v1283_v29 = vpop.permute.xlu1 %1282 }
 0x72b   :  { %3501 = vmatpush.xpose.msk.msra.mxu2 %vm367_vm7, %v1283_v29 }
 0x72e   :  { %3502 = vmatmul.msk.f32.vlgmr.msra.gmra.mxu2 %vm367_vm7, %v1279_v30 }
 0x732   :  { %v933_v32 = vpop.f32.mrf.mxu3 }
 0x733   :  { %1039 = vst [vmem:[#allocation1 + $0x20] ss:$4 sm:$0xff] %v933_v32 }
 0x746   :  { %v991_v33 = vpop.f32.mrf.mxu1 }
 0x747   :  { %1043 = vst [vmem:[#allocation1 + $0x22] ss:$4 sm:$0xff] %v991_v33 }
 0x754   :  { %v1020_v34 = vpop.f32.mrf.mxu2 }
 0x755   :  { %1045 = vst [vmem:[#allocation1 + $0x23] ss:$4 sm:$0xff] %v1020_v34 }
 0x75c   :  { %v962_v35 = vpop.f32.mrf.mxu0  ;;  %v1081_v24 = vpop.f32.mrf.mxu3 }
 0x75d   :  { %1041 = vst [vmem:[#allocation1 + $0x21] ss:$4 sm:$0xff] %v962_v35  ;;  %v1308_v36 = vmul.f32 0.35355338, %v1081_v24 }
 0x75f   :  { %v1316_v37 = vsel %vm596_vm8, %v1308_v36, -inf }
 0x760   :  { %1317 = vmax.xlane.f32.xlu1 %v1316_v37 }
 0x764   :  { %v1047_v38 = vld.sshfl [vmem:[#allocation1 + $0x20] sm:$0xff pattern:$0x73625140] }
 0x765   :  { %1051 = vst.msk [vmem:[#allocation6 + $0x8] sm:$0xff] %vm367_vm7, %v1047_v38 }
 0x771   :  { %v1177_v39 = vpop.f32.mrf.mxu2 }
 0x772   :  { %v1311_v40 = vmul.f32 0.35355338, %v1177_v39 }
 0x773   :  { %v1113_v41 = vpop.f32.mrf.mxu0 }
 0x774   :  { %v1309_v42 = vmul.f32 0.35355338, %v1113_v41  ;;  %v1325_v43 = vsel %vm596_vm8, %v1311_v40, -inf }
 0x775   :  { %1326 = vmax.xlane.f32.xlu2 %v1325_v43 }
 0x776   :  { %v1319_v45 = vsel %vm596_vm8, %v1309_v42, -inf }
 0x777   :  { %1320 = vmax.xlane.f32.xlu0 %v1319_v45 }
 0x778   :  { %v1145_v46 = vpop.f32.mrf.mxu1 }
 0x779   :  { %v1310_v48 = vmul.f32 0.35355338, %v1145_v46 }
 0x77b   :  { %v1322_v49 = vsel %vm596_vm8, %v1310_v48, -inf }
 0x77c   :  { %1323 = vmax.xlane.f32.xlu1 %v1322_v49 }
 0x789   :  { %v1209_v22 = vpop.f32.mrf.mxu3 }
 0x78a   :  { %v4448_v23 = vmul.f32 0.35355338, %v1209_v22 }
 0x78b   :  { %1510 = vrot.lane.b32.xlu0 %v4370_v31, %s4023_s20 }
 0x78c   :  { %v1328_v52 = vsel %vm596_vm8, %v4448_v23, -inf }
 0x78d   :  { %1214 = vrot.lane.b32.xlu2 %v4350_v0, %s4021_s1 }
 0x795   :  { %1246 = vrot.lane.b32.xlu1 %v4358_v5, %s4021_s1 }
 0x7b1   :  { %v1305_v60 = vpop.f32.mrf.mxu2 }
 0x7b2   :  { %v4446_v21 = vmul.f32 0.35355338, %v1305_v60 }
 0x7b4   :  { %v1337_v27 = vsel %vm596_vm8, %v4446_v21, -inf }
 0x7d3   :  { %v1318_v51 = vpop.xlane.xlu1 %1317 }
 0x7d4   :  { %v1340_v54 = vsub.f32 %v1308_v36, %v1318_v51 }
 0x7d6   :  { %v1348_v55 = vmul.f32 1.442695, %v1340_v54 }
 0x7d8   :  { %3686 = vpow2.f32 %v1348_v55 }
 0x7de   :  { %v3687_v56 = vpop.eup %3686 }
 0x7df   :  { %v1364_v57 = vsel %vm596_vm8, %v3687_v56, 0.0 }
 0x7e0   :  { %1365 = vadd.xlane.f32.xlu2 %v1364_v57 }
 0x7e8   :  { %v1327_v58 = vpop.xlane.xlu2 %1326 }
 0x7e9   :  { %v1343_v59 = vsub.f32 %v1311_v40, %v1327_v58 }
 0x7ea   :  { %v1321_v61 = vpop.xlane.xlu0 %1320 }
 0x7eb   :  { %v1354_v50 = vmul.f32 1.442695, %v1343_v59  ;;  %v1341_v62 = vsub.f32 %v1309_v42, %v1321_v61 }
 0x7ed   :  { %3688 = vpow2.f32 %v1354_v50  ;;  %v1350_v31 = vmul.f32 1.442695, %v1341_v62 }
 0x7ef   :  { %3690 = vpow2.f32 %v1350_v31  ;;  %v1324_v0 = vpop.xlane.xlu1 %1323 }
 0x7f0   :  { %v1342_v25 = vsub.f32 %v1310_v48, %v1324_v0  ;;  %v1215_v1 = vpop.permute.xlu2 %1214 }
 0x7f1   :  { %3498 = vmatmul.msk.f32.vlgmr.msrb.gmra.mxu0 %vm367_vm7, %v1215_v1 }
 0x7f2   :  { %v1352_v5 = vmul.f32 1.442695, %v1342_v25 }
 0x7f3   :  { %v4426_v2 = vpop.eup %3688 }
 0x7f4   :  { %3692 = vpow2.f32 %v1352_v5  ;;  %v1373_v9 = vsel %vm596_vm8, %v4426_v2, 0.0 }
 0x7f5   :  { %v4430_v10 = vpop.eup %3690  ;;  %1374 = vadd.xlane.f32.xlu0 %v1373_v9 }
 0x7f6   :  { %v1367_v53 = vsel %vm596_vm8, %v4430_v10, 0.0 }
 0x7f7   :  { %1368 = vadd.xlane.f32.xlu1 %v1367_v53 }
 0x7fa   :  { %v4434_v12 = vpop.eup %3692 }
 0x7fb   :  { %v1370_v14 = vsel %vm596_vm8, %v4434_v12, 0.0 }
 0x7fc   :  { %1371 = vadd.xlane.f32.xlu2 %v1370_v14 }
 0x7fd   :  { %v1511_v18 = vpop.permute.xlu0 %1510 }
 0x7fe   :  { %3503 = vmatpush.msk.msrb.mxu3 %vm797_vm9, %v1511_v18 }
 0x807   :  { %v1247_v19 = vpop.permute.xlu1 %1246 }
 0x808   :  { %3500 = vmatmul.msk.f32.vlgmr.msra.gmra.mxu1 %vm367_vm7, %v1247_v19 }
 0x809   :  { %1568 = vrot.lane.b32.xlu0 %v4378_v26, %s4023_s20 }
 0x810   :  { %1539 = vrot.lane.b32.xlu1 %v4373_v44, %s4023_s20 }
 0x814   :  { %1597 = vrot.lane.b32.xlu2 %v4384_v7, %s4023_s20 }
 0x83a   :  { %1338 = vmax.xlane.f32.xlu1 %v1337_v27 }
 0x83d   :  { %1329 = vmax.xlane.f32.xlu2 %v1328_v52 }
 0x853   :  { %v1366_v26 = vpop.xlane.xlu2 %1365 }
 0x854   :  { %3694 = vrcp.f32 %v1366_v26  ;;  %v1399_v7 = vand.u32 2147483648, %v1366_v26  ;;  %v1397_v30 = vand.u32 2147483647, %v1366_v26  ;;  %vm1393_vm13 = vweird.f32 %v1366_v26 }
 0x856   :  { %v1400_v33 = vor.u32 1.1754944e-38, %v1399_v7  ;;  %vm1398_vm1 = vcmp.eq.f32.partialorder %v1397_v30, 8.507059e+37 }
 0x85a   :  { %v3695_v44 = vpop.eup %3694 }
 0x85b   :  { %v1389_v63 = vmul.f32 %v3695_v44, %v1366_v26  ;;  %vm1394_vm12 = vweird.f32 %v3695_v44 }
 0x85c   :  { %vm1395_vm15 = vmor %vm1393_vm13, %vm1394_vm12 }
 0x85d   :  { %v1390_v28 = vsub.f32 1.0, %v1389_v63 }
 0x85f   :  { %v1391_v29 = vmul.f32 %v3695_v44, %v1390_v28 }
 0x861   :  { %v1392_v32 = vadd.f32 %v3695_v44, %v1391_v29 }
 0x863   :  { %v1396_v34 = vsel %vm1395_vm15, %v3695_v44, %v1392_v32 }
 0x864   :  { %v1401_v35 = vsel %vm1398_vm1, %v1400_v33, %v1396_v34  ;;  %v1712_v33 = vld.sshfl [vmem:[#allocation1] sm:$0xff pattern:$0x73625140] }
 0x865   :  { %v1402_v24 = vmul.f32 %v3687_v56, %v1401_v35 }
 0x867   :  { %3504 = vmatmul.msk.f32.vlgmr.msrb.gmra.mxu3 %vm793_vm14, %v1402_v24 }
 0x868   :  { %v1375_v36 = vpop.xlane.xlu0 %1374 }
 0x869   :  { %3696 = vrcp.f32 %v1375_v36  ;;  %v1444_v49 = vand.u32 2147483648, %v1375_v36  ;;  %v1442_v54 = vand.u32 2147483647, %v1375_v36  ;;  %vm1438_vm4 = vweird.f32 %v1375_v36 }
 0x86a   :  { %v1369_v37 = vpop.xlane.xlu1 %1368 }
 0x86b   :  { %3698 = vrcp.f32 %v1369_v37  ;;  %v1445_v59 = vor.u32 1.1754944e-38, %v1444_v49  ;;  %vm1443_vm6 = vcmp.eq.f32.partialorder %v1442_v54, 8.507059e+37  ;;  %v1414_v25 = vand.u32 2147483648, %v1369_v37 }
 0x86c   :  { %vm1408_vm11 = vweird.f32 %v1369_v37  ;;  %v1412_v5 = vand.u32 2147483647, %v1369_v37 }
 0x86d   :  { %v1415_v22 = vor.u32 1.1754944e-38, %v1414_v25 }
 0x86e   :  { %v1241_v38 = vpop.f32.mrf.mxu0  ;;  %vm1413_vm1 = vcmp.eq.f32.partialorder %v1412_v5, 8.507059e+37 }
 0x86f   :  { %v3697_v39 = vpop.eup %3696  ;;  %v4455_v40 = vmul.f32 0.35355338, %v1241_v38  ;;  %v1372_v41 = vpop.xlane.xlu2 %1371 }
 0x870   :  { %v1434_v42 = vmul.f32 %v3697_v39, %v1375_v36  ;;  %3700 = vrcp.f32 %v1372_v41  ;;  %vm1439_vm3 = vweird.f32 %v3697_v39  ;;  %v1429_v9 = vand.u32 2147483648, %v1372_v41 }
 0x871   :  { %v3699_v43 = vpop.eup %3698  ;;  %v1331_v45 = vsel %vm596_vm8, %v4455_v40, -inf  ;;  %vm1440_vm5 = vmor %vm1438_vm4, %vm1439_vm3  ;;  %v1427_v18 = vand.u32 2147483647, %v1372_v41  ;;  %vm1423_vm15 = vweird.f32 %v1372_v41 }
 0x872   :  { %v1435_v46 = vsub.f32 1.0, %v1434_v42  ;;  %v1404_v48 = vmul.f32 %v3699_v43, %v1369_v37  ;;  %1332 = vmax.xlane.f32.xlu0 %v1331_v45  ;;  %vm1409_vm10 = vweird.f32 %v3699_v43  ;;  %v1430_v52 = vor.u32 1.1754944e-38, %v1429_v9 }
 0x873   :  { %vm1410_vm12 = vmor %vm1408_vm11, %vm1409_vm10  ;;  %vm1428_vm4 = vcmp.eq.f32.partialorder %v1427_v18, 8.507059e+37 }
 0x874   :  { %v1436_v51 = vmul.f32 %v3697_v39, %v1435_v46  ;;  %v1405_v55 = vsub.f32 1.0, %v1404_v48 }
 0x876   :  { %v3701_v56 = vpop.eup %3700  ;;  %v1437_v57 = vadd.f32 %v3697_v39, %v1436_v51  ;;  %v1406_v58 = vmul.f32 %v3699_v43, %v1405_v55 }
 0x877   :  { %v1419_v61 = vmul.f32 %v3701_v56, %v1372_v41  ;;  %v1598_v50 = vpop.permute.xlu2 %1597  ;;  %vm1424_vm13 = vweird.f32 %v3701_v56 }
 0x878   :  { %v1441_v62 = vsel %vm1440_vm5, %v3697_v39, %v1437_v57  ;;  %v1407_v31 = vadd.f32 %v3699_v43, %v1406_v58  ;;  %3509 = vmatpush.msk.msrb.mxu2 %vm797_vm9, %v1598_v50  ;;  %vm1425_vm3 = vmor %vm1423_vm15, %vm1424_vm13 }
 0x879   :  { %v1446_v0 = vsel %vm1443_vm6, %v1445_v59, %v1441_v62  ;;  %v1420_v1 = vsub.f32 1.0, %v1419_v61 }
 0x87a   :  { %v1447_v53 = vmul.f32 %v4426_v2, %v1446_v0  ;;  %v1411_v60 = vsel %vm1410_vm12, %v3699_v43, %v1407_v31 }
 0x87b   :  { %v1421_v14 = vmul.f32 %v3701_v56, %v1420_v1  ;;  %v1569_v19 = vpop.permute.xlu0 %1568  ;;  %v1416_v26 = vsel %vm1413_vm1, %v1415_v22, %v1411_v60 }
 0x87c   :  { %3507 = vmatpush.msk.msrb.mxu1 %vm797_vm9, %v1569_v19  ;;  %3510 = vmatmul.msk.f32.vlgmr.msrb.gmra.mxu2 %vm793_vm14, %v1447_v53  ;;  %v1417_v7 = vmul.f32 %v4430_v10, %v1416_v26 }
 0x87d   :  { %v1422_v27 = vadd.f32 %v3701_v56, %v1421_v14 }
 0x87f   :  { %v1426_v44 = vsel %vm1425_vm3, %v3701_v56, %v1422_v27 }
 0x880   :  { %v1431_v2 = vsel %vm1428_vm4, %v1430_v52, %v1426_v44 }
 0x881   :  { %v1432_v63 = vmul.f32 %v4434_v12, %v1431_v2 }
 0x882   :  { %v1540_v28 = vpop.permute.xlu1 %1539 }
 0x883   :  { %3505 = vmatpush.msk.msra.mxu0 %vm797_vm9, %v1540_v28  ;;  %3508 = vmatmul.msk.f32.vlgmr.msrb.gmra.mxu1 %vm793_vm14, %v1432_v63 }
 0x884   :  { %3506 = vmatmul.msk.f32.vlgmr.msra.gmra.mxu0 %vm793_vm14, %v1417_v7 }
 0x885   :  { %v1273_v29 = vpop.f32.mrf.mxu1 }
 0x886   :  { %v1314_v30 = vmul.f32 0.35355338, %v1273_v29  ;;  %1626 = vrot.lane.b32.xlu0 %v4391_v16, %s4023_s20 }
 0x888   :  { %v1334_v32 = vsel %vm596_vm8, %v1314_v30, -inf }
 0x889   :  { %1335 = vmax.xlane.f32.xlu2 %v1334_v32 }
 0x8a1   :  { %1713 = vrot.lane.b32.xlu2 %v1712_v33, %s4023_s20 }
 0x8ad   :  { %v1339_v12 = vpop.xlane.xlu1 %1338 }
 0x8ae   :  { %v1347_v10 = vsub.f32 %v4446_v21, %v1339_v12 }
 0x8b0   :  { %v1362_v34 = vmul.f32 1.442695, %v1347_v10  ;;  %v1330_v35 = vpop.xlane.xlu2 %1329 }
 0x8b1   :  { %v1344_v24 = vsub.f32 %v4448_v23, %v1330_v35 }
 0x8b2   :  { %3702 = vpow2.f32 %v1362_v34 }
 0x8b3   :  { %v1356_v36 = vmul.f32 1.442695, %v1344_v24 }
 0x8b5   :  { %3704 = vpow2.f32 %v1356_v36 }
 0x8b8   :  { %v4474_v37 = vpop.eup %3702 }
 0x8b9   :  { %v1385_v16 = vsel %vm596_vm8, %v4474_v37, 0.0 }
 0x8ba   :  { %1386 = vadd.xlane.f32.xlu0 %v1385_v16 }
 0x8bb   :  { %v4478_v38 = vpop.eup %3704 }
 0x8bc   :  { %v1376_v39 = vsel %vm596_vm8, %v4478_v38, 0.0 }
 0x8bd   :  { %1377 = vadd.xlane.f32.xlu1 %v1376_v39 }
 0x8e5   :  { %v1333_v21 = vpop.xlane.xlu0 %1332 }
 0x8e6   :  { %v1345_v41 = vsub.f32 %v4455_v40, %v1333_v21 }
 0x8e8   :  { %v1358_v42 = vmul.f32 1.442695, %v1345_v41 }
 0x8ea   :  { %3706 = vpow2.f32 %v1358_v42  ;;  %v1534_v23 = vpop.f32.mrf.mxu3 }
 0x8eb   :  { %1748 = vst [vmem:[#allocation1] ss:$4 sm:$0xff] %v1534_v23 }
 0x8f0   :  { %v4483_v43 = vpop.eup %3706 }
 0x8f1   :  { %v1379_v45 = vsel %vm596_vm8, %v4483_v43, 0.0 }
 0x8f2   :  { %1380 = vadd.xlane.f32.xlu2 %v1379_v45 }
 0x8f8   :  { %v1627_v46 = vpop.permute.xlu0 %1626 }
 0x8f9   :  { %3511 = vmatpush.msk.msra.mxu3 %vm797_vm9, %v1627_v46 }
 0x8fc   :  { %v1336_v48 = vpop.xlane.xlu2 %1335 }
 0x8fd   :  { %v1346_v49 = vsub.f32 %v1314_v30, %v1336_v48 }
 0x8ff   :  { %v1360_v51 = vmul.f32 1.442695, %v1346_v49  ;;  %v1621_v54 = vpop.f32.mrf.mxu2 }
 0x900   :  { %1754 = vst [vmem:[#allocation1 + $0x3] ss:$4 sm:$0xff] %v1621_v54  ;;  %v1592_v55 = vpop.f32.mrf.mxu1 }
 0x901   :  { %3708 = vpow2.f32 %v1360_v51  ;;  %1752 = vst [vmem:[#allocation1 + $0x2] ss:$4 sm:$0xff] %v1592_v55  ;;  %v1563_v40 = vpop.f32.mrf.mxu0 }
 0x902   :  { %1750 = vst [vmem:[#allocation1 + $0x1] ss:$4 sm:$0xff] %v1563_v40 }
 0x904   :  { %v1714_v56 = vpop.permute.xlu2 %1713 }
 0x905   :  { %3517 = vmatpush.msk.msra.mxu2 %vm797_vm9, %v1714_v56 }
 0x907   :  { %v4489_v57 = vpop.eup %3708 }
 0x908   :  { %v1382_v58 = vsel %vm596_vm8, %v4489_v57, 0.0 }
 0x909   :  { %v4493_v59 = vld.sshfl [vmem:[#allocation1] sm:$0xff pattern:$0x73625140]  ;;  %1383 = vadd.xlane.f32.xlu1 %v1382_v58 }
 0x90a   :  { %1774 = vst [vmem:[#allocation1] ss:$4 sm:$0xff] %v4180_v3 }
 0x911   :  { %v1775_v61 = vld.sshfl [vmem:[#allocation1] sm:$0xff pattern:$0x73625140] }
 0x912   :  { %1778 = vst [vmem:[#allocation1] ss:$4 sm:$0xff] %v4180_v3  ;;  %1776 = vrot.lane.b32.xlu2 %v1775_v61, %s4024_s4 }
 0x919   :  { %v1779_v50 = vld.sshfl [vmem:[#allocation1] sm:$0xff pattern:$0x73625140] }
 0x91a   :  { %1806 = vst [vmem:[#allocation1] ss:$4 sm:$0xff] %v4184_v4  ;;  %1684 = vrot.lane.b32.xlu2 %v4401_v47, %s4023_s20 }
 0x921   :  { %v1807_v62 = vld.sshfl [vmem:[#allocation1] sm:$0xff pattern:$0x73625140] }
 0x922   :  { %1810 = vst [vmem:[#allocation1] ss:$4 sm:$0xff] %v4184_v4  ;;  %1780 = vrot.lane.b32.xlu1 %v1779_v50, %s4025_s21  ;;  %1808 = vrot.lane.b32.xlu2 %v1807_v62, %s4024_s4 }
 0x929   :  { %v1811_v31 = vld.sshfl [vmem:[#allocation1] sm:$0xff pattern:$0x73625140] }
 0x92a   :  { %1838 = vst [vmem:[#allocation1] ss:$4 sm:$0xff] %v4189_v6  ;;  %1655 = vrot.lane.b32.xlu1 %v4396_v20, %s4023_s20 }
 0x92d   :  { %v1387_v0 = vpop.xlane.xlu0 %1386 }
 0x92e   :  { %3710 = vrcp.f32 %v1387_v0  ;;  %v1504_v14 = vand.u32 2147483648, %v1387_v0  ;;  %v1502_v22 = vand.u32 2147483647, %v1387_v0  ;;  %vm1498_vm6 = vweird.f32 %v1387_v0 }
 0x930   :  { %v1378_v25 = vpop.xlane.xlu1 %1377  ;;  %v1505_v26 = vor.u32 1.1754944e-38, %v1504_v14  ;;  %vm1503_vm12 = vcmp.eq.f32.partialorder %v1502_v22, 8.507059e+37 }
 0x931   :  { %v1839_v1 = vld.sshfl [vmem:[#allocation1] sm:$0xff pattern:$0x73625140]  ;;  %3712 = vrcp.f32 %v1378_v25  ;;  %v1459_v52 = vand.u32 2147483648, %v1378_v25  ;;  %v1457_v2 = vand.u32 2147483647, %v1378_v25  ;;  %vm1453_vm13 = vweird.f32 %v1378_v25 }
 0x932   :  { %1842 = vst [vmem:[#allocation1] ss:$4 sm:$0xff] %v4189_v6 }
 0x933   :  { %v1460_v29 = vor.u32 1.1754944e-38, %v1459_v52  ;;  %vm1458_vm1 = vcmp.eq.f32.partialorder %v1457_v2, 8.507059e+37 }
 0x934   :  { %v3711_v47 = vpop.eup %3710 }
 0x935   :  { %v1494_v5 = vmul.f32 %v3711_v47, %v1387_v0  ;;  %vm1499_vm5 = vweird.f32 %v3711_v47 }
 0x936   :  { %vm1500_vm10 = vmor %vm1498_vm6, %vm1499_vm5 }
 0x937   :  { %v3713_v9 = vpop.eup %3712  ;;  %v1495_v53 = vsub.f32 1.0, %v1494_v5 }
 0x938   :  { %v1449_v18 = vmul.f32 %v3713_v9, %v1378_v25  ;;  %vm1454_vm11 = vweird.f32 %v3713_v9 }
 0x939   :  { %v1843_v19 = vld.sshfl [vmem:[#allocation1] sm:$0xff pattern:$0x73625140]  ;;  %v1496_v60 = vmul.f32 %v3711_v47, %v1495_v53  ;;  %vm1455_vm15 = vmor %vm1453_vm13, %vm1454_vm11 }
 0x93a   :  { %1870 = vst [vmem:[#allocation1] ss:$4 sm:$0xff] %v4194_v8  ;;  %v1450_v20 = vsub.f32 1.0, %v1449_v18  ;;  %1844 = vrot.lane.b32.xlu1 %v1843_v19, %s4025_s21 }
 0x93b   :  { %v1497_v27 = vadd.f32 %v3711_v47, %v1496_v60 }
 0x93c   :  { %v1451_v44 = vmul.f32 %v3713_v9, %v1450_v20 }
 0x93d   :  { %v1501_v63 = vsel %vm1500_vm10, %v3711_v47, %v1497_v27 }
 0x93e   :  { %v1506_v28 = vsel %vm1503_vm12, %v1505_v26, %v1501_v63  ;;  %v1452_v7 = vadd.f32 %v3713_v9, %v1451_v44 }
 0x93f   :  { %v1507_v30 = vmul.f32 %v4474_v37, %v1506_v28 }
 0x940   :  { %v1456_v32 = vsel %vm1455_vm15, %v3713_v9, %v1452_v7 }
 0x941   :  { %v1871_v33 = vld.sshfl [vmem:[#allocation1] sm:$0xff pattern:$0x73625140]  ;;  %v1461_v12 = vsel %vm1458_vm1, %v1460_v29, %v1456_v32  ;;  %3518 = vmatmul.msk.f32.vlgmr.msra.gmra.mxu2 %vm793_vm14, %v1507_v30 }
 0x942   :  { %1874 = vst [vmem:[#allocation1] ss:$4 sm:$0xff] %v4194_v8  ;;  %1872 = vrot.lane.b32.xlu0 %v1871_v33, %s4024_s4  ;;  %v1462_v10 = vmul.f32 %v4478_v38, %v1461_v12 }
 0x944   :  { %3512 = vmatmul.msk.f32.vlgmr.msra.gmra.mxu3 %vm793_vm14, %v1462_v10 }
 0x949   :  { %v1875_v34 = vld.sshfl [vmem:[#allocation1] sm:$0xff pattern:$0x73625140] }
 0x94a   :  { %1902 = vst [vmem:[#allocation1] ss:$4 sm:$0xff] %v4197_v11  ;;  %1876 = vrot.lane.b32.xlu0 %v1875_v34, %s4025_s21 }
 0x951   :  { %v1903_v35 = vld.sshfl [vmem:[#allocation1] sm:$0xff pattern:$0x73625140] }
 0x952   :  { %1906 = vst [vmem:[#allocation1] ss:$4 sm:$0xff] %v4197_v11  ;;  %1812 = vrot.lane.b32.xlu0 %v1811_v31, %s4025_s21  ;;  %1904 = vrot.lane.b32.xlu1 %v1903_v35, %s4024_s4 }
 0x959   :  { %v1907_v24 = vld.sshfl [vmem:[#allocation1] sm:$0xff pattern:$0x73625140] }
 0x95a   :  { %1934 = vst [vmem:[#allocation1] ss:$4 sm:$0xff] %v4202_v13  ;;  %1840 = vrot.lane.b32.xlu0 %v1839_v1, %s4024_s4 }
 0x961   :  { %v4523_v36 = vld.sshfl [vmem:[#allocation1] sm:$0xff pattern:$0x73625140] }
 0x962   :  { %1938 = vst [vmem:[#allocation1] ss:$4 sm:$0xff] %v4202_v13  ;;  %1908 = vrot.lane.b32.xlu0 %v1907_v24, %s4025_s21 }
 0x965   :  { %v1381_v37 = vpop.xlane.xlu2 %1380 }
 0x966   :  { %3714 = vrcp.f32 %v1381_v37  ;;  %v1474_v5 = vand.u32 2147483648, %v1381_v37  ;;  %vm1468_vm11 = vweird.f32 %v1381_v37  ;;  %v1472_v9 = vand.u32 2147483647, %v1381_v37 }
 0x968   :  { %v1475_v18 = vor.u32 1.1754944e-38, %v1474_v5  ;;  %vm1473_vm13 = vcmp.eq.f32.partialorder %v1472_v9, 8.507059e+37 }
 0x969   :  { %v1939_v16 = vld.sshfl [vmem:[#allocation1] sm:$0xff pattern:$0x73625140] }
 0x96a   :  { %1966 = vst [vmem:[#allocation1] ss:$4 sm:$0xff] %v4207_v15  ;;  %1940 = vrot.lane.b32.xlu2 %v1939_v16, %s4025_s21 }
 0x96c   :  { %v3715_v45 = vpop.eup %3714 }
 0x96d   :  { %v1777_v38 = vpop.permute.xlu2 %1776  ;;  %v1464_v49 = vmul.f32 %v3715_v45, %v1381_v37  ;;  %vm1469_vm10 = vweird.f32 %v3715_v45 }
 0x96e   :  { %vm1470_vm12 = vmor %vm1468_vm11, %vm1469_vm10 }
 0x96f   :  { %v1465_v58 = vsub.f32 1.0, %v1464_v49 }
 0x971   :  { %v4529_v39 = vld.sshfl [vmem:[#allocation1] sm:$0xff pattern:$0x73625140]  ;;  %v1466_v0 = vmul.f32 %v3715_v45, %v1465_v58 }
 0x972   :  { %1970 = vst [vmem:[#allocation1] ss:$4 sm:$0xff] %v4207_v15 }
 0x973   :  { %v1467_v47 = vadd.f32 %v3715_v45, %v1466_v0 }
 0x975   :  { %v1685_v21 = vpop.permute.xlu2 %1684  ;;  %v1471_v14 = vsel %vm1470_vm12, %v3715_v45, %v1467_v47 }
 0x976   :  { %3515 = vmatpush.msk.msra.mxu1 %vm797_vm9, %v1685_v21 }
 0x979   :  { %v1971_v41 = vld.sshfl [vmem:[#allocation1] sm:$0xff pattern:$0x73625140] }
 0x97a   :  { %1972 = vrot.lane.b32.xlu0 %v1971_v41, %s4025_s21  ;;  %1998 = vst [vmem:[#allocation1] ss:$4 sm:$0xff] %v4211_v17 }
 0x97c   :  { %v1384_v42 = vpop.xlane.xlu1 %1383 }
 0x97d   :  { %3716 = vrcp.f32 %v1384_v42  ;;  %v1489_v54 = vand.u32 2147483648, %v1384_v42  ;;  %v1487_v40 = vand.u32 2147483647, %v1384_v42  ;;  %vm1483_vm4 = vweird.f32 %v1384_v42  ;;  %v1809_v63 = vpop.permute.xlu2 %1808 }
 0x97f   :  { %v1490_v50 = vor.u32 1.1754944e-38, %v1489_v54  ;;  %vm1488_vm6 = vcmp.eq.f32.partialorder %v1487_v40, 8.507059e+37 }
 0x981   :  { %v1999_v23 = vld.sshfl [vmem:[#allocation1] sm:$0xff pattern:$0x73625140] }
 0x982   :  { %2000 = vrot.lane.b32.xlu0 %v1999_v23, %s4024_s4  ;;  %2002 = vst [vmem:[#allocation1] ss:$4 sm:$0xff] %v4211_v17 }
 0x983   :  { %v3717_v46 = vpop.eup %3716 }
 0x984   :  { %v1479_v48 = vmul.f32 %v3717_v46, %v1384_v42  ;;  %vm1484_vm3 = vweird.f32 %v3717_v46 }
 0x985   :  { %vm1485_vm5 = vmor %vm1483_vm4, %vm1484_vm3 }
 0x986   :  { %v1480_v51 = vsub.f32 1.0, %v1479_v48 }
 0x988   :  { %v1481_v55 = vmul.f32 %v3717_v46, %v1480_v51 }
 0x989   :  { %v2003_v56 = vld.sshfl [vmem:[#allocation1] sm:$0xff pattern:$0x73625140] }
 0x98a   :  { %v1482_v61 = vadd.f32 %v3717_v46, %v1481_v55  ;;  %2004 = vrot.lane.b32.xlu2 %v2003_v56, %s4025_s21  ;;  %2230 = vst [vmem:[#allocation1] ss:$4 sm:$0xff] %v4180_v3 }
 0x98c   :  { %v1486_v62 = vsel %vm1485_vm5, %v3717_v46, %v1482_v61 }
 0x98d   :  { %v1491_v31 = vsel %vm1488_vm6, %v1490_v50, %v1486_v62 }
 0x98e   :  { %v1492_v25 = vmul.f32 %v4489_v57, %v1491_v31  ;;  %v1476_v57 = vsel %vm1473_vm13, %v1475_v18, %v1471_v14 }
 0x98f   :  { %v1477_v22 = vmul.f32 %v4483_v43, %v1476_v57 }
 0x990   :  { %3516 = vmatmul.msk.f32.vlgmr.msra.gmra.mxu1 %vm793_vm14, %v1492_v25 }
 0x991   :  { %v4541_v1 = vld.sshfl [vmem:[#allocation1] sm:$0xff pattern:$0x73625140] }
 0x992   :  { %2259 = vst [vmem:[#allocation1] ss:$4 sm:$0xff] %v4184_v4 }
 0x994   :  { %v1781_v53 = vpop.permute.xlu1 %1780 }
 0x995   :  { %3519 = vmatpush.xpose.msk.msrb.mxu3 %vm367_vm7, %v1781_v53 }
 0x998   :  { %3520 = vmatmul.msk.f32.vlgmr.msrb.gmra.mxu3 %vm367_vm7, %v1777_v38 }
 0x999   :  { %v4546_v19 = vld.sshfl [vmem:[#allocation1] sm:$0xff pattern:$0x73625140] }
 0x99a   :  { %2288 = vst [vmem:[#allocation1] ss:$4 sm:$0xff] %v4189_v6 }
 0x99c   :  { %v1656_v60 = vpop.permute.xlu1 %1655 }
 0x99d   :  { %3513 = vmatpush.msk.msrb.mxu0 %vm797_vm9, %v1656_v60 }
 0x99e   :  { %3514 = vmatmul.msk.f32.vlgmr.msrb.gmra.mxu0 %vm793_vm14, %v1477_v22 }
 0x9a1   :  { %v4552_v20 = vld.sshfl [vmem:[#allocation1] sm:$0xff pattern:$0x73625140] }
 0x9a2   :  { %2317 = vst [vmem:[#allocation1] ss:$4 sm:$0xff] %v4194_v8 }
 0x9a9   :  { %v4555_v27 = vld.sshfl [vmem:[#allocation1] sm:$0xff pattern:$0x73625140] }
 0x9aa   :  { %2346 = vst [vmem:[#allocation1] ss:$4 sm:$0xff] %v4197_v11 }
 0x9ac   :  { %v1845_v52 = vpop.permute.xlu1 %1844 }
 0x9ad   :  { %3523 = vmatpush.xpose.msk.msrb.mxu1 %vm367_vm7, %v1845_v52 }
 0x9b1   :  { %v4559_v26 = vld.sshfl [vmem:[#allocation1] sm:$0xff pattern:$0x73625140] }
 0x9b2   :  { %2375 = vst [vmem:[#allocation1] ss:$4 sm:$0xff] %v4202_v13 }
 0x9b4   :  { %v1873_v43 = vpop.permute.xlu0 %1872 }
 0x9b9   :  { %v4562_v44 = vld.sshfl [vmem:[#allocation1] sm:$0xff pattern:$0x73625140] }
 0x9ba   :  { %2404 = vst [vmem:[#allocation1] ss:$4 sm:$0xff] %v4207_v15 }
 0x9bc   :  { %v1877_v2 = vpop.permute.xlu0 %1876 }
 0x9bd   :  { %3525 = vmatpush.xpose.msk.msrb.mxu2 %vm367_vm7, %v1877_v2 }
 0x9c0   :  { %3526 = vmatmul.msk.f32.vlgmr.msrb.gmra.mxu2 %vm367_vm7, %v1873_v43 }
 0x9c1   :  { %v4567_v28 = vld.sshfl [vmem:[#allocation1] sm:$0xff pattern:$0x73625140] }
 0x9c2   :  { %2433 = vst [vmem:[#allocation1] ss:$4 sm:$0xff] %v4211_v17 }
 0x9c4   :  { %v1737_v7 = vpop.f32.mrf.mxu2  ;;  %v1813_v29 = vpop.permute.xlu0 %1812 }
 0x9c5   :  { %1762 = vst [vmem:[#allocation1 + $0x23] ss:$4 sm:$0xff] %v1737_v7  ;;  %v1941_v30 = vpop.permute.xlu2 %1940  ;;  %3521 = vmatpush.xpose.msk.msra.mxu0 %vm367_vm7, %v1813_v29  ;;  %v1905_v10 = vpop.permute.xlu1 %1904 }
 0x9c7   :  { %v1650_v32 = vpop.f32.mrf.mxu3 }
 0x9c8   :  { %1756 = vst [vmem:[#allocation1 + $0x20] ss:$4 sm:$0xff] %v1650_v32  ;;  %3522 = vmatmul.msk.f32.vlgmr.msra.gmra.mxu0 %vm367_vm7, %v1809_v63 }
 0x9c9   :  { %3529 = vmatpush.xpose.msk.msrb.mxu0 %vm367_vm7, %v1941_v30 }
 0x9cc   :  { %v1841_v33 = vpop.permute.xlu0 %1840 }
 0x9cd   :  { %3524 = vmatmul.msk.f32.vlgmr.msrb.gmra.mxu1 %vm367_vm7, %v1841_v33 }
 0x9d4   :  { %v1909_v12 = vpop.permute.xlu0 %1908 }
 0x9d5   :  { %3527 = vmatpush.xpose.msk.msra.mxu3 %vm367_vm7, %v1909_v12 }
 0x9d8   :  { %3528 = vmatmul.msk.f32.vlgmr.msra.gmra.mxu3 %vm367_vm7, %v1905_v10 }
 0x9e4   :  { %v2005_v34 = vpop.permute.xlu2 %2004 }
 0x9e5   :  { %3533 = vmatpush.xpose.msk.msra.mxu2 %vm367_vm7, %v2005_v34 }
 0x9ec   :  { %v1973_v35 = vpop.permute.xlu0 %1972 }
 0x9ed   :  { %3531 = vmatpush.xpose.msk.msra.mxu1 %vm367_vm7, %v1973_v35 }
 0x9f4   :  { %v2001_v24 = vpop.permute.xlu0 %2000 }
 0x9f5   :  { %3534 = vmatmul.msk.f32.vlgmr.msra.gmra.mxu2 %vm367_vm7, %v2001_v24 }
 0xa0d   :  { %v1708_v37 = vpop.f32.mrf.mxu1 }
 0xa0e   :  { %1760 = vst [vmem:[#allocation1 + $0x22] ss:$4 sm:$0xff] %v1708_v37 }
 0xa1b   :  { %v1679_v16 = vpop.f32.mrf.mxu0  ;;  %v1803_v38 = vpop.f32.mrf.mxu3 }
 0xa1c   :  { %1758 = vst [vmem:[#allocation1 + $0x21] ss:$4 sm:$0xff] %v1679_v16  ;;  %v2030_v21 = vmul.f32 0.35355338, %v1803_v38 }
 0xa1e   :  { %v2038_v41 = vsel %vm596_vm8, %v2030_v21, -inf }
 0xa1f   :  { %2039 = vmax.xlane.f32.xlu1 %v2038_v41 }
 0xa38   :  { %1936 = vrot.lane.b32.xlu1 %v4523_v36, %s4024_s4 }
 0xa43   :  { %v1899_v51 = vpop.f32.mrf.mxu2 }
 0xa44   :  { %v2033_v54 = vmul.f32 0.35355338, %v1899_v51 }
 0xa45   :  { %v1835_v42 = vpop.f32.mrf.mxu0 }
 0xa46   :  { %v2031_v23 = vmul.f32 0.35355338, %v1835_v42  ;;  %v2047_v55 = vsel %vm596_vm8, %v2033_v54, -inf }
 0xa48   :  { %v2041_v45 = vsel %vm596_vm8, %v2031_v23, -inf }
 0xa49   :  { %2042 = vmax.xlane.f32.xlu0 %v2041_v45 }
 0xa4a   :  { %v1867_v46 = vpop.f32.mrf.mxu1 }
 0xa4b   :  { %v2032_v48 = vmul.f32 0.35355338, %v1867_v46 }
 0xa4d   :  { %v2044_v49 = vsel %vm596_vm8, %v2032_v48, -inf }
 0xa4e   :  { %2045 = vmax.xlane.f32.xlu2 %v2044_v49 }
 0xa56   :  { %2048 = vmax.xlane.f32.xlu2 %v2047_v55 }
 0xa5b   :  { %v1931_v7 = vpop.f32.mrf.mxu3 }
 0xa5c   :  { %v4615_v30 = vmul.f32 0.35355338, %v1931_v7 }
 0xa5d   :  { %2232 = vrot.lane.b32.xlu0 %v4541_v1, %s4026_s22 }
 0xa5e   :  { %v2050_v32 = vsel %vm596_vm8, %v4615_v30, -inf }
 0xa6e   :  { %1968 = vrot.lane.b32.xlu2 %v4529_v39, %s4024_s4 }
 0xa78   :  { %v2027_v2 = vpop.f32.mrf.mxu2 }
 0xa79   :  { %v4611_v63 = vmul.f32 0.35355338, %v2027_v2 }
 0xa7b   :  { %v2059_v29 = vsel %vm596_vm8, %v4611_v63, -inf }
 0xa92   :  { %v2040_v36 = vpop.xlane.xlu1 %2039 }
 0xa93   :  { %v2062_v40 = vsub.f32 %v2030_v21, %v2040_v36 }
 0xa95   :  { %v2070_v56 = vmul.f32 1.442695, %v2062_v40 }
 0xa97   :  { %3718 = vpow2.f32 %v2070_v56 }
 0xa9d   :  { %v3719_v58 = vpop.eup %3718 }
 0xa9e   :  { %v2086_v61 = vsel %vm596_vm8, %v3719_v58, 0.0 }
 0xa9f   :  { %2087 = vadd.xlane.f32.xlu1 %v2086_v61 }
 0xaaa   :  { %v1937_v50 = vpop.permute.xlu1 %1936 }
 0xaab   :  { %3530 = vmatmul.msk.f32.vlgmr.msrb.gmra.mxu0 %vm367_vm7, %v1937_v50 }
 0xabc   :  { %v2043_v62 = vpop.xlane.xlu0 %2042 }
 0xabd   :  { %v2063_v31 = vsub.f32 %v2031_v23, %v2043_v62 }
 0xabf   :  { %v2072_v0 = vmul.f32 1.442695, %v2063_v31 }
 0xac1   :  { %3720 = vpow2.f32 %v2072_v0  ;;  %v2046_v25 = vpop.xlane.xlu2 %2045 }
 0xac2   :  { %v2064_v1 = vsub.f32 %v2032_v48, %v2046_v25 }
 0xac4   :  { %v2074_v47 = vmul.f32 1.442695, %v2064_v1 }
 0xac6   :  { %3722 = vpow2.f32 %v2074_v47 }
 0xac7   :  { %v4591_v39 = vpop.eup %3720 }
 0xac8   :  { %v2089_v5 = vsel %vm596_vm8, %v4591_v39, 0.0 }
 0xac9   :  { %2090 = vadd.xlane.f32.xlu2 %v2089_v5  ;;  %v2049_v9 = vpop.xlane.xlu2 %2048 }
 0xaca   :  { %v2065_v53 = vsub.f32 %v2033_v54, %v2049_v9 }
 0xacc   :  { %v4595_v14 = vpop.eup %3722  ;;  %v2076_v18 = vmul.f32 1.442695, %v2065_v53 }
 0xacd   :  { %v2092_v57 = vsel %vm596_vm8, %v4595_v14, 0.0 }
 0xace   :  { %3724 = vpow2.f32 %v2076_v18  ;;  %2093 = vadd.xlane.f32.xlu1 %v2092_v57 }
 0xacf   :  { %v2233_v60 = vpop.permute.xlu0 %2232 }
 0xad0   :  { %3535 = vmatpush.msk.msrb.mxu3 %vm797_vm9, %v2233_v60 }
 0xad1   :  { %v1969_v22 = vpop.permute.xlu2 %1968 }
 0xad2   :  { %3532 = vmatmul.msk.f32.vlgmr.msra.gmra.mxu1 %vm367_vm7, %v1969_v22 }
 0xad4   :  { %v4601_v52 = vpop.eup %3724 }
 0xad5   :  { %v2095_v43 = vsel %vm596_vm8, %v4601_v52, 0.0 }
 0xad6   :  { %2096 = vadd.xlane.f32.xlu0 %v2095_v43 }
 0xae1   :  { %2261 = vrot.lane.b32.xlu2 %v4546_v19, %s4026_s22 }
 0xae7   :  { %2319 = vrot.lane.b32.xlu1 %v4555_v27, %s4026_s22 }
 0xaea   :  { %2290 = vrot.lane.b32.xlu0 %v4552_v20, %s4026_s22 }
 0xb0a   :  { %2060 = vmax.xlane.f32.xlu2 %v2059_v29 }
 0xb11   :  { %2051 = vmax.xlane.f32.xlu1 %v2050_v32 }
 0xb12   :  { %v2088_v19 = vpop.xlane.xlu1 %2087 }
 0xb13   :  { %3726 = vrcp.f32 %v2088_v19  ;;  %v2121_v20 = vand.u32 2147483648, %v2088_v19  ;;  %v2119_v34 = vand.u32 2147483647, %v2088_v19  ;;  %vm2115_vm1 = vweird.f32 %v2088_v19 }
 0xb15   :  { %v2122_v24 = vor.u32 1.1754944e-38, %v2121_v20  ;;  %vm2120_vm4 = vcmp.eq.f32.partialorder %v2119_v34, 8.507059e+37 }
 0xb19   :  { %v3727_v27 = vpop.eup %3726 }
 0xb1a   :  { %v2111_v33 = vmul.f32 %v3727_v27, %v2088_v19  ;;  %vm2116_vm15 = vweird.f32 %v3727_v27 }
 0xb1b   :  { %vm2117_vm3 = vmor %vm2115_vm1, %vm2116_vm15 }
 0xb1c   :  { %v2112_v12 = vsub.f32 1.0, %v2111_v33 }
 0xb1e   :  { %v2113_v10 = vmul.f32 %v3727_v27, %v2112_v12 }
 0xb20   :  { %v2114_v35 = vadd.f32 %v3727_v27, %v2113_v10 }
 0xb22   :  { %v2118_v37 = vsel %vm2117_vm3, %v3727_v27, %v2114_v35  ;;  %2377 = vrot.lane.b32.xlu2 %v4562_v44, %s4026_s22  ;;  %v2434_v35 = vld.sshfl [vmem:[#allocation1] sm:$0xff pattern:$0x73625140] }
 0xb23   :  { %v2123_v16 = vsel %vm2120_vm4, %v2122_v24, %v2118_v37 }
 0xb24   :  { %v2124_v38 = vmul.f32 %v3719_v58, %v2123_v16 }
 0xb26   :  { %3536 = vmatmul.msk.f32.vlgmr.msrb.gmra.mxu3 %vm793_vm14, %v2124_v38 }
 0xb28   :  { %v1963_v21 = vpop.f32.mrf.mxu0 }
 0xb29   :  { %v4622_v41 = vmul.f32 0.35355338, %v1963_v21 }
 0xb2b   :  { %v2053_v42 = vsel %vm596_vm8, %v4622_v41, -inf }
 0xb2c   :  { %2054 = vmax.xlane.f32.xlu0 %v2053_v42 }
 0xb3c   :  { %v2091_v23 = vpop.xlane.xlu2 %2090 }
 0xb3d   :  { %3728 = vrcp.f32 %v2091_v23  ;;  %v2136_v51 = vand.u32 2147483648, %v2091_v23  ;;  %v2134_v36 = vand.u32 2147483647, %v2091_v23  ;;  %vm2130_vm6 = vweird.f32 %v2091_v23 }
 0xb3f   :  { %vm2135_vm11 = vcmp.eq.f32.partialorder %v2134_v36, 8.507059e+37 }
 0xb40   :  { %2348 = vrot.lane.b32.xlu0 %v4559_v26, %s4026_s22  ;;  %v2137_v26 = vor.u32 1.1754944e-38, %v2136_v51 }
 0xb41   :  { %v2094_v45 = vpop.xlane.xlu1 %2093 }
 0xb42   :  { %3730 = vrcp.f32 %v2094_v45  ;;  %v2151_v18 = vand.u32 2147483648, %v2094_v45  ;;  %vm2145_vm13 = vweird.f32 %v2094_v45  ;;  %v2149_v60 = vand.u32 2147483647, %v2094_v45 }
 0xb43   :  { %v3729_v46 = vpop.eup %3728 }
 0xb44   :  { %v2126_v44 = vmul.f32 %v3729_v46, %v2091_v23  ;;  %v2262_v48 = vpop.permute.xlu2 %2261  ;;  %vm2131_vm5 = vweird.f32 %v3729_v46  ;;  %v2152_v7 = vor.u32 1.1754944e-38, %v2151_v18  ;;  %vm2150_vm4 = vcmp.eq.f32.partialorder %v2149_v60, 8.507059e+37 }
 0xb45   :  { %3537 = vmatpush.msk.msra.mxu0 %vm797_vm9, %v2262_v48  ;;  %vm2132_vm10 = vmor %vm2130_vm6, %vm2131_vm5 }
 0xb46   :  { %v2127_v49 = vsub.f32 1.0, %v2126_v44 }
 0xb48   :  { %v3731_v54 = vpop.eup %3730  ;;  %v2128_v55 = vmul.f32 %v3729_v46, %v2127_v49 }
 0xb49   :  { %v2141_v40 = vmul.f32 %v3731_v54, %v2094_v45  ;;  %v2097_v56 = vpop.xlane.xlu0 %2096  ;;  %vm2146_vm12 = vweird.f32 %v3731_v54 }
 0xb4a   :  { %v2129_v58 = vadd.f32 %v3729_v46, %v2128_v55  ;;  %3732 = vrcp.f32 %v2097_v56  ;;  %v2166_v22 = vand.u32 2147483648, %v2097_v56  ;;  %vm2147_vm15 = vmor %vm2145_vm13, %vm2146_vm12  ;;  %v2164_v43 = vand.u32 2147483647, %v2097_v56 }
 0xb4b   :  { %v2142_v61 = vsub.f32 1.0, %v2141_v40  ;;  %vm2160_vm3 = vweird.f32 %v2097_v56 }
 0xb4c   :  { %v2133_v50 = vsel %vm2132_vm10, %v3729_v46, %v2129_v58  ;;  %v2167_v32 = vor.u32 1.1754944e-38, %v2166_v22  ;;  %vm2165_vm6 = vcmp.eq.f32.partialorder %v2164_v43, 8.507059e+37 }
 0xb4d   :  { %v2138_v62 = vsel %vm2135_vm11, %v2137_v26, %v2133_v50  ;;  %v2143_v31 = vmul.f32 %v3731_v54, %v2142_v61 }
 0xb4e   :  { %v2139_v0 = vmul.f32 %v4591_v39, %v2138_v62 }
 0xb4f   :  { %v1995_v25 = vpop.f32.mrf.mxu1  ;;  %v2144_v9 = vadd.f32 %v3731_v54, %v2143_v31 }
 0xb50   :  { %v3733_v1 = vpop.eup %3732  ;;  %v4630_v47 = vmul.f32 0.35355338, %v1995_v25  ;;  %3538 = vmatmul.msk.f32.vlgmr.msra.gmra.mxu0 %vm793_vm14, %v2139_v0 }
 0xb51   :  { %v2156_v5 = vmul.f32 %v3733_v1, %v2097_v56  ;;  %vm2161_vm1 = vweird.f32 %v3733_v1  ;;  %v2148_v2 = vsel %vm2147_vm15, %v3731_v54, %v2144_v9 }
 0xb52   :  { %v2056_v53 = vsel %vm596_vm8, %v4630_v47, -inf  ;;  %vm2162_vm5 = vmor %vm2160_vm3, %vm2161_vm1  ;;  %v2153_v19 = vsel %vm2150_vm4, %v2152_v7, %v2148_v2 }
 0xb53   :  { %v2157_v57 = vsub.f32 1.0, %v2156_v5  ;;  %2057 = vmax.xlane.f32.xlu1 %v2056_v53  ;;  %v2154_v34 = vmul.f32 %v4595_v14, %v2153_v19 }
 0xb55   :  { %v2158_v39 = vmul.f32 %v3733_v1, %v2157_v57 }
 0xb57   :  { %v2159_v29 = vadd.f32 %v3733_v1, %v2158_v39 }
 0xb59   :  { %v2163_v27 = vsel %vm2162_vm5, %v3733_v1, %v2159_v29  ;;  %v2320_v33 = vpop.permute.xlu1 %2319 }
 0xb5a   :  { %v2168_v12 = vsel %vm2165_vm6, %v2167_v32, %v2163_v27  ;;  %3541 = vmatpush.msk.msrb.mxu2 %vm797_vm9, %v2320_v33 }
 0xb5b   :  { %v2169_v20 = vmul.f32 %v4601_v52, %v2168_v12 }
 0xb5c   :  { %v2291_v10 = vpop.permute.xlu0 %2290 }
 0xb5d   :  { %3539 = vmatpush.msk.msrb.mxu1 %vm797_vm9, %v2291_v10  ;;  %3542 = vmatmul.msk.f32.vlgmr.msrb.gmra.mxu2 %vm793_vm14, %v2169_v20 }
 0xb5e   :  { %3540 = vmatmul.msk.f32.vlgmr.msrb.gmra.mxu1 %vm793_vm14, %v2154_v34 }
 0xb6c   :  { %2435 = vrot.lane.b32.xlu1 %v2434_v35, %s4026_s22 }
 0xb74   :  { %2406 = vrot.lane.b32.xlu1 %v4567_v28, %s4026_s22 }
 0xb7d   :  { %v2061_v24 = vpop.xlane.xlu2 %2060 }
 0xb7e   :  { %v2069_v37 = vsub.f32 %v4611_v63, %v2061_v24 }
 0xb80   :  { %v2084_v16 = vmul.f32 1.442695, %v2069_v37 }
 0xb82   :  { %3734 = vpow2.f32 %v2084_v16 }
 0xb84   :  { %v2052_v52 = vpop.xlane.xlu1 %2051 }
 0xb85   :  { %v2066_v14 = vsub.f32 %v4615_v30, %v2052_v52  ;;  %v2378_v38 = vpop.permute.xlu2 %2377 }
 0xb86   :  { %3545 = vmatpush.msk.msrb.mxu0 %vm797_vm9, %v2378_v38 }
 0xb87   :  { %v2078_v21 = vmul.f32 1.442695, %v2066_v14 }
 0xb88   :  { %v4647_v42 = vpop.eup %3734 }
 0xb89   :  { %3736 = vpow2.f32 %v2078_v21  ;;  %v2107_v23 = vsel %vm596_vm8, %v4647_v42, 0.0 }
 0xb8a   :  { %2108 = vadd.xlane.f32.xlu0 %v2107_v23 }
 0xb8f   :  { %v4651_v28 = vpop.eup %3736 }
 0xb90   :  { %v2098_v63 = vsel %vm596_vm8, %v4651_v28, 0.0 }
 0xb91   :  { %2099 = vadd.xlane.f32.xlu2 %v2098_v63 }
 0xb9f   :  { %v2055_v45 = vpop.xlane.xlu0 %2054 }
 0xba0   :  { %v2067_v30 = vsub.f32 %v4622_v41, %v2055_v45 }
 0xba2   :  { %v2080_v46 = vmul.f32 1.442695, %v2067_v30 }
 0xba4   :  { %3738 = vpow2.f32 %v2080_v46 }
 0xba9   :  { %v2256_v44 = vpop.f32.mrf.mxu3 }
 0xbaa   :  { %v4656_v48 = vpop.eup %3738  ;;  %2470 = vst [vmem:[#allocation1] ss:$4 sm:$0xff] %v2256_v44 }
 0xbab   :  { %v2101_v49 = vsel %vm596_vm8, %v4656_v48, 0.0 }
 0xbac   :  { %2102 = vadd.xlane.f32.xlu1 %v2101_v49 }
 0xbb2   :  { %v2349_v51 = vpop.permute.xlu0 %2348 }
 0xbb3   :  { %3543 = vmatpush.msk.msra.mxu3 %vm797_vm9, %v2349_v51 }
 0xbc6   :  { %v2058_v54 = vpop.xlane.xlu1 %2057 }
 0xbc7   :  { %v2068_v55 = vsub.f32 %v4630_v47, %v2058_v54 }
 0xbc9   :  { %v2082_v36 = vmul.f32 1.442695, %v2068_v55 }
 0xbcb   :  { %3740 = vpow2.f32 %v2082_v36 }
 0xbcd   :  { %v2285_v40 = vpop.f32.mrf.mxu0 }
 0xbce   :  { %2472 = vst [vmem:[#allocation1 + $0x1] ss:$4 sm:$0xff] %v2285_v40 }
 0xbd1   :  { %v4662_v41 = vpop.eup %3740 }
 0xbd2   :  { %v2104_v56 = vsel %vm596_vm8, %v4662_v41, 0.0 }
 0xbd3   :  { %2105 = vadd.xlane.f32.xlu2 %v2104_v56 }
 0xbdb   :  { %v2314_v58 = vpop.f32.mrf.mxu1 }
 0xbdc   :  { %2474 = vst [vmem:[#allocation1 + $0x2] ss:$4 sm:$0xff] %v2314_v58 }
 0xbde   :  { %v2436_v26 = vpop.permute.xlu1 %2435 }
 0xbdf   :  { %3549 = vmatpush.msk.msra.mxu2 %vm797_vm9, %v2436_v26 }
 0xbe0   :  { %v2343_v61 = vpop.f32.mrf.mxu2 }
 0xbe1   :  { %2476 = vst [vmem:[#allocation1 + $0x3] ss:$4 sm:$0xff] %v2343_v61 }
 0xbe6   :  { %v2407_v50 = vpop.permute.xlu1 %2406 }
 0xbe7   :  { %3547 = vmatpush.msk.msra.mxu1 %vm797_vm9, %v2407_v50 }
 0xbe8   :  { %v4668_v62 = vld.sshfl [vmem:[#allocation1] sm:$0xff pattern:$0x73625140] }
 0xbe9   :  { %2496 = vst [vmem:[#allocation1] ss:$4 sm:$0xff] %v4180_v3 }
 0xbf0   :  { %v2497_v31 = vld.sshfl [vmem:[#allocation1] sm:$0xff pattern:$0x73625140] }
 0xbf1   :  { %2498 = vrot.lane.b32.xlu1 %v2497_v31, %s4027_s23  ;;  %2500 = vst [vmem:[#allocation1] ss:$4 sm:$0xff] %v4180_v3 }
 0xbf8   :  { %v2501_v0 = vld.sshfl [vmem:[#allocation1] sm:$0xff pattern:$0x73625140] }
 0xbf9   :  { %2502 = vrot.lane.b32.xlu2 %v2501_v0, %s4028_s24  ;;  %2528 = vst [vmem:[#allocation1] ss:$4 sm:$0xff] %v4184_v4 }
 0xbfd   :  { %v2109_v25 = vpop.xlane.xlu0 %2108 }
 0xbfe   :  { %3742 = vrcp.f32 %v2109_v25  ;;  %v2226_v18 = vand.u32 2147483648, %v2109_v25  ;;  %v2224_v22 = vand.u32 2147483647, %v2109_v25  ;;  %vm2220_vm11 = vweird.f32 %v2109_v25 }
 0xc00   :  { %v4675_v1 = vld.sshfl [vmem:[#allocation1] sm:$0xff pattern:$0x73625140]  ;;  %v2227_v2 = vor.u32 1.1754944e-38, %v2226_v18  ;;  %vm2225_vm13 = vcmp.eq.f32.partialorder %v2224_v22, 8.507059e+37 }
 0xc01   :  { %2532 = vst [vmem:[#allocation1] ss:$4 sm:$0xff] %v4184_v4 }
 0xc04   :  { %v3743_v47 = vpop.eup %3742  ;;  %v2100_v5 = vpop.xlane.xlu2 %2099 }
 0xc05   :  { %v2216_v9 = vmul.f32 %v3743_v47, %v2109_v25  ;;  %3744 = vrcp.f32 %v2100_v5  ;;  %vm2221_vm10 = vweird.f32 %v3743_v47  ;;  %v2181_v27 = vand.u32 2147483648, %v2100_v5 }
 0xc06   :  { %vm2222_vm12 = vmor %vm2220_vm11, %vm2221_vm10  ;;  %v2179_v20 = vand.u32 2147483647, %v2100_v5  ;;  %vm2175_vm1 = vweird.f32 %v2100_v5 }
 0xc07   :  { %v2217_v53 = vsub.f32 1.0, %v2216_v9  ;;  %v2182_v35 = vor.u32 1.1754944e-38, %v2181_v27 }
 0xc08   :  { %v2533_v57 = vld.sshfl [vmem:[#allocation1] sm:$0xff pattern:$0x73625140]  ;;  %vm2180_vm4 = vcmp.eq.f32.partialorder %v2179_v20, 8.507059e+37 }
 0xc09   :  { %v2218_v60 = vmul.f32 %v3743_v47, %v2217_v53  ;;  %2534 = vrot.lane.b32.xlu2 %v2533_v57, %s4028_s24  ;;  %2560 = vst [vmem:[#allocation1] ss:$4 sm:$0xff] %v4189_v6 }
 0xc0b   :  { %v3745_v39 = vpop.eup %3744  ;;  %v2219_v43 = vadd.f32 %v3743_v47, %v2218_v60 }
 0xc0c   :  { %v2171_v7 = vmul.f32 %v3745_v39, %v2100_v5  ;;  %vm2176_vm15 = vweird.f32 %v3745_v39 }
 0xc0d   :  { %v2223_v29 = vsel %vm2222_vm12, %v3743_v47, %v2219_v43  ;;  %vm2177_vm3 = vmor %vm2175_vm1, %vm2176_vm15 }
 0xc0e   :  { %v2228_v32 = vsel %vm2225_vm13, %v2227_v2, %v2223_v29  ;;  %v2172_v19 = vsub.f32 1.0, %v2171_v7 }
 0xc0f   :  { %v2229_v33 = vmul.f32 %v4647_v42, %v2228_v32 }
 0xc10   :  { %v2173_v12 = vmul.f32 %v3745_v39, %v2172_v19  ;;  %v4681_v10 = vld.sshfl [vmem:[#allocation1] sm:$0xff pattern:$0x73625140] }
 0xc11   :  { %2564 = vst [vmem:[#allocation1] ss:$4 sm:$0xff] %v4189_v6  ;;  %3550 = vmatmul.msk.f32.vlgmr.msra.gmra.mxu2 %vm793_vm14, %v2229_v33 }
 0xc12   :  { %v2174_v34 = vadd.f32 %v3745_v39, %v2173_v12 }
 0xc14   :  { %v2178_v24 = vsel %vm2177_vm3, %v3745_v39, %v2174_v34 }
 0xc15   :  { %v2183_v37 = vsel %vm2180_vm4, %v2182_v35, %v2178_v24 }
 0xc16   :  { %v2184_v16 = vmul.f32 %v4651_v28, %v2183_v37 }
 0xc18   :  { %3544 = vmatmul.msk.f32.vlgmr.msra.gmra.mxu3 %vm793_vm14, %v2184_v16  ;;  %v2565_v52 = vld.sshfl [vmem:[#allocation1] sm:$0xff pattern:$0x73625140] }
 0xc19   :  { %2566 = vrot.lane.b32.xlu1 %v2565_v52, %s4028_s24  ;;  %2592 = vst [vmem:[#allocation1] ss:$4 sm:$0xff] %v4194_v8 }
 0xc1f   :  { %v2103_v14 = vpop.xlane.xlu1 %2102 }
 0xc20   :  { %3746 = vrcp.f32 %v2103_v14  ;;  %v2593_v38 = vld.sshfl [vmem:[#allocation1] sm:$0xff pattern:$0x73625140]  ;;  %v2196_v28 = vand.u32 2147483648, %v2103_v14  ;;  %v2194_v30 = vand.u32 2147483647, %v2103_v14  ;;  %vm2190_vm6 = vweird.f32 %v2103_v14 }
 0xc21   :  { %2594 = vrot.lane.b32.xlu0 %v2593_v38, %s4027_s23  ;;  %2596 = vst [vmem:[#allocation1] ss:$4 sm:$0xff] %v4194_v8 }
 0xc22   :  { %v2197_v44 = vor.u32 1.1754944e-38, %v2196_v28  ;;  %vm2195_vm11 = vcmp.eq.f32.partialorder %v2194_v30, 8.507059e+37 }
 0xc26   :  { %v3747_v21 = vpop.eup %3746 }
 0xc27   :  { %v2186_v42 = vmul.f32 %v3747_v21, %v2103_v14  ;;  %vm2191_vm5 = vweird.f32 %v3747_v21 }
 0xc28   :  { %v2597_v23 = vld.sshfl [vmem:[#allocation1] sm:$0xff pattern:$0x73625140]  ;;  %vm2192_vm10 = vmor %vm2190_vm6, %vm2191_vm5 }
 0xc29   :  { %v2187_v63 = vsub.f32 1.0, %v2186_v42  ;;  %2598 = vrot.lane.b32.xlu0 %v2597_v23, %s4028_s24  ;;  %2624 = vst [vmem:[#allocation1] ss:$4 sm:$0xff] %v4197_v11 }
 0xc2b   :  { %v2188_v45 = vmul.f32 %v3747_v21, %v2187_v63 }
 0xc2d   :  { %v2189_v46 = vadd.f32 %v3747_v21, %v2188_v45 }
 0xc2f   :  { %v2193_v49 = vsel %vm2192_vm10, %v3747_v21, %v2189_v46 }
 0xc30   :  { %v2198_v51 = vsel %vm2195_vm11, %v2197_v44, %v2193_v49  ;;  %v2625_v54 = vld.sshfl [vmem:[#allocation1] sm:$0xff pattern:$0x73625140] }
 0xc31   :  { %2626 = vrot.lane.b32.xlu1 %v2625_v54, %s4027_s23  ;;  %2628 = vst [vmem:[#allocation1] ss:$4 sm:$0xff] %v4197_v11  ;;  %v2199_v55 = vmul.f32 %v4656_v48, %v2198_v51 }
 0xc33   :  { %3546 = vmatmul.msk.f32.vlgmr.msrb.gmra.mxu0 %vm793_vm14, %v2199_v55 }
 0xc38   :  { %v2629_v36 = vld.sshfl [vmem:[#allocation1] sm:$0xff pattern:$0x73625140] }
 0xc39   :  { %2630 = vrot.lane.b32.xlu0 %v2629_v36, %s4028_s24  ;;  %2656 = vst [vmem:[#allocation1] ss:$4 sm:$0xff] %v4202_v13 }
 0xc40   :  { %v2657_v40 = vld.sshfl [vmem:[#allocation1] sm:$0xff pattern:$0x73625140] }
 0xc41   :  { %2660 = vst [vmem:[#allocation1] ss:$4 sm:$0xff] %v4202_v13 }
 0xc46   :  { %v2106_v56 = vpop.xlane.xlu2 %2105 }
 0xc47   :  { %3748 = vrcp.f32 %v2106_v56  ;;  %v2211_v31 = vand.u32 2147483648, %v2106_v56  ;;  %v2209_v25 = vand.u32 2147483647, %v2106_v56  ;;  %vm2205_vm13 = vweird.f32 %v2106_v56 }
 0xc48   :  { %v2661_v58 = vld.sshfl [vmem:[#allocation1] sm:$0xff pattern:$0x73625140] }
 0xc49   :  { %2662 = vrot.lane.b32.xlu1 %v2661_v58, %s4028_s24  ;;  %2688 = vst [vmem:[#allocation1] ss:$4 sm:$0xff] %v4207_v15  ;;  %v2212_v9 = vor.u32 1.1754944e-38, %v2211_v31  ;;  %vm2210_vm1 = vcmp.eq.f32.partialorder %v2209_v25, 8.507059e+37 }
 0xc4d   :  { %v3749_v26 = vpop.eup %3748 }
 0xc4e   :  { %v2201_v61 = vmul.f32 %v3749_v26, %v2106_v56  ;;  %vm2206_vm12 = vweird.f32 %v3749_v26 }
 0xc4f   :  { %vm2207_vm15 = vmor %vm2205_vm13, %vm2206_vm12 }
 0xc50   :  { %v2202_v48 = vsub.f32 1.0, %v2201_v61  ;;  %v2689_v50 = vld.sshfl [vmem:[#allocation1] sm:$0xff pattern:$0x73625140] }
 0xc51   :  { %2690 = vrot.lane.b32.xlu1 %v2689_v50, %s4027_s23  ;;  %2692 = vst [vmem:[#allocation1] ss:$4 sm:$0xff] %v4207_v15 }
 0xc52   :  { %v2203_v0 = vmul.f32 %v3749_v26, %v2202_v48 }
 0xc53   :  { %v2503_v47 = vpop.permute.xlu2 %2502 }
 0xc54   :  { %v2204_v5 = vadd.f32 %v3749_v26, %v2203_v0  ;;  %3551 = vmatpush.xpose.msk.msrb.mxu3 %vm367_vm7, %v2503_v47 }
 0xc56   :  { %v2208_v53 = vsel %vm2207_vm15, %v3749_v26, %v2204_v5 }
 0xc57   :  { %v2213_v18 = vsel %vm2210_vm1, %v2212_v9, %v2208_v53 }
 0xc58   :  { %v2693_v57 = vld.sshfl [vmem:[#allocation1] sm:$0xff pattern:$0x73625140]  ;;  %v2214_v60 = vmul.f32 %v4662_v41, %v2213_v18 }
 0xc59   :  { %2720 = vst [vmem:[#allocation1] ss:$4 sm:$0xff] %v4211_v17 }
 0xc5a   :  { %3548 = vmatmul.msk.f32.vlgmr.msra.gmra.mxu1 %vm793_vm14, %v2214_v60 }
 0xc60   :  { %v2721_v22 = vld.sshfl [vmem:[#allocation1] sm:$0xff pattern:$0x73625140] }
 0xc61   :  { %2722 = vrot.lane.b32.xlu0 %v2721_v22, %s4027_s23  ;;  %2724 = vst [vmem:[#allocation1] ss:$4 sm:$0xff] %v4211_v17 }
 0xc63   :  { %v2499_v39 = vpop.permute.xlu1 %2498  ;;  %v2535_v43 = vpop.permute.xlu2 %2534 }
 0xc64   :  { %3552 = vmatmul.msk.f32.vlgmr.msrb.gmra.mxu3 %vm367_vm7, %v2499_v39  ;;  %3553 = vmatpush.xpose.msk.msra.mxu0 %vm367_vm7, %v2535_v43 }
 0xc68   :  { %v2725_v2 = vld.sshfl [vmem:[#allocation1] sm:$0xff pattern:$0x73625140] }
 0xc69   :  { %2530 = vrot.lane.b32.xlu0 %v4675_v1, %s4027_s23  ;;  %2726 = vrot.lane.b32.xlu2 %v2725_v2, %s4028_s24  ;;  %2952 = vst [vmem:[#allocation1] ss:$4 sm:$0xff] %v4180_v3 }
 0xc70   :  { %v2953_v41 = vld.sshfl [vmem:[#allocation1] sm:$0xff pattern:$0x73625140] }
 0xc71   :  { %2694 = vrot.lane.b32.xlu0 %v2693_v57, %s4028_s24  ;;  %2562 = vrot.lane.b32.xlu2 %v4681_v10, %s4027_s23  ;;  %2981 = vst [vmem:[#allocation1] ss:$4 sm:$0xff] %v4184_v4 }
 0xc78   :  { %v4720_v7 = vld.sshfl [vmem:[#allocation1] sm:$0xff pattern:$0x73625140] }
 0xc79   :  { %2658 = vrot.lane.b32.xlu2 %v2657_v40, %s4027_s23  ;;  %3010 = vst [vmem:[#allocation1] ss:$4 sm:$0xff] %v4189_v6  ;;  %v4735_v6 = vld.sshfl [vmem:[#allocation1 + $0x20] sm:$0xff pattern:$0x73625140] }
 0xc80   :  { %v4724_v29 = vld.sshfl [vmem:[#allocation1] sm:$0xff pattern:$0x73625140] }
 0xc81   :  { %2954 = vrot.lane.b32.xlu2 %v2953_v41, %s4029_s25  ;;  %3039 = vst [vmem:[#allocation1] ss:$4 sm:$0xff] %v4194_v8 }
 0xc88   :  { %v4728_v3 = vld.sshfl [vmem:[#allocation1] sm:$0xff pattern:$0x73625140] }
 0xc89   :  { %3068 = vst [vmem:[#allocation1] ss:$4 sm:$0xff] %v4197_v11 }
 0xc8b   :  { %v2567_v1 = vpop.permute.xlu1 %2566 }
 0xc8c   :  { %3555 = vmatpush.xpose.msk.msrb.mxu1 %vm367_vm7, %v2567_v1 }
 0xc90   :  { %v4732_v4 = vld.sshfl [vmem:[#allocation1] sm:$0xff pattern:$0x73625140] }
 0xc91   :  { %3097 = vst [vmem:[#allocation1] ss:$4 sm:$0xff] %v4202_v13 }
 0xc93   :  { %v2595_v32 = vpop.permute.xlu0 %2594 }
 0xc94   :  { %v2459_v19 = vpop.f32.mrf.mxu2 }
 0xc95   :  { %2484 = vst [vmem:[#allocation1 + $0x23] ss:$4 sm:$0xff] %v2459_v19 }
 0xc98   :  { %v4737_v27 = vld.sshfl [vmem:[#allocation1] sm:$0xff pattern:$0x73625140] }
 0xc99   :  { %3126 = vst [vmem:[#allocation1] ss:$4 sm:$0xff] %v4207_v15 }
 0xc9b   :  { %v2372_v8 = vpop.f32.mrf.mxu3  ;;  %v2599_v33 = vpop.permute.xlu0 %2598 }
 0xc9c   :  { %2478 = vst [vmem:[#allocation1 + $0x20] ss:$4 sm:$0xff] %v2372_v8  ;;  %3557 = vmatpush.xpose.msk.msrb.mxu2 %vm367_vm7, %v2599_v33 }
 0xc9f   :  { %3558 = vmatmul.msk.f32.vlgmr.msrb.gmra.mxu2 %vm367_vm7, %v2595_v32 }
 0xca0   :  { %v4742_v11 = vld.sshfl [vmem:[#allocation1] sm:$0xff pattern:$0x73625140] }
 0xca1   :  { %3155 = vst [vmem:[#allocation1] ss:$4 sm:$0xff] %v4211_v17 }
 0xca3   :  { %v2627_v12 = vpop.permute.xlu1 %2626 }
 0xcab   :  { %v2631_v13 = vpop.permute.xlu0 %2630 }
 0xcac   :  { %3559 = vmatpush.xpose.msk.msra.mxu3 %vm367_vm7, %v2631_v13 }
 0xcaf   :  { %3560 = vmatmul.msk.f32.vlgmr.msra.gmra.mxu3 %vm367_vm7, %v2627_v12 }
 0xcb0   :  { %v2401_v20 = vpop.f32.mrf.mxu0 }
 0xcb1   :  { %2480 = vst [vmem:[#allocation1 + $0x21] ss:$4 sm:$0xff] %v2401_v20 }
 0xcbb   :  { %v2663_v15 = vpop.permute.xlu1 %2662 }
 0xcbc   :  { %3561 = vmatpush.xpose.msk.msrb.mxu0 %vm367_vm7, %v2663_v15 }
 0xcc3   :  { %v2727_v10 = vpop.permute.xlu2 %2726  ;;  %v2691_v14 = vpop.permute.xlu1 %2690 }
 0xcc4   :  { %3565 = vmatpush.xpose.msk.msra.mxu2 %vm367_vm7, %v2727_v10 }
 0xccb   :  { %v2563_v34 = vpop.permute.xlu2 %2562 }
 0xccc   :  { %3556 = vmatmul.msk.f32.vlgmr.msrb.gmra.mxu1 %vm367_vm7, %v2563_v34 }
 0xcd3   :  { %v2723_v35 = vpop.permute.xlu0 %2722  ;;  %v2659_v24 = vpop.permute.xlu2 %2658 }
 0xcd4   :  { %3566 = vmatmul.msk.f32.vlgmr.msra.gmra.mxu2 %vm367_vm7, %v2723_v35 }
 0xcd7   :  { %v2430_v17 = vpop.f32.mrf.mxu1 }
 0xcd8   :  { %2482 = vst [vmem:[#allocation1 + $0x22] ss:$4 sm:$0xff] %v2430_v17 }
 0xcdb   :  { %v2531_v37 = vpop.permute.xlu0 %2530  ;;  %v2955_v16 = vpop.permute.xlu2 %2954 }
 0xcdc   :  { %3554 = vmatmul.msk.f32.vlgmr.msra.gmra.mxu0 %vm367_vm7, %v2531_v37  ;;  %3567 = vmatpush.msk.msrb.mxu3 %vm797_vm9, %v2955_v16 }
 0xce3   :  { %v2695_v52 = vpop.permute.xlu0 %2694 }
 0xce4   :  { %3562 = vmatmul.msk.f32.vlgmr.msrb.gmra.mxu0 %vm367_vm7, %v2659_v24  ;;  %3563 = vmatpush.xpose.msk.msra.mxu1 %vm367_vm7, %v2695_v52 }
 0xce7   :  { %v2525_v38 = vpop.f32.mrf.mxu3  ;;  %3564 = vmatmul.msk.f32.vlgmr.msra.gmra.mxu1 %vm367_vm7, %v2691_v14 }
 0xce8   :  { %v2752_v21 = vmul.f32 0.35355338, %v2525_v38 }
 0xcea   :  { %v2760_v42 = vsel %vm596_vm8, %v2752_v21, -inf }
 0xceb   :  { %2761 = vmax.xlane.f32.xlu0 %v2760_v42 }
 0xd22   :  { %v2621_v23 = vpop.f32.mrf.mxu2 }
 0xd23   :  { %v2755_v63 = vmul.f32 0.35355338, %v2621_v23 }
 0xd25   :  { %v2769_v28 = vsel %vm596_vm8, %v2755_v63, -inf }
 0xd26   :  { %2770 = vmax.xlane.f32.xlu2 %v2769_v28 }
 0xd32   :  { %v2653_v45 = vpop.f32.mrf.mxu3 }
 0xd33   :  { %v2756_v30 = vmul.f32 0.35355338, %v2653_v45 }
 0xd35   :  { %v2772_v46 = vsel %vm596_vm8, %v2756_v30, -inf }
 0xd36   :  { %2773 = vmax.xlane.f32.xlu2 %v2772_v46 }
 0xd49   :  { %v2589_v44 = vpop.f32.mrf.mxu1 }
 0xd4a   :  { %v2754_v49 = vmul.f32 0.35355338, %v2589_v44  ;;  %v3156_v44 = vld.sshfl [vmem:[#allocation1] sm:$0xff pattern:$0x73625140] }
 0xd4c   :  { %v2766_v51 = vsel %vm596_vm8, %v2754_v49, -inf }
 0xd4d   :  { %2767 = vmax.xlane.f32.xlu0 %v2766_v51 }
 0xd57   :  { %v2749_v40 = vpop.f32.mrf.mxu2 }
 0xd58   :  { %v2759_v56 = vmul.f32 0.35355338, %v2749_v40 }
 0xd59   :  { %v2557_v54 = vpop.f32.mrf.mxu0 }
 0xd5a   :  { %v2753_v55 = vmul.f32 0.35355338, %v2557_v54  ;;  %v2781_v48 = vsel %vm596_vm8, %v2759_v56, -inf }
 0xd5c   :  { %v2763_v36 = vsel %vm596_vm8, %v2753_v55, -inf }
 0xd5d   :  { %2764 = vmax.xlane.f32.xlu1 %v2763_v36 }
 0xd5e   :  { %v2762_v25 = vpop.xlane.xlu0 %2761 }
 0xd5f   :  { %v2784_v47 = vsub.f32 %v2752_v21, %v2762_v25 }
 0xd61   :  { %v2685_v58 = vpop.f32.mrf.mxu0  ;;  %v2792_v9 = vmul.f32 1.442695, %v2784_v47 }
 0xd62   :  { %v2757_v26 = vmul.f32 0.35355338, %v2685_v58 }
 0xd63   :  { %3750 = vpow2.f32 %v2792_v9 }
 0xd64   :  { %v2717_v61 = vpop.f32.mrf.mxu1  ;;  %v2775_v50 = vsel %vm596_vm8, %v2757_v26, -inf }
 0xd65   :  { %v2758_v31 = vmul.f32 0.35355338, %v2717_v61  ;;  %2782 = vmax.xlane.f32.xlu1 %v2781_v48  ;;  %2776 = vmax.xlane.f32.xlu0 %v2775_v50 }
 0xd67   :  { %v2778_v0 = vsel %vm596_vm8, %v2758_v31, -inf }
 0xd68   :  { %2779 = vmax.xlane.f32.xlu2 %v2778_v0 }
 0xd69   :  { %v4772_v57 = vpop.eup %3750 }
 0xd6a   :  { %v2808_v22 = vsel %vm596_vm8, %v4772_v57, 0.0 }
 0xd79   :  { %2983 = vrot.lane.b32.xlu0 %v4720_v7, %s4029_s25 }
 0xd7e   :  { %3041 = vrot.lane.b32.xlu1 %v4728_v3, %s4029_s25 }
 0xd80   :  { %3012 = vrot.lane.b32.xlu2 %v4724_v29, %s4029_s25 }
 0xd81   :  { %3070 = vrot.lane.b32.xlu0 %v4732_v4, %s4029_s25 }
 0xd99   :  { %v2771_v5 = vpop.xlane.xlu2 %2770 }
 0xd9a   :  { %v2787_v53 = vsub.f32 %v2755_v63, %v2771_v5 }
 0xd9c   :  { %v2798_v18 = vmul.f32 1.442695, %v2787_v53 }
 0xd9e   :  { %3752 = vpow2.f32 %v2798_v18 }
 0xda4   :  { %v4774_v60 = vpop.eup %3752 }
 0xda5   :  { %v2817_v2 = vsel %vm596_vm8, %v4774_v60, 0.0 }
 0xda8   :  { %2809 = vadd.xlane.f32.xlu1 %v2808_v22 }
 0xda9   :  { %v2774_v39 = vpop.xlane.xlu2 %2773 }
 0xdaa   :  { %v2788_v43 = vsub.f32 %v2756_v30, %v2774_v39 }
 0xdab   :  { %2818 = vadd.xlane.f32.xlu0 %v2817_v2 }
 0xdac   :  { %v2800_v41 = vmul.f32 1.442695, %v2788_v43 }
 0xdae   :  { %3754 = vpow2.f32 %v2800_v41 }
 0xdb4   :  { %v4780_v7 = vpop.eup %3754 }
 0xdb5   :  { %v2820_v29 = vsel %vm596_vm8, %v4780_v7, 0.0 }
 0xdb6   :  { %2821 = vadd.xlane.f32.xlu0 %v2820_v29 }
 0xdc0   :  { %v2768_v3 = vpop.xlane.xlu0 %2767 }
 0xdc1   :  { %v2786_v1 = vsub.f32 %v2754_v49, %v2768_v3  ;;  %v2486_v49 = vld.sshfl [vmem:[#allocation1 + $0x20] sm:$0xff pattern:$0x73625140] }
 0xdc3   :  { %v2796_v4 = vmul.f32 1.442695, %v2786_v1 }
 0xdc5   :  { %3756 = vpow2.f32 %v2796_v4 }
 0xdcb   :  { %v4784_v32 = vpop.eup %3756 }
 0xdcc   :  { %v2814_v19 = vsel %vm596_vm8, %v4784_v32, 0.0 }
 0xdcd   :  { %2815 = vadd.xlane.f32.xlu1 %v2814_v19 }
 0xdd0   :  { %v2765_v8 = vpop.xlane.xlu1 %2764 }
 0xdd1   :  { %v2785_v33 = vsub.f32 %v2753_v55, %v2765_v8 }
 0xdd3   :  { %v2794_v13 = vmul.f32 1.442695, %v2785_v33 }
 0xdd5   :  { %3758 = vpow2.f32 %v2794_v13 }
 0xdd8   :  { %v2783_v12 = vpop.xlane.xlu1 %2782  ;;  %v2777_v20 = vpop.xlane.xlu0 %2776 }
 0xdd9   :  { %v2791_v15 = vsub.f32 %v2759_v56, %v2783_v12  ;;  %v2789_v10 = vsub.f32 %v2757_v26, %v2777_v20 }
 0xddb   :  { %v4788_v34 = vpop.eup %3758  ;;  %v2806_v35 = vmul.f32 1.442695, %v2791_v15  ;;  %v2802_v24 = vmul.f32 1.442695, %v2789_v10  ;;  %v2780_v17 = vpop.xlane.xlu2 %2779 }
 0xddc   :  { %v2790_v37 = vsub.f32 %v2758_v31, %v2780_v17  ;;  %v2811_v16 = vsel %vm596_vm8, %v4788_v34, 0.0 }
 0xddd   :  { %3760 = vpow2.f32 %v2806_v35  ;;  %2812 = vadd.xlane.f32.xlu2 %v2811_v16 }
 0xdde   :  { %3762 = vpow2.f32 %v2802_v24  ;;  %v2804_v52 = vmul.f32 1.442695, %v2790_v37 }
 0xde0   :  { %3764 = vpow2.f32 %v2804_v52 }
 0xde3   :  { %v4792_v14 = vpop.eup %3760  ;;  %v3013_v38 = vpop.permute.xlu2 %3012 }
 0xde4   :  { %v4794_v21 = vpop.eup %3762  ;;  %3571 = vmatpush.msk.msrb.mxu1 %vm797_vm9, %v3013_v38  ;;  %v2829_v42 = vsel %vm596_vm8, %v4792_v14, 0.0 }
 0xde5   :  { %2830 = vadd.xlane.f32.xlu2 %v2829_v42  ;;  %v2823_v23 = vsel %vm596_vm8, %v4794_v21, 0.0 }
 0xde6   :  { %v4801_v63 = vpop.eup %3764  ;;  %2824 = vadd.xlane.f32.xlu1 %v2823_v23 }
 0xde7   :  { %v2826_v28 = vsel %vm596_vm8, %v4801_v63, 0.0 }
 0xde8   :  { %2827 = vadd.xlane.f32.xlu0 %v2826_v28 }
 0xdeb   :  { %v2984_v45 = vpop.permute.xlu0 %2983 }
 0xdec   :  { %3569 = vmatpush.msk.msra.mxu0 %vm797_vm9, %v2984_v45 }
 0xdf0   :  { %v3042_v30 = vpop.permute.xlu1 %3041 }
 0xdf1   :  { %3573 = vmatpush.msk.msrb.mxu2 %vm797_vm9, %v3042_v30 }
 0xdf3   :  { %v3071_v46 = vpop.permute.xlu0 %3070 }
 0xdf4   :  { %3575 = vmatpush.msk.msra.mxu3 %vm797_vm9, %v3071_v46 }
 0xdfc   :  { %3128 = vrot.lane.b32.xlu0 %v4742_v11, %s4029_s25 }
 0xdfd   :  { %3099 = vrot.lane.b32.xlu2 %v4737_v27, %s4029_s25 }
 0xdff   :  { %3157 = vrot.lane.b32.xlu1 %v3156_v44, %s4029_s25 }
 0xe05   :  { %2487 = vrot.lane.b32.xlu2 %v4668_v62, %s4030_s0 }
 0xe07   :  { %1765 = vrot.lane.b32.xlu1 %v4493_v59, %s4010_s9 }
 0xe0d   :  { %2489 = vrot.lane.b32.xlu2 %v2486_v49, %s4030_s0 }
 0xe0f   :  { %1767 = vrot.lane.b32.xlu1 %v4735_v6, %s4010_s9  ;;  %s4031_s9 = smov 24  }
 0xe1b   :  { %v2810_v51 = vpop.xlane.xlu1 %2809 }
 0xe1c   :  { %3766 = vrcp.f32 %v2810_v51  ;;  %v2843_v40 = vand.u32 2147483648, %v2810_v51  ;;  %v2841_v62 = vand.u32 2147483647, %v2810_v51  ;;  %vm2837_vm8 = vweird.f32 %v2810_v51 }
 0xe1e   :  { %v2819_v11 = vpop.xlane.xlu0 %2818  ;;  %v2844_v61 = vor.u32 1.1754944e-38, %v2843_v40  ;;  %vm2842_vm5 = vcmp.eq.f32.partialorder %v2841_v62, 8.507059e+37 }
 0xe1f   :  { %3768 = vrcp.f32 %v2819_v11  ;;  %v2888_v48 = vand.u32 2147483648, %v2819_v11  ;;  %v2886_v31 = vand.u32 2147483647, %v2819_v11  ;;  %vm2882_vm6 = vweird.f32 %v2819_v11 }
 0xe21   :  { %v2889_v5 = vor.u32 1.1754944e-38, %v2888_v48  ;;  %vm2887_vm11 = vcmp.eq.f32.partialorder %v2886_v31, 8.507059e+37 }
 0xe22   :  { %v3767_v54 = vpop.eup %3766 }
 0xe23   :  { %v2833_v27 = vmul.f32 %v3767_v54, %v2810_v51  ;;  %vm2838_vm7 = vweird.f32 %v3767_v54 }
 0xe24   :  { %vm2839_vm3 = vmor %vm2837_vm8, %vm2838_vm7 }
 0xe25   :  { %v3769_v55 = vpop.eup %3768  ;;  %v2834_v36 = vsub.f32 1.0, %v2833_v27 }
 0xe26   :  { %v2878_v56 = vmul.f32 %v3769_v55, %v2819_v11  ;;  %vm2883_vm4 = vweird.f32 %v3769_v55 }
 0xe27   :  { %v2835_v58 = vmul.f32 %v3767_v54, %v2834_v36  ;;  %vm2884_vm10 = vmor %vm2882_vm6, %vm2883_vm4 }
 0xe28   :  { %v2879_v26 = vsub.f32 1.0, %v2878_v56 }
 0xe29   :  { %v2836_v59 = vadd.f32 %v3767_v54, %v2835_v58  ;;  %v2822_v50 = vpop.xlane.xlu0 %2821 }
 0xe2a   :  { %v2880_v6 = vmul.f32 %v3769_v55, %v2879_v26  ;;  %3770 = vrcp.f32 %v2822_v50  ;;  %v2903_v41 = vand.u32 2147483648, %v2822_v50  ;;  %v2901_v3 = vand.u32 2147483647, %v2822_v50 }
 0xe2b   :  { %v2840_v0 = vsel %vm2839_vm3, %v3767_v54, %v2836_v59  ;;  %vm2897_vm13 = vweird.f32 %v2822_v50 }
 0xe2c   :  { %v2845_v25 = vsel %vm2842_vm5, %v2844_v61, %v2840_v0  ;;  %v2881_v47 = vadd.f32 %v3769_v55, %v2880_v6  ;;  %vm2902_vm1 = vcmp.eq.f32.partialorder %v2901_v3, 8.507059e+37 }
 0xe2d   :  { %v2846_v9 = vmul.f32 %v4772_v57, %v2845_v25  ;;  %v2904_v57 = vor.u32 1.1754944e-38, %v2903_v41 }
 0xe2e   :  { %v2885_v53 = vsel %vm2884_vm10, %v3769_v55, %v2881_v47 }
 0xe2f   :  { %v2890_v18 = vsel %vm2887_vm11, %v2889_v5, %v2885_v53  ;;  %3568 = vmatmul.msk.f32.vlgmr.msrb.gmra.mxu3 %vm793_vm14, %v2846_v9 }
 0xe30   :  { %v3771_v22 = vpop.eup %3770  ;;  %v2891_v39 = vmul.f32 %v4774_v60, %v2890_v18 }
 0xe31   :  { %v2893_v43 = vmul.f32 %v3771_v22, %v2822_v50  ;;  %vm2898_vm12 = vweird.f32 %v3771_v22 }
 0xe32   :  { %3574 = vmatmul.msk.f32.vlgmr.msrb.gmra.mxu2 %vm793_vm14, %v2891_v39  ;;  %vm2899_vm15 = vmor %vm2897_vm13, %vm2898_vm12 }
 0xe33   :  { %v2894_v2 = vsub.f32 1.0, %v2893_v43 }
 0xe35   :  { %v2895_v29 = vmul.f32 %v3771_v22, %v2894_v2 }
 0xe37   :  { %v2896_v1 = vadd.f32 %v3771_v22, %v2895_v29 }
 0xe39   :  { %v2900_v4 = vsel %vm2899_vm15, %v3771_v22, %v2896_v1 }
 0xe3a   :  { %v2905_v19 = vsel %vm2902_vm1, %v2904_v57, %v2900_v4 }
 0xe3b   :  { %v2906_v8 = vmul.f32 %v4780_v7, %v2905_v19 }
 0xe3d   :  { %3576 = vmatmul.msk.f32.vlgmr.msra.gmra.mxu3 %vm793_vm14, %v2906_v8 }
 0xe40   :  { %v2816_v60 = vpop.xlane.xlu1 %2815 }
 0xe41   :  { %3772 = vrcp.f32 %v2816_v60  ;;  %v2873_v20 = vand.u32 2147483648, %v2816_v60  ;;  %v2871_v10 = vand.u32 2147483647, %v2816_v60  ;;  %vm2867_vm8 = vweird.f32 %v2816_v60 }
 0xe43   :  { %v2874_v24 = vor.u32 1.1754944e-38, %v2873_v20  ;;  %vm2872_vm4 = vcmp.eq.f32.partialorder %v2871_v10, 8.507059e+37 }
 0xe47   :  { %v3773_v33 = vpop.eup %3772 }
 0xe48   :  { %v2863_v13 = vmul.f32 %v3773_v33, %v2816_v60  ;;  %vm2868_vm7 = vweird.f32 %v3773_v33 }
 0xe49   :  { %vm2869_vm3 = vmor %vm2867_vm8, %vm2868_vm7 }
 0xe4a   :  { %v2864_v12 = vsub.f32 1.0, %v2863_v13 }
 0xe4c   :  { %v2865_v15 = vmul.f32 %v3773_v33, %v2864_v12 }
 0xe4e   :  { %v2866_v35 = vadd.f32 %v3773_v33, %v2865_v15 }
 0xe50   :  { %v2870_v17 = vsel %vm2869_vm3, %v3773_v33, %v2866_v35  ;;  %v2813_v37 = vpop.xlane.xlu2 %2812 }
 0xe51   :  { %v2875_v16 = vsel %vm2872_vm4, %v2874_v24, %v2870_v17  ;;  %3774 = vrcp.f32 %v2813_v37  ;;  %v2858_v45 = vand.u32 2147483648, %v2813_v37  ;;  %v2856_v44 = vand.u32 2147483647, %v2813_v37 }
 0xe52   :  { %v2876_v7 = vmul.f32 %v4784_v32, %v2875_v16  ;;  %vm2852_vm6 = vweird.f32 %v2813_v37 }
 0xe53   :  { %v2859_v51 = vor.u32 1.1754944e-38, %v2858_v45  ;;  %vm2857_vm11 = vcmp.eq.f32.partialorder %v2856_v44, 8.507059e+37 }
 0xe54   :  { %3572 = vmatmul.msk.f32.vlgmr.msrb.gmra.mxu1 %vm793_vm14, %v2876_v7 }
 0xe57   :  { %v3775_v52 = vpop.eup %3774 }
 0xe58   :  { %v2848_v38 = vmul.f32 %v3775_v52, %v2813_v37  ;;  %v4826_v42 = vpop.xlane.xlu2 %2830  ;;  %vm2853_vm5 = vweird.f32 %v3775_v52 }
 0xe59   :  { %3776 = vrcp.f32 %v4826_v42  ;;  %v2825_v23 = vpop.xlane.xlu1 %2824  ;;  %vm2854_vm10 = vmor %vm2852_vm6, %vm2853_vm5  ;;  %vm2942_vm7 = vweird.f32 %v4826_v42  ;;  %v2948_v53 = vand.u32 2147483648, %v4826_v42 }
 0xe5a   :  { %v2849_v28 = vsub.f32 1.0, %v2848_v38  ;;  %3778 = vrcp.f32 %v2825_v23  ;;  %v2918_v48 = vand.u32 2147483648, %v2825_v23  ;;  %v2916_v6 = vand.u32 2147483647, %v2825_v23  ;;  %v3223_v38 = vld [vmem:[#allocation16 + $0x18] sm:$0xff] }
 0xe5b   :  { %v2828_v30 = vpop.xlane.xlu0 %2827  ;;  %vm2912_vm15 = vweird.f32 %v2825_v23  ;;  %v2949_v57 = vor.u32 1.1754944e-38, %v2948_v53  ;;  %3246 = vmatpush.msrb.mxu3 %v3223_v38 }
 0xe5c   :  { %v2850_v46 = vmul.f32 %v3775_v52, %v2849_v28  ;;  %3780 = vrcp.f32 %v2828_v30  ;;  %v2931_v0 = vand.u32 2147483647, %v2828_v30  ;;  %v2933_v25 = vand.u32 2147483648, %v2828_v30  ;;  %v3220_v28 = vld [vmem:[#allocation16] sm:$0xff] }
 0xe5d   :  { %v2919_v18 = vor.u32 1.1754944e-38, %v2918_v48  ;;  %vm2917_vm4 = vcmp.eq.f32.partialorder %v2916_v6, 8.507059e+37  ;;  %vm2927_vm5 = vweird.f32 %v2828_v30 }
 0xe5e   :  { %v2851_v49 = vadd.f32 %v3775_v52, %v2850_v46  ;;  %v2934_v41 = vor.u32 1.1754944e-38, %v2933_v25 }
 0xe5f   :  { %v3777_v32 = vpop.eup %3776 }
 0xe60   :  { %v3779_v11 = vpop.eup %3778  ;;  %v2855_v54 = vsel %vm2854_vm10, %v3775_v52, %v2851_v49  ;;  %v2938_v27 = vmul.f32 %v3777_v32, %v4826_v42  ;;  %v3100_v55 = vpop.permute.xlu2 %3099  ;;  %vm2943_vm13 = vweird.f32 %v3777_v32  ;;  %vm2932_vm10 = vcmp.eq.f32.partialorder %v2931_v0, 8.507059e+37  ;;  %v3651_v49 = vld [vmem:[%s4884_s7] ss:$0 sm:$0xff]  ;;  %s4033_s7 = smov [#allocation18]  }
 0xe61   :  { %v2860_v36 = vsel %vm2857_vm11, %v2859_v51, %v2855_v54  ;;  %v2908_v40 = vmul.f32 %v3779_v11, %v2825_v23  ;;  %3577 = vmatpush.msk.msrb.mxu0 %vm797_vm9, %v3100_v55  ;;  %vm2913_vm12 = vweird.f32 %v3779_v11  ;;  %vm4836_vm3 = vmor %vm2942_vm7, %vm2943_vm13  ;;  %vm2493_vm13 = vcmask 195712   ;;  %v3221_v23 = vld [vmem:[#allocation16 + $0x8] sm:$0xff]  ;;  %v3652_v51 = vld [vmem:[%s4885_s8] ss:$0 sm:$0xff]  ;;  %s3399_s8 = sshll.u32 %s4033_s7, 4  ;;  %s3400_s8 = int_to_ptr.vmem [resolvable:$true] %s3399_s8 }
 0xe62   :  { %v3781_v56 = vpop.eup %3780  ;;  %v2939_v58 = vsub.f32 1.0, %v2938_v27  ;;  %v2861_v62 = vmul.f32 %v4788_v34, %v2860_v36  ;;  %v2946_v34 = vand.u32 2147483647, %v4826_v42  ;;  %vm2914_vm8 = vmor %vm2912_vm15, %vm2913_vm12  ;;  %vm1771_vm12 = vcmask 130112   ;;  %v3222_v42 = vld [vmem:[#allocation16 + $0x10] sm:$0xff] }
 0xe63   :  { %v2909_v26 = vsub.f32 1.0, %v2908_v40  ;;  %v2923_v59 = vmul.f32 %v3781_v56, %v2828_v30  ;;  %vm2928_vm1 = vweird.f32 %v3781_v56  ;;  %3247 = vmatpush.msrb.mxu3 %v3222_v42  ;;  %vm3340_vm15 = vcmask 1044484   ;;  %3404 = dma.vmem_to_hbm [thread:$0]  %s3400_s8, 32, %s3402_s29, [#allocation19]  }
 0xe64   :  { %v2940_v61 = vmul.f32 %v3777_v32, %v2939_v58  ;;  %3570 = vmatmul.msk.f32.vlgmr.msra.gmra.mxu0 %vm793_vm14, %v2861_v62  ;;  %vm2929_vm6 = vmor %vm2927_vm5, %vm2928_vm1  ;;  %vm2947_vm11 = vcmp.eq.f32.partialorder %v2946_v34, 8.507059e+37  ;;  %vm3342_vm1 = vcmask 1045509   ;;  %vm3344_vm7 = vcmask 1046534   ;;  %3415 = dma.vmem_to_hbm [thread:$0]  %s3411_s13, 32, %s3413_s16, [#allocation19]  }
 0xe65   :  { %v2910_v50 = vmul.f32 %v3779_v11, %v2909_v26  ;;  %v2924_v31 = vsub.f32 1.0, %v2923_v59  ;;  %3248 = vmatpush.msrb.mxu3 %v3221_v23 }
 0xe66   :  { %v2941_v47 = vadd.f32 %v3777_v32, %v2940_v61 }
 0xe67   :  { %v2911_v5 = vadd.f32 %v3779_v11, %v2910_v50  ;;  %v2925_v9 = vmul.f32 %v3781_v56, %v2924_v31  ;;  %3249 = vmatpush.msrb.mxu3 %v3220_v28  ;;  %v3653_v31 = vld [vmem:[#allocation7] ss:$0 sm:$0xff] }
 0xe68   :  { %v2945_v29 = vsel %vm4836_vm3, %v3777_v32, %v2941_v47  ;;  %v4032_v32 = vmov 0   ;;  %vm3381_vm3 = vcmask 58368  }
 0xe69   :  { %v2915_v39 = vsel %vm2914_vm8, %v3779_v11, %v2911_v5  ;;  %v2926_v43 = vadd.f32 %v3781_v56, %v2925_v9  ;;  %v2950_v8 = vsel %vm2947_vm11, %v2949_v57, %v2945_v29  ;;  %3648 = vset.pattern.permute.xlu1 %v4032_v32  ;;  %vm3346_vm8 = vcmask 1047559  }
 0xe6a   :  { %v2920_v2 = vsel %vm2917_vm4, %v2919_v18, %v2915_v39  ;;  %v2951_v13 = vmul.f32 %v4792_v14, %v2950_v8  ;;  %v3324_v39 = vlaneseq }
 0xe6b   :  { %v2930_v3 = vsel %vm2929_vm6, %v3781_v56, %v2926_v43  ;;  %v2921_v1 = vmul.f32 %v4794_v21, %v2920_v2  ;;  %v2488_v21 = vpop.permute.xlu2 %2487 }
 0xe6c   :  { %v2935_v4 = vsel %vm2932_vm10, %v2934_v41, %v2930_v3  ;;  %v3325_v41 = vand.u32 127, %v3324_v39 }
 0xe6d   :  { %3578 = vmatmul.msk.f32.vlgmr.msrb.gmra.mxu0 %vm793_vm14, %v2921_v1  ;;  %v2936_v19 = vmul.f32 %v4801_v63, %v2935_v4 }
 0xe6e   :  { %v3129_v60 = vpop.permute.xlu0 %3128 }
 0xe6f   :  { %3579 = vmatpush.msk.msra.mxu1 %vm797_vm9, %v3129_v60 }
 0xe70   :  { %3580 = vmatmul.msk.f32.vlgmr.msra.gmra.mxu1 %vm793_vm14, %v2936_v19 }
 0xe71   :  { %v3158_v33 = vpop.permute.xlu1 %3157 }
 0xe72   :  { %3581 = vmatpush.msk.msra.mxu2 %vm797_vm9, %v3158_v33  ;;  %vm3215_vm9 = vcmask 261312  }
 0xe73   :  { %3582 = vmatmul.msk.f32.vlgmr.msra.gmra.mxu2 %vm793_vm14, %v2951_v13  ;;  %v2490_v20 = vpop.permute.xlu2 %2489  ;;  %vm3336_vm14 = vcmask 1042434  }
 0xe79   :  { %v1766_v12 = vpop.permute.xlu1 %1765 }
 0xe7a   :  { %1772 = vst.msk [vmem:[#allocation6] sm:$0xff] %vm1771_vm12, %v1766_v12 }
 0xe7b   :  { %2494 = vst.msk [vmem:[#allocation6] sm:$0xff] %vm2493_vm13, %v2488_v21 }
 0xe81   :  { %v1768_v63 = vpop.permute.xlu1 %1767 }
 0xe82   :  { %1773 = vst.msk [vmem:[#allocation6 + $0x8] sm:$0xff] %vm1771_vm12, %v1768_v63 }
 0xe83   :  { %2495 = vst.msk [vmem:[#allocation6 + $0x8] sm:$0xff] %vm2493_vm13, %v2490_v20 }
 0xeb2   :  { %v2978_v15 = vpop.f32.mrf.mxu3 }
 0xeb3   :  { %3192 = vst [vmem:[#allocation1] ss:$4 sm:$0xff] %v2978_v15 }
 0xeb5   :  { %v3065_v10 = vpop.f32.mrf.mxu2 }
 0xeb6   :  { %3198 = vst [vmem:[#allocation1 + $0x3] ss:$4 sm:$0xff] %v3065_v10 }
 0xec0   :  { %v3094_v35 = vpop.f32.mrf.mxu3 }
 0xec1   :  { %3200 = vst [vmem:[#allocation1 + $0x20] ss:$4 sm:$0xff] %v3094_v35 }
 0xed1   :  { %v3036_v14 = vpop.f32.mrf.mxu1 }
 0xed2   :  { %3196 = vst [vmem:[#allocation1 + $0x2] ss:$4 sm:$0xff] %v3036_v14 }
 0xee1   :  { %v3007_v24 = vpop.f32.mrf.mxu0 }
 0xee2   :  { %3194 = vst [vmem:[#allocation1 + $0x1] ss:$4 sm:$0xff] %v3007_v24 }
 0xee9   :  { %v3207_v17 = vld.sshfl [vmem:[#allocation1] sm:$0xff pattern:$0x73625140] }
 0xeea   :  { %v3123_v37 = vpop.f32.mrf.mxu0  ;;  %3209 = vrot.lane.b32.xlu0 %v3207_v17, %s4031_s9 }
 0xeeb   :  { %3202 = vst [vmem:[#allocation1 + $0x21] ss:$4 sm:$0xff] %v3123_v37 }
 0xeed   :  { %v3152_v16 = vpop.f32.mrf.mxu1 }
 0xeee   :  { %3204 = vst [vmem:[#allocation1 + $0x22] ss:$4 sm:$0xff] %v3152_v16 }
 0xef6   :  { %v3181_v7 = vpop.f32.mrf.mxu2 }
 0xef7   :  { %3206 = vst [vmem:[#allocation1 + $0x23] ss:$4 sm:$0xff] %v3181_v7 }
 0xefe   :  { %v3208_v52 = vld.sshfl [vmem:[#allocation1 + $0x20] sm:$0xff pattern:$0x73625140] }
 0xeff   :  { %3211 = vrot.lane.b32.xlu0 %v3208_v52, %s4031_s9 }
 0xf5c   :  { %v3210_v45 = vpop.permute.xlu0 %3209 }
 0xf5d   :  { %3216 = vst.msk [vmem:[#allocation6] sm:$0xff] %vm3215_vm9, %v3210_v45 }
 0xf64   :  { %v3218_v30 = vld [vmem:[#allocation6] sm:$0xff] }
 0xf65   :  { %3583 = vmatmul.msk.f32.vlgmr.msrb.gmra.mxu3 %vm204_vm2, %v3218_v30 }
 0xf71   :  { %v3212_v46 = vpop.permute.xlu0 %3211 }
 0xf72   :  { %3217 = vst.msk [vmem:[#allocation6 + $0x8] sm:$0xff] %vm3215_vm9, %v3212_v46 }
 0xf79   :  { %v3219_v44 = vld [vmem:[#allocation6 + $0x8] sm:$0xff] }
 0xf7a   :  { %3584 = vmatmul.msk.f32.gmra.mxu3 %vm204_vm2, %v3219_v44  ;;  %vm3334_vm2 = vcmask 1041409  }
 0xfe8   :  { %v3251_v11 = vpop.f32.mrf.mxu3 }
 0xfe9   :  { %v3252_v54 = vadd.f32 %v3651_v49, %v3251_v11 }
 0xfeb   :  { %v3261_v27 = vmul.f32 %v3652_v51, %v3252_v54 }
 0xfed   :  { %v3277_v55 = vsel %vm124_vm0, %v3261_v27, 0.0  ;;  %v3266_v36 = vrot.slane %v3261_v27, 4  ;;  %v3265_v40 = vrot.slane %v3261_v27, 2  ;;  %v3267_v62 = vrot.slane %v3261_v27, 6 }
 0xfee   :  { %3278 = vadd.xlane.f32.xlu1 %v3277_v55 }
 0xfef   :  { %v3283_v56 = vsel %vm124_vm0, %v3266_v36, 0.0  ;;  %v3280_v58 = vsel %vm124_vm0, %v3265_v40, 0.0  ;;  %v3286_v26 = vsel %vm124_vm0, %v3267_v62, 0.0 }
 0xff0   :  { %3284 = vadd.xlane.f32.xlu0 %v3283_v56  ;;  %3281 = vadd.xlane.f32.xlu2 %v3280_v58 }
 0xff8   :  { %3287 = vadd.xlane.f32.xlu2 %v3286_v26 }
 0xffd   :  { %v3254_v59 = vpop.f32.mrf.mxu3 }
 0xffe   :  { %v3255_v61 = vadd.f32 %v3651_v49, %v3254_v59 }
0x1000   :  { %v3262_v48 = vmul.f32 %v3652_v51, %v3255_v61 }
0x1002   :  { %v3289_v50 = vsel %vm124_vm0, %v3262_v48, 0.0  ;;  %v3268_v6 = vrot.slane %v3262_v48, 2  ;;  %v3269_v25 = vrot.slane %v3262_v48, 4  ;;  %v3270_v47 = vrot.slane %v3262_v48, 6 }
0x1003   :  { %3290 = vadd.xlane.f32.xlu0 %v3289_v50 }
0x1004   :  { %v3292_v0 = vsel %vm124_vm0, %v3268_v6, 0.0  ;;  %v3295_v5 = vsel %vm124_vm0, %v3269_v25, 0.0  ;;  %v3298_v9 = vsel %vm124_vm0, %v3270_v47, 0.0  ;;  %vm3338_vm0 = vcmask 1043459  }
0x1005   :  { %3293 = vadd.xlane.f32.xlu2 %v3292_v0 }
0x1007   :  { %3305 = vperm.xlu1 %3648, %v3653_v31  }
0x100b   :  { %3296 = vadd.xlane.f32.xlu0 %v3295_v5 }
0x100d   :  { %3299 = vadd.xlane.f32.xlu2 %v3298_v9 }
0x1061   :  { %v3279_v22 = vpop.xlane.xlu1 %3278 }
0x1063   :  { %v3282_v34 = vpop.xlane.xlu2 %3281  ;;  %v3285_v53 = vpop.xlane.xlu0 %3284 }
0x106b   :  { %v3288_v18 = vpop.xlane.xlu2 %3287 }
0x1076   :  { %v3291_v43 = vpop.xlane.xlu0 %3290 }
0x1078   :  { %v3294_v2 = vpop.xlane.xlu2 %3293 }
0x1079   :  { %v3306_v29 = vpop.permute.xlu1 %3305 }
0x107a   :  { %v3308_v3 = vadd.f32 %v3306_v29, %v3279_v22  ;;  %v3309_v1 = vadd.f32 %v3306_v29, %v3282_v34  ;;  %v3310_v57 = vadd.f32 %v3306_v29, %v3285_v53  ;;  %v3311_v4 = vadd.f32 %v3306_v29, %v3288_v18 }
0x107b   :  { %v3312_v19 = vadd.f32 %v3306_v29, %v3291_v43  ;;  %v3313_v33 = vadd.f32 %v3306_v29, %v3294_v2 }
0x107c   :  { %v3326_v8 = vperm.slane %v3308_v3, %v3325_v41  ;;  %v3327_v60 = vperm.slane %v3309_v1, %v3325_v41  ;;  %v3328_v13 = vperm.slane %v3310_v57, %v3325_v41  ;;  %v3329_v12 = vperm.slane %v3311_v4, %v3325_v41 }
0x107d   :  { %v3330_v15 = vperm.slane %v3312_v19, %v3325_v41  ;;  %v3331_v14 = vperm.slane %v3313_v33, %v3325_v41 }
0x107e   :  { %v3297_v21 = vpop.xlane.xlu0 %3296  ;;  %v3335_v63 = vsel %vm3334_vm2, %v3327_v60, %v3326_v8 }
0x107f   :  { %v3314_v20 = vadd.f32 %v3306_v29, %v3297_v21  ;;  %v3337_v10 = vsel %vm3336_vm14, %v3328_v13, %v3335_v63 }
0x1080   :  { %v3300_v35 = vpop.xlane.xlu2 %3299  ;;  %v3339_v24 = vsel %vm3338_vm0, %v3329_v12, %v3337_v10 }
0x1081   :  { %v3332_v17 = vperm.slane %v3314_v20, %v3325_v41  ;;  %v3315_v37 = vadd.f32 %v3306_v29, %v3300_v35  ;;  %v3341_v16 = vsel %vm3340_vm15, %v3330_v15, %v3339_v24 }
0x1082   :  { %v3343_v7 = vsel %vm3342_vm1, %v3331_v14, %v3341_v16 }
0x1083   :  { %v3333_v52 = vperm.slane %v3315_v37, %v3325_v41  ;;  %v3345_v38 = vsel %vm3344_vm7, %v3332_v17, %v3343_v7 }
0x1085   :  { %v3347_v42 = vsel %vm3346_vm8, %v3333_v52, %v3345_v38 }
0x1086   :  { %3349 = vxpose.xlu0.b32.start.end [1/1] (short) (narrow) %v3347_v42, 8 }
0x10ed   :  { %3649 = vset.pattern.permute.xlu0 %v4032_v32 }
0x112a   :  { %v3365_v23 = vpop.trf.xlu0 }
0x112b   :  { %3382 = vst.msk [vmem:[#allocation17] sm:$0x3] %vm3381_vm3, %v3365_v23 }
0x112c   :  { %3393 = dma.vmem_to_hbm [thread:$0]  %s3389_s18, 32, %s3391_s11, [#allocation10]  }
0x112d   :  { %3992 = dma.done.wait [#allocation10], 32  }
0x112e   :  { %3993 = vsyncadd [#allocation10], 4294967264 }
0x112f   :  { %3994 = dma.done.wait [#allocation19], 64  }
0x1130   :  { %3995 = vsyncadd [#allocation19], 4294967232 }
0x1131   :  { %3428 = vsyncpa [#allocation9], 1 }
0x1132   :  { %3429 = vsyncpa [#allocation12], 1 }
0x1133   :  { %3430 = vsyncpa [#allocation15], 1 }
0x1134   :  { %3431 = vsyncpa [#allocation10], 1 }
0x1135   :  { %3432 = vsyncpa [#allocation19], 1 }

</bundles_post_ra>
